<compile_context>
chip_gen: v5e
topology: v5e:2x2
jax: 0.10.0
libtpu: 0.0.40
codegen_flags: <defaults>
</compile_context>

<pallas_src>
import functools

import jax
import jax.numpy as jnp
from jax import lax
from jax.experimental import pallas as pl
from jax.experimental.pallas import tpu as pltpu


# ----------------------------- Pallas kernel ------------------------------- #

def _spatial_attention_kernel(x_ref, w_ref, o_ref, plane_ref, *, C, H, W, K):
    """Fused channel-mean/max -> KxK conv (pad K//2, no bias) -> sigmoid.

    x_ref:     (1, C, H, W)        NCHW input tile for one batch element
    w_ref:     (2*K*K,)  SMEM      flattened torch OIHW weight:
                                   w_ref[0:K*K]     = taps for the avg plane,
                                   w_ref[K*K:2*K*K] = taps for the max plane
    o_ref:     (1, H, W)           sigmoid(conv(...)) output plane
    plane_ref: (2, H+K-1, W+K-1)   VMEM scratch: zero-padded [avg, max] planes
    """
    pad = K // 2
    kk = K * K

    # --- Channel mean & max in ONE pass over C (each plane loaded once). ---
    x0 = x_ref[0, 0].astype(jnp.float32)           # (H, W)
    s = x0
    m = x0
    for c in range(1, C):                          # static unroll, VPU only
        xc = x_ref[0, c].astype(jnp.float32)
        s = s + xc
        m = jnp.maximum(m, xc)
    avg = s * (1.0 / C)

    # --- In-kernel zero padding into VMEM scratch (no wrapper-side pad). ---
    plane_ref[...] = jnp.zeros(plane_ref.shape, plane_ref.dtype)
    plane_ref[0, pad:pad + H, pad:pad + W] = avg
    plane_ref[1, pad:pad + H, pad:pad + W] = m
    planes = plane_ref[...]                        # (2, H+K-1, W+K-1)

    # --- KxK conv as 2*K*K scalar-weight FMAs (weights are SMEM scalars). ---
    acc = jnp.zeros((H, W), jnp.float32)
    for tap in range(kk):                          # static unroll
        ky, kx = tap // K, tap % K
        acc = acc + w_ref[tap] * planes[0, ky:ky + H, kx:kx + W]
        acc = acc + w_ref[kk + tap] * planes[1, ky:ky + H, kx:kx + W]

    # --- Sigmoid: exp on the EUP slot, then elementwise on the VPU. ---
    o_ref[...] = (1.0 / (1.0 + jnp.exp(-acc))).reshape(1, H, W)


# ------------------------------ Host wrapper ------------------------------- #

def spatial_attention(x_nchw, weight, *, kernel_size=7):
    """x_nchw: (N, C, H, W) f32; weight: (1, 2, K, K) torch-OIHW -> (N, 1, H, W)."""
    N, C, H, W = x_nchw.shape
    K = kernel_size
    assert weight.shape == (1, 2, K, K), weight.shape
    w_flat = weight.reshape(2 * K * K).astype(jnp.float32)

    kernel = functools.partial(_spatial_attention_kernel, C=C, H=H, W=W, K=K)
    out = pl.pallas_call(
        kernel,
        out_shape=jax.ShapeDtypeStruct((N, H, W), jnp.float32),
        grid=(N,),
        in_specs=[
            pl.BlockSpec((1, C, H, W), lambda n: (n, 0, 0, 0)),
            pl.BlockSpec(memory_space=pltpu.MemorySpace.SMEM),  # conv weights
        ],
        out_specs=pl.BlockSpec((1, H, W), lambda n: (n, 0, 0)),
        scratch_shapes=[pltpu.VMEM((2, H + K - 1, W + K - 1), jnp.float32)],
        compiler_params=pltpu.CompilerParams(dimension_semantics=("parallel",)),
    )(x_nchw, w_flat)
    return out[:, None, :, :]                      # NCHW (N, 1, H, W)


# ----------------------- Pure-JAX reference (checking) ---------------------- #

def spatial_attention_ref(x_nchw, weight):
    avg = jnp.mean(x_nchw, axis=1, keepdims=True)
    mx = jnp.max(x_nchw, axis=1, keepdims=True)
    xc = jnp.concatenate([avg, mx], axis=1)        # (N, 2, H, W)
    y = lax.conv_general_dilated(
        xc, weight, window_strides=(1, 1), padding="SAME",
        dimension_numbers=("NCHW", "OIHW", "NCHW"),
        precision=lax.Precision.HIGHEST)
    return 1.0 / (1.0 + jnp.exp(-y))


# ---------------------------------- Main ----------------------------------- #

if __name__ == "__main__":
    N, C, H, W = 2, 4, 16, 16
    K = 7

    key = jax.random.PRNGKey(0)
    kx, kw = jax.random.split(key)
    x = jax.random.normal(kx, (N, C, H, W), jnp.float32)
    w = jax.random.normal(kw, (1, 2, K, K), jnp.float32) * 0.1

    out = jax.block_until_ready(spatial_attention(x, w, kernel_size=K))
    assert out.shape == (N, 1, H, W), out.shape

    ref = jax.block_until_ready(spatial_attention_ref(x, w))
    max_err = float(jnp.max(jnp.abs(out - ref)))
    assert jnp.allclose(out, ref, atol=2e-4, rtol=2e-4), max_err

    print("KERNEL_OK")
</pallas_src>

<mosaic_0001>
module attributes {stable_mosaic.version = 11 : i64} {
  func.func @_spatial_attention_kernel(%arg0: i32, %arg1: memref<1x4x16x16xf32, #tpu.memory_space<vmem>>, %arg2: memref<98xf32, #tpu.memory_space<smem>>, %arg3: memref<1x16x16xf32, #tpu.memory_space<vmem>>, %arg4: memref<2x22x22xf32, #tpu.memory_space<vmem>>) attributes {dimension_semantics = [#tpu.dimension_semantics<parallel>], iteration_bounds = array<i64: 2>, scalar_prefetch = 0 : i64, scratch_operands = 1 : i64, tpu.core_type = #tpu.core_type<tc>, window_params = [{transform_indices = @transform_0, window_bounds = array<i64: 1, 4, 16, 16>}, {transform_indices = @transform_1, window_bounds = array<i64: 98>}, {transform_indices = @transform_2, window_bounds = array<i64: 1, 16, 16>}]} {
    %c0 = arith.constant 0 : index
    %c0_0 = arith.constant 0 : index
    %c0_1 = arith.constant 0 : index
    %c0_2 = arith.constant 0 : index
    %0 = vector.load %arg1[%c0, %c0_0, %c0_1, %c0_2] : memref<1x4x16x16xf32, #tpu.memory_space<vmem>>, vector<1x1x16x16xf32>
    %1 = vector.shape_cast %0 : vector<1x1x16x16xf32> to vector<16x16xf32>
    %c0_3 = arith.constant 0 : index
    %c1 = arith.constant 1 : index
    %c0_4 = arith.constant 0 : index
    %c0_5 = arith.constant 0 : index
    %2 = vector.load %arg1[%c0_3, %c1, %c0_4, %c0_5] : memref<1x4x16x16xf32, #tpu.memory_space<vmem>>, vector<1x1x16x16xf32>
    %3 = vector.shape_cast %2 : vector<1x1x16x16xf32> to vector<16x16xf32>
    %4 = arith.addf %1, %3 : vector<16x16xf32>
    %5 = arith.maximumf %1, %3 : vector<16x16xf32>
    %c0_6 = arith.constant 0 : index
    %c2 = arith.constant 2 : index
    %c0_7 = arith.constant 0 : index
    %c0_8 = arith.constant 0 : index
    %6 = vector.load %arg1[%c0_6, %c2, %c0_7, %c0_8] : memref<1x4x16x16xf32, #tpu.memory_space<vmem>>, vector<1x1x16x16xf32>
    %7 = vector.shape_cast %6 : vector<1x1x16x16xf32> to vector<16x16xf32>
    %8 = arith.addf %4, %7 : vector<16x16xf32>
    %9 = arith.maximumf %5, %7 : vector<16x16xf32>
    %c0_9 = arith.constant 0 : index
    %c3 = arith.constant 3 : index
    %c0_10 = arith.constant 0 : index
    %c0_11 = arith.constant 0 : index
    %10 = vector.load %arg1[%c0_9, %c3, %c0_10, %c0_11] : memref<1x4x16x16xf32, #tpu.memory_space<vmem>>, vector<1x1x16x16xf32>
    %11 = vector.shape_cast %10 : vector<1x1x16x16xf32> to vector<16x16xf32>
    %12 = arith.addf %8, %11 : vector<16x16xf32>
    %13 = arith.maximumf %9, %11 : vector<16x16xf32>
    %cst = arith.constant 2.500000e-01 : f32
    %14 = vector.broadcast %cst : f32 to vector<16x16xf32>
    %15 = arith.mulf %12, %14 : vector<16x16xf32>
    %cst_12 = arith.constant 0.000000e+00 : f32
    %16 = vector.broadcast %cst_12 : f32 to vector<2x22x22xf32>
    %c0_13 = arith.constant 0 : index
    %c0_14 = arith.constant 0 : index
    %c0_15 = arith.constant 0 : index
    %17 = vector.load %arg4[%c0_13, %c0_14, %c0_15] : memref<2x22x22xf32, #tpu.memory_space<vmem>>, vector<2x22x22xf32>
    tpu.vector_store %arg4[%c0_13, %c0_14, %c0_15], %16 {strides = array<i32>} : memref<2x22x22xf32, #tpu.memory_space<vmem>>, vector<2x22x22xf32>,
    %c0_16 = arith.constant 0 : index
    %c3_17 = arith.constant 3 : index
    %c3_18 = arith.constant 3 : index
    %18 = vector.load %arg4[%c0_16, %c3_17, %c3_18] : memref<2x22x22xf32, #tpu.memory_space<vmem>>, vector<1x16x16xf32>
    %19 = vector.shape_cast %18 : vector<1x16x16xf32> to vector<16x16xf32>
    %20 = vector.shape_cast %15 : vector<16x16xf32> to vector<1x16x16xf32>
    tpu.vector_store %arg4[%c0_16, %c3_17, %c3_18], %20 {strides = array<i32>} : memref<2x22x22xf32, #tpu.memory_space<vmem>>, vector<1x16x16xf32>,
    %c1_19 = arith.constant 1 : index
    %c3_20 = arith.constant 3 : index
    %c3_21 = arith.constant 3 : index
    %21 = vector.load %arg4[%c1_19, %c3_20, %c3_21] : memref<2x22x22xf32, #tpu.memory_space<vmem>>, vector<1x16x16xf32>
    %22 = vector.shape_cast %21 : vector<1x16x16xf32> to vector<16x16xf32>
    %23 = vector.shape_cast %13 : vector<16x16xf32> to vector<1x16x16xf32>
    tpu.vector_store %arg4[%c1_19, %c3_20, %c3_21], %23 {strides = array<i32>} : memref<2x22x22xf32, #tpu.memory_space<vmem>>, vector<1x16x16xf32>,
    %c0_22 = arith.constant 0 : index
    %c0_23 = arith.constant 0 : index
    %c0_24 = arith.constant 0 : index
    %24 = vector.load %arg4[%c0_22, %c0_23, %c0_24] : memref<2x22x22xf32, #tpu.memory_space<vmem>>, vector<2x22x22xf32>
    %cst_25 = arith.constant 0.000000e+00 : f32
    %25 = vector.broadcast %cst_25 : f32 to vector<16x16xf32>
    %c0_26 = arith.constant 0 : index
    %26 = memref.load %arg2[%c0_26] : memref<98xf32, #tpu.memory_space<smem>>
    %27 = vector.extract_strided_slice %24 {offsets = [0, 0, 0], sizes = [1, 16, 16], strides = [1, 1, 1]} : vector<2x22x22xf32> to vector<1x16x16xf32>
    %28 = vector.shape_cast %27 : vector<1x16x16xf32> to vector<16x16xf32>
    %29 = vector.broadcast %26 : f32 to vector<16x16xf32>
    %30 = arith.mulf %29, %28 : vector<16x16xf32>
    %31 = arith.addf %25, %30 : vector<16x16xf32>
    %c49 = arith.constant 49 : index
    %32 = memref.load %arg2[%c49] : memref<98xf32, #tpu.memory_space<smem>>
    %33 = vector.extract_strided_slice %24 {offsets = [1, 0, 0], sizes = [1, 16, 16], strides = [1, 1, 1]} : vector<2x22x22xf32> to vector<1x16x16xf32>
    %34 = vector.shape_cast %33 : vector<1x16x16xf32> to vector<16x16xf32>
    %35 = vector.broadcast %32 : f32 to vector<16x16xf32>
    %36 = arith.mulf %35, %34 : vector<16x16xf32>
    %37 = arith.addf %31, %36 : vector<16x16xf32>
    %c1_27 = arith.constant 1 : index
    %38 = memref.load %arg2[%c1_27] : memref<98xf32, #tpu.memory_space<smem>>
    %39 = vector.extract_strided_slice %24 {offsets = [0, 0, 1], sizes = [1, 16, 16], strides = [1, 1, 1]} : vector<2x22x22xf32> to vector<1x16x16xf32>
    %40 = vector.shape_cast %39 : vector<1x16x16xf32> to vector<16x16xf32>
    %41 = vector.broadcast %38 : f32 to vector<16x16xf32>
    %42 = arith.mulf %41, %40 : vector<16x16xf32>
    %43 = arith.addf %37, %42 : vector<16x16xf32>
    %c50 = arith.constant 50 : index
    %44 = memref.load %arg2[%c50] : memref<98xf32, #tpu.memory_space<smem>>
    %45 = vector.extract_strided_slice %24 {offsets = [1, 0, 1], sizes = [1, 16, 16], strides = [1, 1, 1]} : vector<2x22x22xf32> to vector<1x16x16xf32>
    %46 = vector.shape_cast %45 : vector<1x16x16xf32> to vector<16x16xf32>
    %47 = vector.broadcast %44 : f32 to vector<16x16xf32>
    %48 = arith.mulf %47, %46 : vector<16x16xf32>
    %49 = arith.addf %43, %48 : vector<16x16xf32>
    %c2_28 = arith.constant 2 : index
    %50 = memref.load %arg2[%c2_28] : memref<98xf32, #tpu.memory_space<smem>>
    %51 = vector.extract_strided_slice %24 {offsets = [0, 0, 2], sizes = [1, 16, 16], strides = [1, 1, 1]} : vector<2x22x22xf32> to vector<1x16x16xf32>
    %52 = vector.shape_cast %51 : vector<1x16x16xf32> to vector<16x16xf32>
    %53 = vector.broadcast %50 : f32 to vector<16x16xf32>
    %54 = arith.mulf %53, %52 : vector<16x16xf32>
    %55 = arith.addf %49, %54 : vector<16x16xf32>
    %c51 = arith.constant 51 : index
    %56 = memref.load %arg2[%c51] : memref<98xf32, #tpu.memory_space<smem>>
    %57 = vector.extract_strided_slice %24 {offsets = [1, 0, 2], sizes = [1, 16, 16], strides = [1, 1, 1]} : vector<2x22x22xf32> to vector<1x16x16xf32>
    %58 = vector.shape_cast %57 : vector<1x16x16xf32> to vector<16x16xf32>
    %59 = vector.broadcast %56 : f32 to vector<16x16xf32>
    %60 = arith.mulf %59, %58 : vector<16x16xf32>
    %61 = arith.addf %55, %60 : vector<16x16xf32>
    %c3_29 = arith.constant 3 : index
    %62 = memref.load %arg2[%c3_29] : memref<98xf32, #tpu.memory_space<smem>>
    %63 = vector.extract_strided_slice %24 {offsets = [0, 0, 3], sizes = [1, 16, 16], strides = [1, 1, 1]} : vector<2x22x22xf32> to vector<1x16x16xf32>
    %64 = vector.shape_cast %63 : vector<1x16x16xf32> to vector<16x16xf32>
    %65 = vector.broadcast %62 : f32 to vector<16x16xf32>
    %66 = arith.mulf %65, %64 : vector<16x16xf32>
    %67 = arith.addf %61, %66 : vector<16x16xf32>
    %c52 = arith.constant 52 : index
    %68 = memref.load %arg2[%c52] : memref<98xf32, #tpu.memory_space<smem>>
    %69 = vector.extract_strided_slice %24 {offsets = [1, 0, 3], sizes = [1, 16, 16], strides = [1, 1, 1]} : vector<2x22x22xf32> to vector<1x16x16xf32>
    %70 = vector.shape_cast %69 : vector<1x16x16xf32> to vector<16x16xf32>
    %71 = vector.broadcast %68 : f32 to vector<16x16xf32>
    %72 = arith.mulf %71, %70 : vector<16x16xf32>
    %73 = arith.addf %67, %72 : vector<16x16xf32>
    %c4 = arith.constant 4 : index
    %74 = memref.load %arg2[%c4] : memref<98xf32, #tpu.memory_space<smem>>
    %75 = vector.extract_strided_slice %24 {offsets = [0, 0, 4], sizes = [1, 16, 16], strides = [1, 1, 1]} : vector<2x22x22xf32> to vector<1x16x16xf32>
    %76 = vector.shape_cast %75 : vector<1x16x16xf32> to vector<16x16xf32>
    %77 = vector.broadcast %74 : f32 to vector<16x16xf32>
    %78 = arith.mulf %77, %76 : vector<16x16xf32>
    %79 = arith.addf %73, %78 : vector<16x16xf32>
    %c53 = arith.constant 53 : index
    %80 = memref.load %arg2[%c53] : memref<98xf32, #tpu.memory_space<smem>>
    %81 = vector.extract_strided_slice %24 {offsets = [1, 0, 4], sizes = [1, 16, 16], strides = [1, 1, 1]} : vector<2x22x22xf32> to vector<1x16x16xf32>
    %82 = vector.shape_cast %81 : vector<1x16x16xf32> to vector<16x16xf32>
    %83 = vector.broadcast %80 : f32 to vector<16x16xf32>
    %84 = arith.mulf %83, %82 : vector<16x16xf32>
    %85 = arith.addf %79, %84 : vector<16x16xf32>
    %c5 = arith.constant 5 : index
    %86 = memref.load %arg2[%c5] : memref<98xf32, #tpu.memory_space<smem>>
    %87 = vector.extract_strided_slice %24 {offsets = [0, 0, 5], sizes = [1, 16, 16], strides = [1, 1, 1]} : vector<2x22x22xf32> to vector<1x16x16xf32>
    %88 = vector.shape_cast %87 : vector<1x16x16xf32> to vector<16x16xf32>
    %89 = vector.broadcast %86 : f32 to vector<16x16xf32>
    %90 = arith.mulf %89, %88 : vector<16x16xf32>
    %91 = arith.addf %85, %90 : vector<16x16xf32>
    %c54 = arith.constant 54 : index
    %92 = memref.load %arg2[%c54] : memref<98xf32, #tpu.memory_space<smem>>
    %93 = vector.extract_strided_slice %24 {offsets = [1, 0, 5], sizes = [1, 16, 16], strides = [1, 1, 1]} : vector<2x22x22xf32> to vector<1x16x16xf32>
    %94 = vector.shape_cast %93 : vector<1x16x16xf32> to vector<16x16xf32>
    %95 = vector.broadcast %92 : f32 to vector<16x16xf32>
    %96 = arith.mulf %95, %94 : vector<16x16xf32>
    %97 = arith.addf %91, %96 : vector<16x16xf32>
    %c6 = arith.constant 6 : index
    %98 = memref.load %arg2[%c6] : memref<98xf32, #tpu.memory_space<smem>>
    %99 = vector.extract_strided_slice %24 {offsets = [0, 0, 6], sizes = [1, 16, 16], strides = [1, 1, 1]} : vector<2x22x22xf32> to vector<1x16x16xf32>
    %100 = vector.shape_cast %99 : vector<1x16x16xf32> to vector<16x16xf32>
    %101 = vector.broadcast %98 : f32 to vector<16x16xf32>
    %102 = arith.mulf %101, %100 : vector<16x16xf32>
    %103 = arith.addf %97, %102 : vector<16x16xf32>
    %c55 = arith.constant 55 : index
    %104 = memref.load %arg2[%c55] : memref<98xf32, #tpu.memory_space<smem>>
    %105 = vector.extract_strided_slice %24 {offsets = [1, 0, 6], sizes = [1, 16, 16], strides = [1, 1, 1]} : vector<2x22x22xf32> to vector<1x16x16xf32>
    %106 = vector.shape_cast %105 : vector<1x16x16xf32> to vector<16x16xf32>
    %107 = vector.broadcast %104 : f32 to vector<16x16xf32>
    %108 = arith.mulf %107, %106 : vector<16x16xf32>
    %109 = arith.addf %103, %108 : vector<16x16xf32>
    %c7 = arith.constant 7 : index
    %110 = memref.load %arg2[%c7] : memref<98xf32, #tpu.memory_space<smem>>
    %111 = vector.extract_strided_slice %24 {offsets = [0, 1, 0], sizes = [1, 16, 16], strides = [1, 1, 1]} : vector<2x22x22xf32> to vector<1x16x16xf32>
    %112 = vector.shape_cast %111 : vector<1x16x16xf32> to vector<16x16xf32>
    %113 = vector.broadcast %110 : f32 to vector<16x16xf32>
    %114 = arith.mulf %113, %112 : vector<16x16xf32>
    %115 = arith.addf %109, %114 : vector<16x16xf32>
    %c56 = arith.constant 56 : index
    %116 = memref.load %arg2[%c56] : memref<98xf32, #tpu.memory_space<smem>>
    %117 = vector.extract_strided_slice %24 {offsets = [1, 1, 0], sizes = [1, 16, 16], strides = [1, 1, 1]} : vector<2x22x22xf32> to vector<1x16x16xf32>
    %118 = vector.shape_cast %117 : vector<1x16x16xf32> to vector<16x16xf32>
    %119 = vector.broadcast %116 : f32 to vector<16x16xf32>
    %120 = arith.mulf %119, %118 : vector<16x16xf32>
    %121 = arith.addf %115, %120 : vector<16x16xf32>
    %c8 = arith.constant 8 : index
    %122 = memref.load %arg2[%c8] : memref<98xf32, #tpu.memory_space<smem>>
    %123 = vector.extract_strided_slice %24 {offsets = [0, 1, 1], sizes = [1, 16, 16], strides = [1, 1, 1]} : vector<2x22x22xf32> to vector<1x16x16xf32>
    %124 = vector.shape_cast %123 : vector<1x16x16xf32> to vector<16x16xf32>
    %125 = vector.broadcast %122 : f32 to vector<16x16xf32>
    %126 = arith.mulf %125, %124 : vector<16x16xf32>
    %127 = arith.addf %121, %126 : vector<16x16xf32>
    %c57 = arith.constant 57 : index
    %128 = memref.load %arg2[%c57] : memref<98xf32, #tpu.memory_space<smem>>
    %129 = vector.extract_strided_slice %24 {offsets = [1, 1, 1], sizes = [1, 16, 16], strides = [1, 1, 1]} : vector<2x22x22xf32> to vector<1x16x16xf32>
    %130 = vector.shape_cast %129 : vector<1x16x16xf32> to vector<16x16xf32>
    %131 = vector.broadcast %128 : f32 to vector<16x16xf32>
    %132 = arith.mulf %131, %130 : vector<16x16xf32>
    %133 = arith.addf %127, %132 : vector<16x16xf32>
    %c9 = arith.constant 9 : index
    %134 = memref.load %arg2[%c9] : memref<98xf32, #tpu.memory_space<smem>>
    %135 = vector.extract_strided_slice %24 {offsets = [0, 1, 2], sizes = [1, 16, 16], strides = [1, 1, 1]} : vector<2x22x22xf32> to vector<1x16x16xf32>
    %136 = vector.shape_cast %135 : vector<1x16x16xf32> to vector<16x16xf32>
    %137 = vector.broadcast %134 : f32 to vector<16x16xf32>
    %138 = arith.mulf %137, %136 : vector<16x16xf32>
    %139 = arith.addf %133, %138 : vector<16x16xf32>
    %c58 = arith.constant 58 : index
    %140 = memref.load %arg2[%c58] : memref<98xf32, #tpu.memory_space<smem>>
    %141 = vector.extract_strided_slice %24 {offsets = [1, 1, 2], sizes = [1, 16, 16], strides = [1, 1, 1]} : vector<2x22x22xf32> to vector<1x16x16xf32>
    %142 = vector.shape_cast %141 : vector<1x16x16xf32> to vector<16x16xf32>
    %143 = vector.broadcast %140 : f32 to vector<16x16xf32>
    %144 = arith.mulf %143, %142 : vector<16x16xf32>
    %145 = arith.addf %139, %144 : vector<16x16xf32>
    %c10 = arith.constant 10 : index
    %146 = memref.load %arg2[%c10] : memref<98xf32, #tpu.memory_space<smem>>
    %147 = vector.extract_strided_slice %24 {offsets = [0, 1, 3], sizes = [1, 16, 16], strides = [1, 1, 1]} : vector<2x22x22xf32> to vector<1x16x16xf32>
    %148 = vector.shape_cast %147 : vector<1x16x16xf32> to vector<16x16xf32>
    %149 = vector.broadcast %146 : f32 to vector<16x16xf32>
    %150 = arith.mulf %149, %148 : vector<16x16xf32>
    %151 = arith.addf %145, %150 : vector<16x16xf32>
    %c59 = arith.constant 59 : index
    %152 = memref.load %arg2[%c59] : memref<98xf32, #tpu.memory_space<smem>>
    %153 = vector.extract_strided_slice %24 {offsets = [1, 1, 3], sizes = [1, 16, 16], strides = [1, 1, 1]} : vector<2x22x22xf32> to vector<1x16x16xf32>
    %154 = vector.shape_cast %153 : vector<1x16x16xf32> to vector<16x16xf32>
    %155 = vector.broadcast %152 : f32 to vector<16x16xf32>
    %156 = arith.mulf %155, %154 : vector<16x16xf32>
    %157 = arith.addf %151, %156 : vector<16x16xf32>
    %c11 = arith.constant 11 : index
    %158 = memref.load %arg2[%c11] : memref<98xf32, #tpu.memory_space<smem>>
    %159 = vector.extract_strided_slice %24 {offsets = [0, 1, 4], sizes = [1, 16, 16], strides = [1, 1, 1]} : vector<2x22x22xf32> to vector<1x16x16xf32>
    %160 = vector.shape_cast %159 : vector<1x16x16xf32> to vector<16x16xf32>
    %161 = vector.broadcast %158 : f32 to vector<16x16xf32>
    %162 = arith.mulf %161, %160 : vector<16x16xf32>
    %163 = arith.addf %157, %162 : vector<16x16xf32>
    %c60 = arith.constant 60 : index
    %164 = memref.load %arg2[%c60] : memref<98xf32, #tpu.memory_space<smem>>
    %165 = vector.extract_strided_slice %24 {offsets = [1, 1, 4], sizes = [1, 16, 16], strides = [1, 1, 1]} : vector<2x22x22xf32> to vector<1x16x16xf32>
    %166 = vector.shape_cast %165 : vector<1x16x16xf32> to vector<16x16xf32>
    %167 = vector.broadcast %164 : f32 to vector<16x16xf32>
    %168 = arith.mulf %167, %166 : vector<16x16xf32>
    %169 = arith.addf %163, %168 : vector<16x16xf32>
    %c12 = arith.constant 12 : index
    %170 = memref.load %arg2[%c12] : memref<98xf32, #tpu.memory_space<smem>>
    %171 = vector.extract_strided_slice %24 {offsets = [0, 1, 5], sizes = [1, 16, 16], strides = [1, 1, 1]} : vector<2x22x22xf32> to vector<1x16x16xf32>
    %172 = vector.shape_cast %171 : vector<1x16x16xf32> to vector<16x16xf32>
    %173 = vector.broadcast %170 : f32 to vector<16x16xf32>
    %174 = arith.mulf %173, %172 : vector<16x16xf32>
    %175 = arith.addf %169, %174 : vector<16x16xf32>
    %c61 = arith.constant 61 : index
    %176 = memref.load %arg2[%c61] : memref<98xf32, #tpu.memory_space<smem>>
    %177 = vector.extract_strided_slice %24 {offsets = [1, 1, 5], sizes = [1, 16, 16], strides = [1, 1, 1]} : vector<2x22x22xf32> to vector<1x16x16xf32>
    %178 = vector.shape_cast %177 : vector<1x16x16xf32> to vector<16x16xf32>
    %179 = vector.broadcast %176 : f32 to vector<16x16xf32>
    %180 = arith.mulf %179, %178 : vector<16x16xf32>
    %181 = arith.addf %175, %180 : vector<16x16xf32>
    %c13 = arith.constant 13 : index
    %182 = memref.load %arg2[%c13] : memref<98xf32, #tpu.memory_space<smem>>
    %183 = vector.extract_strided_slice %24 {offsets = [0, 1, 6], sizes = [1, 16, 16], strides = [1, 1, 1]} : vector<2x22x22xf32> to vector<1x16x16xf32>
    %184 = vector.shape_cast %183 : vector<1x16x16xf32> to vector<16x16xf32>
    %185 = vector.broadcast %182 : f32 to vector<16x16xf32>
    %186 = arith.mulf %185, %184 : vector<16x16xf32>
    %187 = arith.addf %181, %186 : vector<16x16xf32>
    %c62 = arith.constant 62 : index
    %188 = memref.load %arg2[%c62] : memref<98xf32, #tpu.memory_space<smem>>
    %189 = vector.extract_strided_slice %24 {offsets = [1, 1, 6], sizes = [1, 16, 16], strides = [1, 1, 1]} : vector<2x22x22xf32> to vector<1x16x16xf32>
    %190 = vector.shape_cast %189 : vector<1x16x16xf32> to vector<16x16xf32>
    %191 = vector.broadcast %188 : f32 to vector<16x16xf32>
    %192 = arith.mulf %191, %190 : vector<16x16xf32>
    %193 = arith.addf %187, %192 : vector<16x16xf32>
    %c14 = arith.constant 14 : index
    %194 = memref.load %arg2[%c14] : memref<98xf32, #tpu.memory_space<smem>>
    %195 = vector.extract_strided_slice %24 {offsets = [0, 2, 0], sizes = [1, 16, 16], strides = [1, 1, 1]} : vector<2x22x22xf32> to vector<1x16x16xf32>
    %196 = vector.shape_cast %195 : vector<1x16x16xf32> to vector<16x16xf32>
    %197 = vector.broadcast %194 : f32 to vector<16x16xf32>
    %198 = arith.mulf %197, %196 : vector<16x16xf32>
    %199 = arith.addf %193, %198 : vector<16x16xf32>
    %c63 = arith.constant 63 : index
    %200 = memref.load %arg2[%c63] : memref<98xf32, #tpu.memory_space<smem>>
    %201 = vector.extract_strided_slice %24 {offsets = [1, 2, 0], sizes = [1, 16, 16], strides = [1, 1, 1]} : vector<2x22x22xf32> to vector<1x16x16xf32>
    %202 = vector.shape_cast %201 : vector<1x16x16xf32> to vector<16x16xf32>
    %203 = vector.broadcast %200 : f32 to vector<16x16xf32>
    %204 = arith.mulf %203, %202 : vector<16x16xf32>
    %205 = arith.addf %199, %204 : vector<16x16xf32>
    %c15 = arith.constant 15 : index
    %206 = memref.load %arg2[%c15] : memref<98xf32, #tpu.memory_space<smem>>
    %207 = vector.extract_strided_slice %24 {offsets = [0, 2, 1], sizes = [1, 16, 16], strides = [1, 1, 1]} : vector<2x22x22xf32> to vector<1x16x16xf32>
    %208 = vector.shape_cast %207 : vector<1x16x16xf32> to vector<16x16xf32>
    %209 = vector.broadcast %206 : f32 to vector<16x16xf32>
    %210 = arith.mulf %209, %208 : vector<16x16xf32>
    %211 = arith.addf %205, %210 : vector<16x16xf32>
    %c64 = arith.constant 64 : index
    %212 = memref.load %arg2[%c64] : memref<98xf32, #tpu.memory_space<smem>>
    %213 = vector.extract_strided_slice %24 {offsets = [1, 2, 1], sizes = [1, 16, 16], strides = [1, 1, 1]} : vector<2x22x22xf32> to vector<1x16x16xf32>
    %214 = vector.shape_cast %213 : vector<1x16x16xf32> to vector<16x16xf32>
    %215 = vector.broadcast %212 : f32 to vector<16x16xf32>
    %216 = arith.mulf %215, %214 : vector<16x16xf32>
    %217 = arith.addf %211, %216 : vector<16x16xf32>
    %c16 = arith.constant 16 : index
    %218 = memref.load %arg2[%c16] : memref<98xf32, #tpu.memory_space<smem>>
    %219 = vector.extract_strided_slice %24 {offsets = [0, 2, 2], sizes = [1, 16, 16], strides = [1, 1, 1]} : vector<2x22x22xf32> to vector<1x16x16xf32>
    %220 = vector.shape_cast %219 : vector<1x16x16xf32> to vector<16x16xf32>
    %221 = vector.broadcast %218 : f32 to vector<16x16xf32>
    %222 = arith.mulf %221, %220 : vector<16x16xf32>
    %223 = arith.addf %217, %222 : vector<16x16xf32>
    %c65 = arith.constant 65 : index
    %224 = memref.load %arg2[%c65] : memref<98xf32, #tpu.memory_space<smem>>
    %225 = vector.extract_strided_slice %24 {offsets = [1, 2, 2], sizes = [1, 16, 16], strides = [1, 1, 1]} : vector<2x22x22xf32> to vector<1x16x16xf32>
    %226 = vector.shape_cast %225 : vector<1x16x16xf32> to vector<16x16xf32>
    %227 = vector.broadcast %224 : f32 to vector<16x16xf32>
    %228 = arith.mulf %227, %226 : vector<16x16xf32>
    %229 = arith.addf %223, %228 : vector<16x16xf32>
    %c17 = arith.constant 17 : index
    %230 = memref.load %arg2[%c17] : memref<98xf32, #tpu.memory_space<smem>>
    %231 = vector.extract_strided_slice %24 {offsets = [0, 2, 3], sizes = [1, 16, 16], strides = [1, 1, 1]} : vector<2x22x22xf32> to vector<1x16x16xf32>
    %232 = vector.shape_cast %231 : vector<1x16x16xf32> to vector<16x16xf32>
    %233 = vector.broadcast %230 : f32 to vector<16x16xf32>
    %234 = arith.mulf %233, %232 : vector<16x16xf32>
    %235 = arith.addf %229, %234 : vector<16x16xf32>
    %c66 = arith.constant 66 : index
    %236 = memref.load %arg2[%c66] : memref<98xf32, #tpu.memory_space<smem>>
    %237 = vector.extract_strided_slice %24 {offsets = [1, 2, 3], sizes = [1, 16, 16], strides = [1, 1, 1]} : vector<2x22x22xf32> to vector<1x16x16xf32>
    %238 = vector.shape_cast %237 : vector<1x16x16xf32> to vector<16x16xf32>
    %239 = vector.broadcast %236 : f32 to vector<16x16xf32>
    %240 = arith.mulf %239, %238 : vector<16x16xf32>
    %241 = arith.addf %235, %240 : vector<16x16xf32>
    %c18 = arith.constant 18 : index
    %242 = memref.load %arg2[%c18] : memref<98xf32, #tpu.memory_space<smem>>
    %243 = vector.extract_strided_slice %24 {offsets = [0, 2, 4], sizes = [1, 16, 16], strides = [1, 1, 1]} : vector<2x22x22xf32> to vector<1x16x16xf32>
    %244 = vector.shape_cast %243 : vector<1x16x16xf32> to vector<16x16xf32>
    %245 = vector.broadcast %242 : f32 to vector<16x16xf32>
    %246 = arith.mulf %245, %244 : vector<16x16xf32>
    %247 = arith.addf %241, %246 : vector<16x16xf32>
    %c67 = arith.constant 67 : index
    %248 = memref.load %arg2[%c67] : memref<98xf32, #tpu.memory_space<smem>>
    %249 = vector.extract_strided_slice %24 {offsets = [1, 2, 4], sizes = [1, 16, 16], strides = [1, 1, 1]} : vector<2x22x22xf32> to vector<1x16x16xf32>
    %250 = vector.shape_cast %249 : vector<1x16x16xf32> to vector<16x16xf32>
    %251 = vector.broadcast %248 : f32 to vector<16x16xf32>
    %252 = arith.mulf %251, %250 : vector<16x16xf32>
    %253 = arith.addf %247, %252 : vector<16x16xf32>
    %c19 = arith.constant 19 : index
    %254 = memref.load %arg2[%c19] : memref<98xf32, #tpu.memory_space<smem>>
    %255 = vector.extract_strided_slice %24 {offsets = [0, 2, 5], sizes = [1, 16, 16], strides = [1, 1, 1]} : vector<2x22x22xf32> to vector<1x16x16xf32>
    %256 = vector.shape_cast %255 : vector<1x16x16xf32> to vector<16x16xf32>
    %257 = vector.broadcast %254 : f32 to vector<16x16xf32>
    %258 = arith.mulf %257, %256 : vector<16x16xf32>
    %259 = arith.addf %253, %258 : vector<16x16xf32>
    %c68 = arith.constant 68 : index
    %260 = memref.load %arg2[%c68] : memref<98xf32, #tpu.memory_space<smem>>
    %261 = vector.extract_strided_slice %24 {offsets = [1, 2, 5], sizes = [1, 16, 16], strides = [1, 1, 1]} : vector<2x22x22xf32> to vector<1x16x16xf32>
    %262 = vector.shape_cast %261 : vector<1x16x16xf32> to vector<16x16xf32>
    %263 = vector.broadcast %260 : f32 to vector<16x16xf32>
    %264 = arith.mulf %263, %262 : vector<16x16xf32>
    %265 = arith.addf %259, %264 : vector<16x16xf32>
    %c20 = arith.constant 20 : index
    %266 = memref.load %arg2[%c20] : memref<98xf32, #tpu.memory_space<smem>>
    %267 = vector.extract_strided_slice %24 {offsets = [0, 2, 6], sizes = [1, 16, 16], strides = [1, 1, 1]} : vector<2x22x22xf32> to vector<1x16x16xf32>
    %268 = vector.shape_cast %267 : vector<1x16x16xf32> to vector<16x16xf32>
    %269 = vector.broadcast %266 : f32 to vector<16x16xf32>
    %270 = arith.mulf %269, %268 : vector<16x16xf32>
    %271 = arith.addf %265, %270 : vector<16x16xf32>
    %c69 = arith.constant 69 : index
    %272 = memref.load %arg2[%c69] : memref<98xf32, #tpu.memory_space<smem>>
    %273 = vector.extract_strided_slice %24 {offsets = [1, 2, 6], sizes = [1, 16, 16], strides = [1, 1, 1]} : vector<2x22x22xf32> to vector<1x16x16xf32>
    %274 = vector.shape_cast %273 : vector<1x16x16xf32> to vector<16x16xf32>
    %275 = vector.broadcast %272 : f32 to vector<16x16xf32>
    %276 = arith.mulf %275, %274 : vector<16x16xf32>
    %277 = arith.addf %271, %276 : vector<16x16xf32>
    %c21 = arith.constant 21 : index
    %278 = memref.load %arg2[%c21] : memref<98xf32, #tpu.memory_space<smem>>
    %279 = vector.extract_strided_slice %24 {offsets = [0, 3, 0], sizes = [1, 16, 16], strides = [1, 1, 1]} : vector<2x22x22xf32> to vector<1x16x16xf32>
    %280 = vector.shape_cast %279 : vector<1x16x16xf32> to vector<16x16xf32>
    %281 = vector.broadcast %278 : f32 to vector<16x16xf32>
    %282 = arith.mulf %281, %280 : vector<16x16xf32>
    %283 = arith.addf %277, %282 : vector<16x16xf32>
    %c70 = arith.constant 70 : index
    %284 = memref.load %arg2[%c70] : memref<98xf32, #tpu.memory_space<smem>>
    %285 = vector.extract_strided_slice %24 {offsets = [1, 3, 0], sizes = [1, 16, 16], strides = [1, 1, 1]} : vector<2x22x22xf32> to vector<1x16x16xf32>
    %286 = vector.shape_cast %285 : vector<1x16x16xf32> to vector<16x16xf32>
    %287 = vector.broadcast %284 : f32 to vector<16x16xf32>
    %288 = arith.mulf %287, %286 : vector<16x16xf32>
    %289 = arith.addf %283, %288 : vector<16x16xf32>
    %c22 = arith.constant 22 : index
    %290 = memref.load %arg2[%c22] : memref<98xf32, #tpu.memory_space<smem>>
    %291 = vector.extract_strided_slice %24 {offsets = [0, 3, 1], sizes = [1, 16, 16], strides = [1, 1, 1]} : vector<2x22x22xf32> to vector<1x16x16xf32>
    %292 = vector.shape_cast %291 : vector<1x16x16xf32> to vector<16x16xf32>
    %293 = vector.broadcast %290 : f32 to vector<16x16xf32>
    %294 = arith.mulf %293, %292 : vector<16x16xf32>
    %295 = arith.addf %289, %294 : vector<16x16xf32>
    %c71 = arith.constant 71 : index
    %296 = memref.load %arg2[%c71] : memref<98xf32, #tpu.memory_space<smem>>
    %297 = vector.extract_strided_slice %24 {offsets = [1, 3, 1], sizes = [1, 16, 16], strides = [1, 1, 1]} : vector<2x22x22xf32> to vector<1x16x16xf32>
    %298 = vector.shape_cast %297 : vector<1x16x16xf32> to vector<16x16xf32>
    %299 = vector.broadcast %296 : f32 to vector<16x16xf32>
    %300 = arith.mulf %299, %298 : vector<16x16xf32>
    %301 = arith.addf %295, %300 : vector<16x16xf32>
    %c23 = arith.constant 23 : index
    %302 = memref.load %arg2[%c23] : memref<98xf32, #tpu.memory_space<smem>>
    %303 = vector.extract_strided_slice %24 {offsets = [0, 3, 2], sizes = [1, 16, 16], strides = [1, 1, 1]} : vector<2x22x22xf32> to vector<1x16x16xf32>
    %304 = vector.shape_cast %303 : vector<1x16x16xf32> to vector<16x16xf32>
    %305 = vector.broadcast %302 : f32 to vector<16x16xf32>
    %306 = arith.mulf %305, %304 : vector<16x16xf32>
    %307 = arith.addf %301, %306 : vector<16x16xf32>
    %c72 = arith.constant 72 : index
    %308 = memref.load %arg2[%c72] : memref<98xf32, #tpu.memory_space<smem>>
    %309 = vector.extract_strided_slice %24 {offsets = [1, 3, 2], sizes = [1, 16, 16], strides = [1, 1, 1]} : vector<2x22x22xf32> to vector<1x16x16xf32>
    %310 = vector.shape_cast %309 : vector<1x16x16xf32> to vector<16x16xf32>
    %311 = vector.broadcast %308 : f32 to vector<16x16xf32>
    %312 = arith.mulf %311, %310 : vector<16x16xf32>
    %313 = arith.addf %307, %312 : vector<16x16xf32>
    %c24 = arith.constant 24 : index
    %314 = memref.load %arg2[%c24] : memref<98xf32, #tpu.memory_space<smem>>
    %315 = vector.extract_strided_slice %24 {offsets = [0, 3, 3], sizes = [1, 16, 16], strides = [1, 1, 1]} : vector<2x22x22xf32> to vector<1x16x16xf32>
    %316 = vector.shape_cast %315 : vector<1x16x16xf32> to vector<16x16xf32>
    %317 = vector.broadcast %314 : f32 to vector<16x16xf32>
    %318 = arith.mulf %317, %316 : vector<16x16xf32>
    %319 = arith.addf %313, %318 : vector<16x16xf32>
    %c73 = arith.constant 73 : index
    %320 = memref.load %arg2[%c73] : memref<98xf32, #tpu.memory_space<smem>>
    %321 = vector.extract_strided_slice %24 {offsets = [1, 3, 3], sizes = [1, 16, 16], strides = [1, 1, 1]} : vector<2x22x22xf32> to vector<1x16x16xf32>
    %322 = vector.shape_cast %321 : vector<1x16x16xf32> to vector<16x16xf32>
    %323 = vector.broadcast %320 : f32 to vector<16x16xf32>
    %324 = arith.mulf %323, %322 : vector<16x16xf32>
    %325 = arith.addf %319, %324 : vector<16x16xf32>
    %c25 = arith.constant 25 : index
    %326 = memref.load %arg2[%c25] : memref<98xf32, #tpu.memory_space<smem>>
    %327 = vector.extract_strided_slice %24 {offsets = [0, 3, 4], sizes = [1, 16, 16], strides = [1, 1, 1]} : vector<2x22x22xf32> to vector<1x16x16xf32>
    %328 = vector.shape_cast %327 : vector<1x16x16xf32> to vector<16x16xf32>
    %329 = vector.broadcast %326 : f32 to vector<16x16xf32>
    %330 = arith.mulf %329, %328 : vector<16x16xf32>
    %331 = arith.addf %325, %330 : vector<16x16xf32>
    %c74 = arith.constant 74 : index
    %332 = memref.load %arg2[%c74] : memref<98xf32, #tpu.memory_space<smem>>
    %333 = vector.extract_strided_slice %24 {offsets = [1, 3, 4], sizes = [1, 16, 16], strides = [1, 1, 1]} : vector<2x22x22xf32> to vector<1x16x16xf32>
    %334 = vector.shape_cast %333 : vector<1x16x16xf32> to vector<16x16xf32>
    %335 = vector.broadcast %332 : f32 to vector<16x16xf32>
    %336 = arith.mulf %335, %334 : vector<16x16xf32>
    %337 = arith.addf %331, %336 : vector<16x16xf32>
    %c26 = arith.constant 26 : index
    %338 = memref.load %arg2[%c26] : memref<98xf32, #tpu.memory_space<smem>>
    %339 = vector.extract_strided_slice %24 {offsets = [0, 3, 5], sizes = [1, 16, 16], strides = [1, 1, 1]} : vector<2x22x22xf32> to vector<1x16x16xf32>
    %340 = vector.shape_cast %339 : vector<1x16x16xf32> to vector<16x16xf32>
    %341 = vector.broadcast %338 : f32 to vector<16x16xf32>
    %342 = arith.mulf %341, %340 : vector<16x16xf32>
    %343 = arith.addf %337, %342 : vector<16x16xf32>
    %c75 = arith.constant 75 : index
    %344 = memref.load %arg2[%c75] : memref<98xf32, #tpu.memory_space<smem>>
    %345 = vector.extract_strided_slice %24 {offsets = [1, 3, 5], sizes = [1, 16, 16], strides = [1, 1, 1]} : vector<2x22x22xf32> to vector<1x16x16xf32>
    %346 = vector.shape_cast %345 : vector<1x16x16xf32> to vector<16x16xf32>
    %347 = vector.broadcast %344 : f32 to vector<16x16xf32>
    %348 = arith.mulf %347, %346 : vector<16x16xf32>
    %349 = arith.addf %343, %348 : vector<16x16xf32>
    %c27 = arith.constant 27 : index
    %350 = memref.load %arg2[%c27] : memref<98xf32, #tpu.memory_space<smem>>
    %351 = vector.extract_strided_slice %24 {offsets = [0, 3, 6], sizes = [1, 16, 16], strides = [1, 1, 1]} : vector<2x22x22xf32> to vector<1x16x16xf32>
    %352 = vector.shape_cast %351 : vector<1x16x16xf32> to vector<16x16xf32>
    %353 = vector.broadcast %350 : f32 to vector<16x16xf32>
    %354 = arith.mulf %353, %352 : vector<16x16xf32>
    %355 = arith.addf %349, %354 : vector<16x16xf32>
    %c76 = arith.constant 76 : index
    %356 = memref.load %arg2[%c76] : memref<98xf32, #tpu.memory_space<smem>>
    %357 = vector.extract_strided_slice %24 {offsets = [1, 3, 6], sizes = [1, 16, 16], strides = [1, 1, 1]} : vector<2x22x22xf32> to vector<1x16x16xf32>
    %358 = vector.shape_cast %357 : vector<1x16x16xf32> to vector<16x16xf32>
    %359 = vector.broadcast %356 : f32 to vector<16x16xf32>
    %360 = arith.mulf %359, %358 : vector<16x16xf32>
    %361 = arith.addf %355, %360 : vector<16x16xf32>
    %c28 = arith.constant 28 : index
    %362 = memref.load %arg2[%c28] : memref<98xf32, #tpu.memory_space<smem>>
    %363 = vector.extract_strided_slice %24 {offsets = [0, 4, 0], sizes = [1, 16, 16], strides = [1, 1, 1]} : vector<2x22x22xf32> to vector<1x16x16xf32>
    %364 = vector.shape_cast %363 : vector<1x16x16xf32> to vector<16x16xf32>
    %365 = vector.broadcast %362 : f32 to vector<16x16xf32>
    %366 = arith.mulf %365, %364 : vector<16x16xf32>
    %367 = arith.addf %361, %366 : vector<16x16xf32>
    %c77 = arith.constant 77 : index
    %368 = memref.load %arg2[%c77] : memref<98xf32, #tpu.memory_space<smem>>
    %369 = vector.extract_strided_slice %24 {offsets = [1, 4, 0], sizes = [1, 16, 16], strides = [1, 1, 1]} : vector<2x22x22xf32> to vector<1x16x16xf32>
    %370 = vector.shape_cast %369 : vector<1x16x16xf32> to vector<16x16xf32>
    %371 = vector.broadcast %368 : f32 to vector<16x16xf32>
    %372 = arith.mulf %371, %370 : vector<16x16xf32>
    %373 = arith.addf %367, %372 : vector<16x16xf32>
    %c29 = arith.constant 29 : index
    %374 = memref.load %arg2[%c29] : memref<98xf32, #tpu.memory_space<smem>>
    %375 = vector.extract_strided_slice %24 {offsets = [0, 4, 1], sizes = [1, 16, 16], strides = [1, 1, 1]} : vector<2x22x22xf32> to vector<1x16x16xf32>
    %376 = vector.shape_cast %375 : vector<1x16x16xf32> to vector<16x16xf32>
    %377 = vector.broadcast %374 : f32 to vector<16x16xf32>
    %378 = arith.mulf %377, %376 : vector<16x16xf32>
    %379 = arith.addf %373, %378 : vector<16x16xf32>
    %c78 = arith.constant 78 : index
    %380 = memref.load %arg2[%c78] : memref<98xf32, #tpu.memory_space<smem>>
    %381 = vector.extract_strided_slice %24 {offsets = [1, 4, 1], sizes = [1, 16, 16], strides = [1, 1, 1]} : vector<2x22x22xf32> to vector<1x16x16xf32>
    %382 = vector.shape_cast %381 : vector<1x16x16xf32> to vector<16x16xf32>
    %383 = vector.broadcast %380 : f32 to vector<16x16xf32>
    %384 = arith.mulf %383, %382 : vector<16x16xf32>
    %385 = arith.addf %379, %384 : vector<16x16xf32>
    %c30 = arith.constant 30 : index
    %386 = memref.load %arg2[%c30] : memref<98xf32, #tpu.memory_space<smem>>
    %387 = vector.extract_strided_slice %24 {offsets = [0, 4, 2], sizes = [1, 16, 16], strides = [1, 1, 1]} : vector<2x22x22xf32> to vector<1x16x16xf32>
    %388 = vector.shape_cast %387 : vector<1x16x16xf32> to vector<16x16xf32>
    %389 = vector.broadcast %386 : f32 to vector<16x16xf32>
    %390 = arith.mulf %389, %388 : vector<16x16xf32>
    %391 = arith.addf %385, %390 : vector<16x16xf32>
    %c79 = arith.constant 79 : index
    %392 = memref.load %arg2[%c79] : memref<98xf32, #tpu.memory_space<smem>>
    %393 = vector.extract_strided_slice %24 {offsets = [1, 4, 2], sizes = [1, 16, 16], strides = [1, 1, 1]} : vector<2x22x22xf32> to vector<1x16x16xf32>
    %394 = vector.shape_cast %393 : vector<1x16x16xf32> to vector<16x16xf32>
    %395 = vector.broadcast %392 : f32 to vector<16x16xf32>
    %396 = arith.mulf %395, %394 : vector<16x16xf32>
    %397 = arith.addf %391, %396 : vector<16x16xf32>
    %c31 = arith.constant 31 : index
    %398 = memref.load %arg2[%c31] : memref<98xf32, #tpu.memory_space<smem>>
    %399 = vector.extract_strided_slice %24 {offsets = [0, 4, 3], sizes = [1, 16, 16], strides = [1, 1, 1]} : vector<2x22x22xf32> to vector<1x16x16xf32>
    %400 = vector.shape_cast %399 : vector<1x16x16xf32> to vector<16x16xf32>
    %401 = vector.broadcast %398 : f32 to vector<16x16xf32>
    %402 = arith.mulf %401, %400 : vector<16x16xf32>
    %403 = arith.addf %397, %402 : vector<16x16xf32>
    %c80 = arith.constant 80 : index
    %404 = memref.load %arg2[%c80] : memref<98xf32, #tpu.memory_space<smem>>
    %405 = vector.extract_strided_slice %24 {offsets = [1, 4, 3], sizes = [1, 16, 16], strides = [1, 1, 1]} : vector<2x22x22xf32> to vector<1x16x16xf32>
    %406 = vector.shape_cast %405 : vector<1x16x16xf32> to vector<16x16xf32>
    %407 = vector.broadcast %404 : f32 to vector<16x16xf32>
    %408 = arith.mulf %407, %406 : vector<16x16xf32>
    %409 = arith.addf %403, %408 : vector<16x16xf32>
    %c32 = arith.constant 32 : index
    %410 = memref.load %arg2[%c32] : memref<98xf32, #tpu.memory_space<smem>>
    %411 = vector.extract_strided_slice %24 {offsets = [0, 4, 4], sizes = [1, 16, 16], strides = [1, 1, 1]} : vector<2x22x22xf32> to vector<1x16x16xf32>
    %412 = vector.shape_cast %411 : vector<1x16x16xf32> to vector<16x16xf32>
    %413 = vector.broadcast %410 : f32 to vector<16x16xf32>
    %414 = arith.mulf %413, %412 : vector<16x16xf32>
    %415 = arith.addf %409, %414 : vector<16x16xf32>
    %c81 = arith.constant 81 : index
    %416 = memref.load %arg2[%c81] : memref<98xf32, #tpu.memory_space<smem>>
    %417 = vector.extract_strided_slice %24 {offsets = [1, 4, 4], sizes = [1, 16, 16], strides = [1, 1, 1]} : vector<2x22x22xf32> to vector<1x16x16xf32>
    %418 = vector.shape_cast %417 : vector<1x16x16xf32> to vector<16x16xf32>
    %419 = vector.broadcast %416 : f32 to vector<16x16xf32>
    %420 = arith.mulf %419, %418 : vector<16x16xf32>
    %421 = arith.addf %415, %420 : vector<16x16xf32>
    %c33 = arith.constant 33 : index
    %422 = memref.load %arg2[%c33] : memref<98xf32, #tpu.memory_space<smem>>
    %423 = vector.extract_strided_slice %24 {offsets = [0, 4, 5], sizes = [1, 16, 16], strides = [1, 1, 1]} : vector<2x22x22xf32> to vector<1x16x16xf32>
    %424 = vector.shape_cast %423 : vector<1x16x16xf32> to vector<16x16xf32>
    %425 = vector.broadcast %422 : f32 to vector<16x16xf32>
    %426 = arith.mulf %425, %424 : vector<16x16xf32>
    %427 = arith.addf %421, %426 : vector<16x16xf32>
    %c82 = arith.constant 82 : index
    %428 = memref.load %arg2[%c82] : memref<98xf32, #tpu.memory_space<smem>>
    %429 = vector.extract_strided_slice %24 {offsets = [1, 4, 5], sizes = [1, 16, 16], strides = [1, 1, 1]} : vector<2x22x22xf32> to vector<1x16x16xf32>
    %430 = vector.shape_cast %429 : vector<1x16x16xf32> to vector<16x16xf32>
    %431 = vector.broadcast %428 : f32 to vector<16x16xf32>
    %432 = arith.mulf %431, %430 : vector<16x16xf32>
    %433 = arith.addf %427, %432 : vector<16x16xf32>
    %c34 = arith.constant 34 : index
    %434 = memref.load %arg2[%c34] : memref<98xf32, #tpu.memory_space<smem>>
    %435 = vector.extract_strided_slice %24 {offsets = [0, 4, 6], sizes = [1, 16, 16], strides = [1, 1, 1]} : vector<2x22x22xf32> to vector<1x16x16xf32>
    %436 = vector.shape_cast %435 : vector<1x16x16xf32> to vector<16x16xf32>
    %437 = vector.broadcast %434 : f32 to vector<16x16xf32>
    %438 = arith.mulf %437, %436 : vector<16x16xf32>
    %439 = arith.addf %433, %438 : vector<16x16xf32>
    %c83 = arith.constant 83 : index
    %440 = memref.load %arg2[%c83] : memref<98xf32, #tpu.memory_space<smem>>
    %441 = vector.extract_strided_slice %24 {offsets = [1, 4, 6], sizes = [1, 16, 16], strides = [1, 1, 1]} : vector<2x22x22xf32> to vector<1x16x16xf32>
    %442 = vector.shape_cast %441 : vector<1x16x16xf32> to vector<16x16xf32>
    %443 = vector.broadcast %440 : f32 to vector<16x16xf32>
    %444 = arith.mulf %443, %442 : vector<16x16xf32>
    %445 = arith.addf %439, %444 : vector<16x16xf32>
    %c35 = arith.constant 35 : index
    %446 = memref.load %arg2[%c35] : memref<98xf32, #tpu.memory_space<smem>>
    %447 = vector.extract_strided_slice %24 {offsets = [0, 5, 0], sizes = [1, 16, 16], strides = [1, 1, 1]} : vector<2x22x22xf32> to vector<1x16x16xf32>
    %448 = vector.shape_cast %447 : vector<1x16x16xf32> to vector<16x16xf32>
    %449 = vector.broadcast %446 : f32 to vector<16x16xf32>
    %450 = arith.mulf %449, %448 : vector<16x16xf32>
    %451 = arith.addf %445, %450 : vector<16x16xf32>
    %c84 = arith.constant 84 : index
    %452 = memref.load %arg2[%c84] : memref<98xf32, #tpu.memory_space<smem>>
    %453 = vector.extract_strided_slice %24 {offsets = [1, 5, 0], sizes = [1, 16, 16], strides = [1, 1, 1]} : vector<2x22x22xf32> to vector<1x16x16xf32>
    %454 = vector.shape_cast %453 : vector<1x16x16xf32> to vector<16x16xf32>
    %455 = vector.broadcast %452 : f32 to vector<16x16xf32>
    %456 = arith.mulf %455, %454 : vector<16x16xf32>
    %457 = arith.addf %451, %456 : vector<16x16xf32>
    %c36 = arith.constant 36 : index
    %458 = memref.load %arg2[%c36] : memref<98xf32, #tpu.memory_space<smem>>
    %459 = vector.extract_strided_slice %24 {offsets = [0, 5, 1], sizes = [1, 16, 16], strides = [1, 1, 1]} : vector<2x22x22xf32> to vector<1x16x16xf32>
    %460 = vector.shape_cast %459 : vector<1x16x16xf32> to vector<16x16xf32>
    %461 = vector.broadcast %458 : f32 to vector<16x16xf32>
    %462 = arith.mulf %461, %460 : vector<16x16xf32>
    %463 = arith.addf %457, %462 : vector<16x16xf32>
    %c85 = arith.constant 85 : index
    %464 = memref.load %arg2[%c85] : memref<98xf32, #tpu.memory_space<smem>>
    %465 = vector.extract_strided_slice %24 {offsets = [1, 5, 1], sizes = [1, 16, 16], strides = [1, 1, 1]} : vector<2x22x22xf32> to vector<1x16x16xf32>
    %466 = vector.shape_cast %465 : vector<1x16x16xf32> to vector<16x16xf32>
    %467 = vector.broadcast %464 : f32 to vector<16x16xf32>
    %468 = arith.mulf %467, %466 : vector<16x16xf32>
    %469 = arith.addf %463, %468 : vector<16x16xf32>
    %c37 = arith.constant 37 : index
    %470 = memref.load %arg2[%c37] : memref<98xf32, #tpu.memory_space<smem>>
    %471 = vector.extract_strided_slice %24 {offsets = [0, 5, 2], sizes = [1, 16, 16], strides = [1, 1, 1]} : vector<2x22x22xf32> to vector<1x16x16xf32>
    %472 = vector.shape_cast %471 : vector<1x16x16xf32> to vector<16x16xf32>
    %473 = vector.broadcast %470 : f32 to vector<16x16xf32>
    %474 = arith.mulf %473, %472 : vector<16x16xf32>
    %475 = arith.addf %469, %474 : vector<16x16xf32>
    %c86 = arith.constant 86 : index
    %476 = memref.load %arg2[%c86] : memref<98xf32, #tpu.memory_space<smem>>
    %477 = vector.extract_strided_slice %24 {offsets = [1, 5, 2], sizes = [1, 16, 16], strides = [1, 1, 1]} : vector<2x22x22xf32> to vector<1x16x16xf32>
    %478 = vector.shape_cast %477 : vector<1x16x16xf32> to vector<16x16xf32>
    %479 = vector.broadcast %476 : f32 to vector<16x16xf32>
    %480 = arith.mulf %479, %478 : vector<16x16xf32>
    %481 = arith.addf %475, %480 : vector<16x16xf32>
    %c38 = arith.constant 38 : index
    %482 = memref.load %arg2[%c38] : memref<98xf32, #tpu.memory_space<smem>>
    %483 = vector.extract_strided_slice %24 {offsets = [0, 5, 3], sizes = [1, 16, 16], strides = [1, 1, 1]} : vector<2x22x22xf32> to vector<1x16x16xf32>
    %484 = vector.shape_cast %483 : vector<1x16x16xf32> to vector<16x16xf32>
    %485 = vector.broadcast %482 : f32 to vector<16x16xf32>
    %486 = arith.mulf %485, %484 : vector<16x16xf32>
    %487 = arith.addf %481, %486 : vector<16x16xf32>
    %c87 = arith.constant 87 : index
    %488 = memref.load %arg2[%c87] : memref<98xf32, #tpu.memory_space<smem>>
    %489 = vector.extract_strided_slice %24 {offsets = [1, 5, 3], sizes = [1, 16, 16], strides = [1, 1, 1]} : vector<2x22x22xf32> to vector<1x16x16xf32>
    %490 = vector.shape_cast %489 : vector<1x16x16xf32> to vector<16x16xf32>
    %491 = vector.broadcast %488 : f32 to vector<16x16xf32>
    %492 = arith.mulf %491, %490 : vector<16x16xf32>
    %493 = arith.addf %487, %492 : vector<16x16xf32>
    %c39 = arith.constant 39 : index
    %494 = memref.load %arg2[%c39] : memref<98xf32, #tpu.memory_space<smem>>
    %495 = vector.extract_strided_slice %24 {offsets = [0, 5, 4], sizes = [1, 16, 16], strides = [1, 1, 1]} : vector<2x22x22xf32> to vector<1x16x16xf32>
    %496 = vector.shape_cast %495 : vector<1x16x16xf32> to vector<16x16xf32>
    %497 = vector.broadcast %494 : f32 to vector<16x16xf32>
    %498 = arith.mulf %497, %496 : vector<16x16xf32>
    %499 = arith.addf %493, %498 : vector<16x16xf32>
    %c88 = arith.constant 88 : index
    %500 = memref.load %arg2[%c88] : memref<98xf32, #tpu.memory_space<smem>>
    %501 = vector.extract_strided_slice %24 {offsets = [1, 5, 4], sizes = [1, 16, 16], strides = [1, 1, 1]} : vector<2x22x22xf32> to vector<1x16x16xf32>
    %502 = vector.shape_cast %501 : vector<1x16x16xf32> to vector<16x16xf32>
    %503 = vector.broadcast %500 : f32 to vector<16x16xf32>
    %504 = arith.mulf %503, %502 : vector<16x16xf32>
    %505 = arith.addf %499, %504 : vector<16x16xf32>
    %c40 = arith.constant 40 : index
    %506 = memref.load %arg2[%c40] : memref<98xf32, #tpu.memory_space<smem>>
    %507 = vector.extract_strided_slice %24 {offsets = [0, 5, 5], sizes = [1, 16, 16], strides = [1, 1, 1]} : vector<2x22x22xf32> to vector<1x16x16xf32>
    %508 = vector.shape_cast %507 : vector<1x16x16xf32> to vector<16x16xf32>
    %509 = vector.broadcast %506 : f32 to vector<16x16xf32>
    %510 = arith.mulf %509, %508 : vector<16x16xf32>
    %511 = arith.addf %505, %510 : vector<16x16xf32>
    %c89 = arith.constant 89 : index
    %512 = memref.load %arg2[%c89] : memref<98xf32, #tpu.memory_space<smem>>
    %513 = vector.extract_strided_slice %24 {offsets = [1, 5, 5], sizes = [1, 16, 16], strides = [1, 1, 1]} : vector<2x22x22xf32> to vector<1x16x16xf32>
    %514 = vector.shape_cast %513 : vector<1x16x16xf32> to vector<16x16xf32>
    %515 = vector.broadcast %512 : f32 to vector<16x16xf32>
    %516 = arith.mulf %515, %514 : vector<16x16xf32>
    %517 = arith.addf %511, %516 : vector<16x16xf32>
    %c41 = arith.constant 41 : index
    %518 = memref.load %arg2[%c41] : memref<98xf32, #tpu.memory_space<smem>>
    %519 = vector.extract_strided_slice %24 {offsets = [0, 5, 6], sizes = [1, 16, 16], strides = [1, 1, 1]} : vector<2x22x22xf32> to vector<1x16x16xf32>
    %520 = vector.shape_cast %519 : vector<1x16x16xf32> to vector<16x16xf32>
    %521 = vector.broadcast %518 : f32 to vector<16x16xf32>
    %522 = arith.mulf %521, %520 : vector<16x16xf32>
    %523 = arith.addf %517, %522 : vector<16x16xf32>
    %c90 = arith.constant 90 : index
    %524 = memref.load %arg2[%c90] : memref<98xf32, #tpu.memory_space<smem>>
    %525 = vector.extract_strided_slice %24 {offsets = [1, 5, 6], sizes = [1, 16, 16], strides = [1, 1, 1]} : vector<2x22x22xf32> to vector<1x16x16xf32>
    %526 = vector.shape_cast %525 : vector<1x16x16xf32> to vector<16x16xf32>
    %527 = vector.broadcast %524 : f32 to vector<16x16xf32>
    %528 = arith.mulf %527, %526 : vector<16x16xf32>
    %529 = arith.addf %523, %528 : vector<16x16xf32>
    %c42 = arith.constant 42 : index
    %530 = memref.load %arg2[%c42] : memref<98xf32, #tpu.memory_space<smem>>
    %531 = vector.extract_strided_slice %24 {offsets = [0, 6, 0], sizes = [1, 16, 16], strides = [1, 1, 1]} : vector<2x22x22xf32> to vector<1x16x16xf32>
    %532 = vector.shape_cast %531 : vector<1x16x16xf32> to vector<16x16xf32>
    %533 = vector.broadcast %530 : f32 to vector<16x16xf32>
    %534 = arith.mulf %533, %532 : vector<16x16xf32>
    %535 = arith.addf %529, %534 : vector<16x16xf32>
    %c91 = arith.constant 91 : index
    %536 = memref.load %arg2[%c91] : memref<98xf32, #tpu.memory_space<smem>>
    %537 = vector.extract_strided_slice %24 {offsets = [1, 6, 0], sizes = [1, 16, 16], strides = [1, 1, 1]} : vector<2x22x22xf32> to vector<1x16x16xf32>
    %538 = vector.shape_cast %537 : vector<1x16x16xf32> to vector<16x16xf32>
    %539 = vector.broadcast %536 : f32 to vector<16x16xf32>
    %540 = arith.mulf %539, %538 : vector<16x16xf32>
    %541 = arith.addf %535, %540 : vector<16x16xf32>
    %c43 = arith.constant 43 : index
    %542 = memref.load %arg2[%c43] : memref<98xf32, #tpu.memory_space<smem>>
    %543 = vector.extract_strided_slice %24 {offsets = [0, 6, 1], sizes = [1, 16, 16], strides = [1, 1, 1]} : vector<2x22x22xf32> to vector<1x16x16xf32>
    %544 = vector.shape_cast %543 : vector<1x16x16xf32> to vector<16x16xf32>
    %545 = vector.broadcast %542 : f32 to vector<16x16xf32>
    %546 = arith.mulf %545, %544 : vector<16x16xf32>
    %547 = arith.addf %541, %546 : vector<16x16xf32>
    %c92 = arith.constant 92 : index
    %548 = memref.load %arg2[%c92] : memref<98xf32, #tpu.memory_space<smem>>
    %549 = vector.extract_strided_slice %24 {offsets = [1, 6, 1], sizes = [1, 16, 16], strides = [1, 1, 1]} : vector<2x22x22xf32> to vector<1x16x16xf32>
    %550 = vector.shape_cast %549 : vector<1x16x16xf32> to vector<16x16xf32>
    %551 = vector.broadcast %548 : f32 to vector<16x16xf32>
    %552 = arith.mulf %551, %550 : vector<16x16xf32>
    %553 = arith.addf %547, %552 : vector<16x16xf32>
    %c44 = arith.constant 44 : index
    %554 = memref.load %arg2[%c44] : memref<98xf32, #tpu.memory_space<smem>>
    %555 = vector.extract_strided_slice %24 {offsets = [0, 6, 2], sizes = [1, 16, 16], strides = [1, 1, 1]} : vector<2x22x22xf32> to vector<1x16x16xf32>
    %556 = vector.shape_cast %555 : vector<1x16x16xf32> to vector<16x16xf32>
    %557 = vector.broadcast %554 : f32 to vector<16x16xf32>
    %558 = arith.mulf %557, %556 : vector<16x16xf32>
    %559 = arith.addf %553, %558 : vector<16x16xf32>
    %c93 = arith.constant 93 : index
    %560 = memref.load %arg2[%c93] : memref<98xf32, #tpu.memory_space<smem>>
    %561 = vector.extract_strided_slice %24 {offsets = [1, 6, 2], sizes = [1, 16, 16], strides = [1, 1, 1]} : vector<2x22x22xf32> to vector<1x16x16xf32>
    %562 = vector.shape_cast %561 : vector<1x16x16xf32> to vector<16x16xf32>
    %563 = vector.broadcast %560 : f32 to vector<16x16xf32>
    %564 = arith.mulf %563, %562 : vector<16x16xf32>
    %565 = arith.addf %559, %564 : vector<16x16xf32>
    %c45 = arith.constant 45 : index
    %566 = memref.load %arg2[%c45] : memref<98xf32, #tpu.memory_space<smem>>
    %567 = vector.extract_strided_slice %24 {offsets = [0, 6, 3], sizes = [1, 16, 16], strides = [1, 1, 1]} : vector<2x22x22xf32> to vector<1x16x16xf32>
    %568 = vector.shape_cast %567 : vector<1x16x16xf32> to vector<16x16xf32>
    %569 = vector.broadcast %566 : f32 to vector<16x16xf32>
    %570 = arith.mulf %569, %568 : vector<16x16xf32>
    %571 = arith.addf %565, %570 : vector<16x16xf32>
    %c94 = arith.constant 94 : index
    %572 = memref.load %arg2[%c94] : memref<98xf32, #tpu.memory_space<smem>>
    %573 = vector.extract_strided_slice %24 {offsets = [1, 6, 3], sizes = [1, 16, 16], strides = [1, 1, 1]} : vector<2x22x22xf32> to vector<1x16x16xf32>
    %574 = vector.shape_cast %573 : vector<1x16x16xf32> to vector<16x16xf32>
    %575 = vector.broadcast %572 : f32 to vector<16x16xf32>
    %576 = arith.mulf %575, %574 : vector<16x16xf32>
    %577 = arith.addf %571, %576 : vector<16x16xf32>
    %c46 = arith.constant 46 : index
    %578 = memref.load %arg2[%c46] : memref<98xf32, #tpu.memory_space<smem>>
    %579 = vector.extract_strided_slice %24 {offsets = [0, 6, 4], sizes = [1, 16, 16], strides = [1, 1, 1]} : vector<2x22x22xf32> to vector<1x16x16xf32>
    %580 = vector.shape_cast %579 : vector<1x16x16xf32> to vector<16x16xf32>
    %581 = vector.broadcast %578 : f32 to vector<16x16xf32>
    %582 = arith.mulf %581, %580 : vector<16x16xf32>
    %583 = arith.addf %577, %582 : vector<16x16xf32>
    %c95 = arith.constant 95 : index
    %584 = memref.load %arg2[%c95] : memref<98xf32, #tpu.memory_space<smem>>
    %585 = vector.extract_strided_slice %24 {offsets = [1, 6, 4], sizes = [1, 16, 16], strides = [1, 1, 1]} : vector<2x22x22xf32> to vector<1x16x16xf32>
    %586 = vector.shape_cast %585 : vector<1x16x16xf32> to vector<16x16xf32>
    %587 = vector.broadcast %584 : f32 to vector<16x16xf32>
    %588 = arith.mulf %587, %586 : vector<16x16xf32>
    %589 = arith.addf %583, %588 : vector<16x16xf32>
    %c47 = arith.constant 47 : index
    %590 = memref.load %arg2[%c47] : memref<98xf32, #tpu.memory_space<smem>>
    %591 = vector.extract_strided_slice %24 {offsets = [0, 6, 5], sizes = [1, 16, 16], strides = [1, 1, 1]} : vector<2x22x22xf32> to vector<1x16x16xf32>
    %592 = vector.shape_cast %591 : vector<1x16x16xf32> to vector<16x16xf32>
    %593 = vector.broadcast %590 : f32 to vector<16x16xf32>
    %594 = arith.mulf %593, %592 : vector<16x16xf32>
    %595 = arith.addf %589, %594 : vector<16x16xf32>
    %c96 = arith.constant 96 : index
    %596 = memref.load %arg2[%c96] : memref<98xf32, #tpu.memory_space<smem>>
    %597 = vector.extract_strided_slice %24 {offsets = [1, 6, 5], sizes = [1, 16, 16], strides = [1, 1, 1]} : vector<2x22x22xf32> to vector<1x16x16xf32>
    %598 = vector.shape_cast %597 : vector<1x16x16xf32> to vector<16x16xf32>
    %599 = vector.broadcast %596 : f32 to vector<16x16xf32>
    %600 = arith.mulf %599, %598 : vector<16x16xf32>
    %601 = arith.addf %595, %600 : vector<16x16xf32>
    %c48 = arith.constant 48 : index
    %602 = memref.load %arg2[%c48] : memref<98xf32, #tpu.memory_space<smem>>
    %603 = vector.extract_strided_slice %24 {offsets = [0, 6, 6], sizes = [1, 16, 16], strides = [1, 1, 1]} : vector<2x22x22xf32> to vector<1x16x16xf32>
    %604 = vector.shape_cast %603 : vector<1x16x16xf32> to vector<16x16xf32>
    %605 = vector.broadcast %602 : f32 to vector<16x16xf32>
    %606 = arith.mulf %605, %604 : vector<16x16xf32>
    %607 = arith.addf %601, %606 : vector<16x16xf32>
    %c97 = arith.constant 97 : index
    %608 = memref.load %arg2[%c97] : memref<98xf32, #tpu.memory_space<smem>>
    %609 = vector.extract_strided_slice %24 {offsets = [1, 6, 6], sizes = [1, 16, 16], strides = [1, 1, 1]} : vector<2x22x22xf32> to vector<1x16x16xf32>
    %610 = vector.shape_cast %609 : vector<1x16x16xf32> to vector<16x16xf32>
    %611 = vector.broadcast %608 : f32 to vector<16x16xf32>
    %612 = arith.mulf %611, %610 : vector<16x16xf32>
    %613 = arith.addf %607, %612 : vector<16x16xf32>
    %cst_30 = arith.constant 0.000000e+00 : f32
    %614 = vector.broadcast %cst_30 : f32 to vector<16x16xf32>
    %615 = arith.subf %614, %613 : vector<16x16xf32>
    %616 = math.exp %615 : vector<16x16xf32>
    %cst_31 = arith.constant 1.000000e+00 : f32
    %617 = vector.broadcast %cst_31 : f32 to vector<16x16xf32>
    %618 = arith.addf %617, %616 : vector<16x16xf32>
    %cst_32 = arith.constant 1.000000e+00 : f32
    %619 = vector.broadcast %cst_32 : f32 to vector<16x16xf32>
    %620 = arith.divf %619, %618 : vector<16x16xf32>
    %621 = vector.shape_cast %620 : vector<16x16xf32> to vector<1x16x16xf32>
    %c0_33 = arith.constant 0 : index
    %c0_34 = arith.constant 0 : index
    %c0_35 = arith.constant 0 : index
    %622 = vector.load %arg3[%c0_33, %c0_34, %c0_35] : memref<1x16x16xf32, #tpu.memory_space<vmem>>, vector<1x16x16xf32>
    tpu.vector_store %arg3[%c0_33, %c0_34, %c0_35], %621 {strides = array<i32>} : memref<1x16x16xf32, #tpu.memory_space<vmem>>, vector<1x16x16xf32>,
    return
  }
  func.func @transform_0(%arg0: i32) -> (i32, i32, i32, i32) {
    %c0_i32 = arith.constant 0 : i32
    %c0_i32_0 = arith.constant 0 : i32
    %c0_i32_1 = arith.constant 0 : i32
    %c0_i32_2 = arith.constant 0 : i32
    return %arg0, %c0_i32, %c0_i32_0, %c0_i32_1 : i32, i32, i32, i32
  }
  func.func @transform_1(%arg0: i32) -> i32 {
    %c0_i32 = arith.constant 0 : i32
    %c0_i32_0 = arith.constant 0 : i32
    return %c0_i32 : i32
  }
  func.func @transform_2(%arg0: i32) -> (i32, i32, i32) {
    %c0_i32 = arith.constant 0 : i32
    %c0_i32_0 = arith.constant 0 : i32
    %c0_i32_1 = arith.constant 0 : i32
    return %arg0, %c0_i32, %c0_i32_0 : i32, i32, i32
  }
}

</mosaic_0001>

<bundles_post_ra>
// kernel: tpu_custom_call.1
= control target key start
LH: loop header
LB: loop body
LE: loop exit
PB: predicated region body
PF: predicated region fallthrough
CT: control target
= control target key end

     0   :  { %7 = vsyncpa [#allocation4], 0  ;;  %s3903_s0 = inlined_call_operand.hbm [shape: f32[2,4,16,16], index: 0, kind: input, shape index: {}]   ;;  %s3904_s1 = inlined_call_operand.hbm [shape: f32[98], index: 1, kind: input, shape index: {}]   ;;  %s3905_s2 = inlined_call_operand.hbm [shape: f32[2,16,16], index: 2, kind: output, shape index: {}]  }
   0x1   :  { %9 = vsyncpa [#allocation4 + $0x1], 0 }
   0x2   :  { %10 = vsyncpa [#allocation6], 0 }
   0x3   :  { %11 = vsyncpa [#allocation5], 0 }
   0x4   :  { %13 = vsyncpa [#allocation5 + $0x1], 0  ;;  %s2638_s9 = smov 0   ;;  %s2640_s10 = smov 0  }
   0x5   :  { %s2642_s11 = smov 0   ;;  %s2644_s12 = smov 0  }
   0x6 LB: > { %s2659_s13 = sadd.s32 4294967295, %s2608_s12   ;;  %s2283_s14 = sadd.s32 4294967294, %s2608_s12   ;;  %s2608_s12 = sphi %s2644_s12, %s3916_s12   ;;  %s2604_s11 = sphi %s2642_s11, %s3915_s11   ;;  %s2600_s10 = sphi %s2640_s10, %s3914_s10   ;;  %s2596_s9 = sphi %s2638_s9, %s3913_s9  }
   0x7   : > { %s2663_s15 = sadd.s32 1, %s2608_s12   ;;  %s26_s16 = sadd.s32 1, %s2604_s11 }
   0x8   : > { %s23_s17 = ssub.s32 %s2608_s12, %s2663_s15  ;;  %p33_p0 = scmp.ne.s32.totalorder %s2604_s11, %s2600_s10 }
   0x9   : > { %p24_p1 = scmp.eq.s32.totalorder %s23_s17, 0  ;;  %p34_p2 = scmp.eq.s32.totalorder %s2608_s12, 0 }
   0xa   : > { %p39_p3 = scmp.ne.s32.totalorder %s2600_s10, %s2596_s9  ;;  %p40_p4 = scmp.eq.s32.totalorder %s2659_s13, 0 }
   0xb   : > { %s2675_s18 = scalar_select %p24_p1, %s2604_s11, %s26_s16  }
   0xc   : > { %p2677_p5 = por %p34_p2, %p33_p0  ;;  %p2683_p6 = por %p40_p4, %p39_p3 }
   0xd   : > { %p84_p7 = scmp.eq.s32.totalorder %s2659_s13, 1  ;;  %p90_p8 = scmp.eq.s32.totalorder %s2283_s14, 1 }
   0xe   : > { %p2284_p9 = scmp.ge.s32.totalorder %s2608_s12, 1  ;;  %p97_p10 = scmp.lt.s32.totalorder %s2608_s12, 3 }
   0xf   : > { %p2690_p11 = por %p84_p7, %p33_p0  ;;  %p2694_p12 = por %p90_p8, %p39_p3 }
  0x10   : > { %p2698_p13 = pnand %p2284_p9, %p97_p10  ;;  %s109_s26 = sshll.u32 %s3904_s1, 4  ;;  %s110_s26 = int_to_ptr.hbm [resolvable:$true] %s109_s26 }
  0x11   : > { %p2425_p2 = scmp.lt.s32.totalorder %s2608_s12, 2  ;;  %s120_s27 = sand.u32 1, %s2604_s11  }
  0x12   : > { %p2412_p1 = pneg %p2698_p13  ;;  %s2287_s29 = sshll.u32 %s120_s27, 6 }
  0x13   : > { %p2714_p3 = pnand %p2425_p2, %p2677_p5  ;;  %s2610_s30 = smov [#allocation7]  }
  0x14   : > { %p2413_p7 = pnand %p2412_p1, %p40_p4  ;;  %s2402_s3 = sshll.u32 %s2608_s12, 6 }
  0x15   : > { %s124_s4 = scalar_lea.vmem [#allocation3], %s2287_s29  ;;  %s129_s8 = scalar_lea.hbm %s3903_s0, %s2402_s3 }
  0x16   : > { %2415 = dma.hbm_to_smem (!%p2413_p7), %s110_s26, 16, %s2610_s30, [#allocation6]  }
  0x17   : > { %s132_s5 = sshll.u32 %s124_s4, 4  ;;  %s130_s14 = sshll.u32 %s129_s8, 4  ;;  %s133_s5 = int_to_ptr.vmem [resolvable:$true] %s132_s5  ;;  %s131_s14 = int_to_ptr.hbm [resolvable:$true] %s130_s14 }
  0x18   : > { %s121_s16 = scalar_lea.sflag [#allocation4], %s120_s27  ;;  %s2508_s17 = sshra.s32 %s131_s14, 4  ;;  %s2509_s17 = int_to_ptr.hbm [resolvable:$true] %s2508_s17 }
  0x19   : > { %s2510_s19 = scalar_lea.hbm %s2509_s17, 64  ;;  %p2512_p8 = pneg %p2714_p3 }
  0x1a   : > { %p2511_p5 = scmp.ne.s32.totalorder %s2509_s17, %s2510_s19  ;;  %s2515_s26 = scalar_lea.hbm %s3903_s0, 128 }
  0x1b   : > { %p2516_p1 = scmp.lt.s32.totalorder %s2509_s17, %s3903_s0  ;;  %p2517_p2 = scmp.lt.s32.totalorder %s2515_s26, %s2510_s19 }
  0x1c   : > { %p2513_p9 = pnand %p2512_p8, %p2511_p5 }
  0x1d   : > { %p2518_p7 = por %p2517_p2, %p2516_p1 }
  0x1e   : > { %p2514_p10 = pneg %p2513_p9 }
  0x20   : > { %p2519_p0 = pnand %p2518_p7, %p2514_p10 }
  0x22   : > { %2522 = shalt.err (!%p2519_p0)
}
  0x23   : > { %s2611_s27 = smov 128   ;;  %s2612_s3 = smov 8  }
  0x24   : > { %2419 = dma.hbm_to_vmem [thread:$0]  (!%p2714_p3), %s131_s14, 1024, %s133_s5, %s121_s16, %s2611_s27, %s2611_s27, %s2612_s3  }
  0x25   : > { %144 = sbr.rel (%p2698_p13) target bundleno = 772 (0x304), region = 28  ;;  %s2735_s4 = sand.u32 (!%p2698_p13), 1, %s2600_s10  }
  0x26   : > { %s2291_s6 = sshll.u32 (!%p2698_p13), %s2735_s4, 6  ;;  %s147_s7 = scalar_lea.sflag (!%p2698_p13), [#allocation4], %s2735_s4 }
  0x27   : > { %s150_s8 = scalar_lea.vmem (!%p2698_p13), [#allocation3], %s2291_s6 }
  0x2a   : > { %2583 = dma.done.wait (%p2683_p6), %s147_s7, 1024  }
  0x2b   : > { %2585 = vsyncadd (%p2683_p6), %s147_s7, 4294966272 }
  0x2c   : > { %2587 = dma.done.wait (%p40_p4), [#allocation6], 16  }
  0x2d   : > { %2589 = vsyncadd (%p40_p4), [#allocation6], 4294967280 }
  0x2e   : > { %161 = sfence }
  0x2f   : > { %v178_v0 = vld [vmem:[%s150_s8] sm:$0xff]  ;;  %v2294_v1 = vld [vmem:[%s150_s8 + $0x10] sm:$0xff]  ;;  %vm203_vm0 = vcmask 179200   ;;  %v179_v5 = vld [vmem:[%s150_s8 + $0x8] sm:$0xff]  ;;  %v2613_v7 = vmov 0.0   ;;  %s2614_s20 = smov 3  }
  0x30   : > { %v2296_v2 = vld [vmem:[%s150_s8 + $0x20] sm:$0xff]  ;;  %v185_v3 = vmax.f32 %v178_v0, %v2294_v1  ;;  %v183_v4 = vadd.f32 %v2294_v1, %v178_v0  ;;  %v2295_v6 = vld [vmem:[%s150_s8 + $0x18] sm:$0xff]  ;;  %208 = vst.msk [vmem:[#allocation2 + $0x18] sm:$0xff] %vm203_vm0, %v2613_v7  ;;  %v2298_v8 = vld [vmem:[%s150_s8 + $0x30] sm:$0xff]  ;;  %vm206_vm1 = vcmask 177152   ;;  %vm219_vm2 = vcmask 154648  }
  0x31   : > { %v2297_v9 = vld [vmem:[%s150_s8 + $0x28] sm:$0xff]  ;;  %v184_v10 = vadd.f32 %v2295_v6, %v179_v5  ;;  %209 = vst.msk [vmem:[#allocation2 + $0x20] sm:$0xff] %vm203_vm0, %v2613_v7  ;;  %v186_v13 = vmax.f32 %v179_v5, %v2295_v6  ;;  %v2299_v17 = vld [vmem:[%s150_s8 + $0x38] sm:$0xff]  ;;  %s2302_s23 = sld [smem:[#allocation7 + $0x32]]  ;;  %s2615_s14 = smov 127   ;;  %vm427_vm3 = vcmask 1046528  }
  0x32   : > { %v192_v11 = vmax.f32 %v185_v3, %v2296_v2  ;;  %v190_v12 = vadd.f32 %v2296_v2, %v183_v4  ;;  %204 = vst.msk [vmem:[#allocation2] sm:$0xff] %vm203_vm0, %v2613_v7  ;;  %s2304_s28 = sld [smem:[#allocation7 + $0x33]]  ;;  %s2616_s17 = smov 126   ;;  %vm714_vm4 = vcmask 1045504   ;;  %vm1001_vm5 = vcmask 1044480  }
  0x33   : > { %205 = vst.msk [vmem:[#allocation2 + $0x8] sm:$0xff] %vm203_vm0, %v2613_v7  ;;  %v191_v16 = vadd.f32 %v2297_v9, %v184_v10  ;;  %v193_v19 = vmax.f32 %v186_v13, %v2297_v9  ;;  %s2306_s5 = sld [smem:[#allocation7 + $0x34]]  ;;  %s2617_s19 = smov 125   ;;  %vm1288_vm6 = vcmask 1043456   ;;  %vm1575_vm7 = vcmask 1042432  }
  0x34   : > { %v199_v14 = vmax.f32 %v192_v11, %v2298_v8  ;;  %v197_v15 = vadd.f32 %v2298_v8, %v190_v12  ;;  %210 = vst.msk [vmem:[#allocation2 + $0x28] sm:$0x3f] %vm206_vm1, %v2613_v7  ;;  %s2308_s16 = sld [smem:[#allocation7 + $0x35]]  ;;  %s2618_s26 = smov 124   ;;  %vm1862_vm8 = vcmask 1041408   ;;  %vm2179_vm12 = vcmask 130048  }
  0x35   : > { %v198_v20 = vadd.f32 %v2299_v17, %v191_v16  ;;  %v200_v21 = vmax.f32 %v193_v19, %v2299_v17  ;;  %207 = vst.msk [vmem:[#allocation2 + $0x10] sm:$0x3f] %vm206_vm1, %v2613_v7  ;;  %s2310_s24 = sld [smem:[#allocation7 + $0x36]]  ;;  %s2619_s30 = smov 123  }
  0x36   : > { %224 = vrot.lane.b32.xlu1 %v199_v14, %s2614_s20  ;;  %v201_v18 = vmul.f32 0.25, %v197_v15  ;;  %s2312_s25 = sld [smem:[#allocation7 + $0x37]]  ;;  %s2620_s27 = smov 122  }
  0x37   : > { %v202_v22 = vmul.f32 0.25, %v198_v20  ;;  %v266_v25 = vstv %s2302_s23  ;;  %s2765_s29 = sld [smem:[#allocation7 + $0x2]] }
  0x38   : > { %213 = vrot.lane.b32.xlu0 %v201_v18, %s2614_s20  ;;  %v294_v31 = vstv %s2304_s28  ;;  %s2301_s3 = sld [smem:[#allocation7 + $0x1]] }
  0x39   : > { %v322_v32 = vstv %s2306_s5  ;;  %s2305_s6 = sld [smem:[#allocation7 + $0x3]] }
  0x3a   : > { %v350_v36 = vstv %s2308_s16  ;;  %s2782_s7 = sld [smem:[#allocation7 + $0x4]] }
  0x3b   : > { %v378_v40 = vstv %s2310_s24  ;;  %s2784_s8 = sld [smem:[#allocation7 + $0x5]] }
  0x3c   : > { %v406_v43 = vstv %s2312_s25  ;;  %s2316_s23 = sld [smem:[#allocation7 + $0x39]] }
  0x3d   : > { %v280_v45 = vstv %s2765_s29  ;;  %s2318_s28 = sld [smem:[#allocation7 + $0x3a]] }
  0x3e   : > { %226 = vrot.lane.b32.xlu1 %v200_v21, %s2614_s20  ;;  %v252_v50 = vstv %s2301_s3  ;;  %s2320_s5 = sld [smem:[#allocation7 + $0x3b]] }
  0x3f   : > { %v308_v51 = vstv %s2305_s6  ;;  %s2322_s16 = sld [smem:[#allocation7 + $0x3c]] }
  0x40   : > { %215 = vrot.lane.b32.xlu0 %v202_v22, %s2614_s20  ;;  %v336_v56 = vstv %s2782_s7  ;;  %s2311_s20 = sld [smem:[#allocation7 + $0x6]] }
  0x41   : > { %v364_v57 = vstv %s2784_s8  ;;  %s2324_s24 = sld [smem:[#allocation7 + $0x3d]] }
  0x42   : > { %v476_v1 = vstv %s2316_s23  ;;  %s2326_s25 = sld [smem:[#allocation7 + $0x3e]] }
  0x43   : > { %v518_v10 = vstv %s2318_s28  ;;  %s2315_s29 = sld [smem:[#allocation7 + $0x8]] }
  0x44   : > { %v560_v13 = vstv %s2320_s5  ;;  %s2317_s3 = sld [smem:[#allocation7 + $0x9]] }
  0x45   : > { %s2319_s6 = sld [smem:[#allocation7 + $0xa]] }
  0x46   : > { %v392_v61 = vstv %s2311_s20  ;;  %s2321_s7 = sld [smem:[#allocation7 + $0xb]] }
  0x47   : > { %s2323_s8 = sld [smem:[#allocation7 + $0xc]] }
  0x48   : > { %s2325_s20 = sld [smem:[#allocation7 + $0xd]] }
  0x49   : > { %s2329_s23 = sld [smem:[#allocation7 + $0xf]] }
  0x4a   : > { %s2330_s28 = sld [smem:[#allocation7 + $0x40]] }
  0x4b   : > { %s2331_s5 = sld [smem:[#allocation7 + $0x10]] }
  0xa8   : > { %v225_v23 = vpop.permute.xlu1 %224 }
  0xa9   : > { %231 = vst.msk [vmem:[#allocation2 + $0x1b] sm:$0xff] %vm219_vm2, %v225_v23  ;;  %v602_v23 = vstv %s2322_s16  ;;  %s2935_s16 = sld [smem:[#allocation7]] }
  0xaa   : > { %v214_v24 = vpop.permute.xlu0 %213 }
  0xab   : > { %220 = vst.msk [vmem:[#allocation2 + $0x3] sm:$0xff] %vm219_vm2, %v214_v24 }
  0xb0   : > { %v2747_v26 = vld [vmem:[#allocation2 + $0x18] sm:$0xff]  ;;  %v227_v27 = vpop.permute.xlu1 %226 }
  0xb1   : > { %232 = vst.msk [vmem:[#allocation2 + $0x23] sm:$0xff] %vm219_vm2, %v227_v27  ;;  %v267_v28 = vmul.f32 %v266_v25, %v2747_v26  ;;  %v295_v37 = vmul.f32 %v294_v31, %v2747_v26  ;;  %v323_v38 = vmul.f32 %v322_v32, %v2747_v26  ;;  %v351_v39 = vmul.f32 %v350_v36, %v2747_v26 }
  0xb2   : > { %v216_v29 = vpop.permute.xlu0 %215  ;;  %v407_v47 = vmul.f32 %v406_v43, %v2747_v26  ;;  %v379_v48 = vmul.f32 %v378_v40, %v2747_v26  ;;  %v2786_v52 = vld [vmem:[#allocation2] sm:$0xff]  ;;  %v477_v5 = vmul.f32 %v476_v1, %v2747_v26  ;;  %v519_v17 = vmul.f32 %v518_v10, %v2747_v26 }
  0xb3   : > { %221 = vst.msk [vmem:[#allocation2 + $0xb] sm:$0xff] %vm219_vm2, %v216_v29  ;;  %271 = vrot.lane.b32.xlu0 %v267_v28, %s2615_s14  ;;  %v253_v53 = vmul.f32 %v252_v50, %v2786_v52  ;;  %v309_v55 = vmul.f32 %v308_v51, %v2786_v52  ;;  %v337_v58 = vmul.f32 %v336_v56, %v2786_v52 }
  0xb4   : > { %v281_v0 = vmul.f32 %v280_v45, %v2786_v52  ;;  %v393_v2 = vmul.f32 %v392_v61, %v2786_v52  ;;  %v483_v8 = vrot.slane %v477_v5, 1  ;;  %v525_v21 = vrot.slane %v519_v17, 1 }
  0xb5   : > { %v365_v22 = vmul.f32 %v364_v57, %v2786_v52 }
  0xb8   : > { %v2751_v30 = vld [vmem:[#allocation2 + $0x20] sm:$0xff]  ;;  %v2802_v62 = vld [vmem:[#allocation2 + $0x28] sm:$0x3f] }
  0xb9   : > { %v296_v33 = vmul.f32 %v294_v31, %v2751_v30  ;;  %v268_v34 = vmul.f32 %v266_v25, %v2751_v30  ;;  %v324_v35 = vmul.f32 %v322_v32, %v2751_v30  ;;  %v380_v41 = vmul.f32 %v378_v40, %v2751_v30 }
  0xba   : > { %v352_v42 = vmul.f32 %v350_v36, %v2751_v30  ;;  %v408_v44 = vmul.f32 %v406_v43, %v2751_v30  ;;  %v2774_v46 = vld [vmem:[#allocation2 + $0x8] sm:$0xff]  ;;  %v478_v3 = vmul.f32 %v476_v1, %v2751_v30  ;;  %v479_v4 = vmul.f32 %v476_v1, %v2802_v62 }
  0xbb   : > { %301 = vrot.lane.b32.xlu2 %v296_v33, %s2616_s17  ;;  %273 = vrot.lane.b32.xlu1 %v268_v34, %s2615_s14  ;;  %v282_v49 = vmul.f32 %v280_v45, %v2774_v46  ;;  %v310_v54 = vmul.f32 %v308_v51, %v2774_v46  ;;  %v254_v59 = vmul.f32 %v252_v50, %v2774_v46  ;;  %v644_v36 = vstv %s2324_s24  ;;  %v2844_v51 = vld [vmem:[#allocation2 + $0x10] sm:$0x3f]  ;;  %s2333_s24 = sld [smem:[#allocation7 + $0x11]] }
  0xbc   : > { %329 = vrot.lane.b32.xlu0 %v324_v35, %s2617_s19  ;;  %v366_v60 = vmul.f32 %v364_v57, %v2774_v46  ;;  %v394_v63 = vmul.f32 %v392_v61, %v2774_v46  ;;  %v484_v6 = vrot.slane %v478_v3, 1  ;;  %v486_v7 = vrot.slane %v479_v4, 1 }
  0xbd   : > { %v338_v9 = vmul.f32 %v336_v56, %v2774_v46  ;;  %v520_v12 = vmul.f32 %v518_v10, %v2751_v30  ;;  %v562_v15 = vmul.f32 %v560_v13, %v2751_v30  ;;  %v563_v16 = vmul.f32 %v560_v13, %v2802_v62 }
  0xbe   : > { %v487_v11 = vsel %vm427_vm3, %v484_v6, %v486_v7  ;;  %v485_v14 = vsel %vm427_vm3, %v483_v8, %v484_v6  ;;  %v604_v25 = vmul.f32 %v602_v23, %v2751_v30  ;;  %v605_v27 = vmul.f32 %v602_v23, %v2802_v62 }
  0xbf   : > { %v526_v18 = vrot.slane %v520_v12, 1  ;;  %v568_v19 = vrot.slane %v562_v15, 1  ;;  %v570_v20 = vrot.slane %v563_v16, 1  ;;  %v521_v28 = vmul.f32 %v518_v10, %v2802_v62 }
  0xc0   : > { %v603_v31 = vmul.f32 %v602_v23, %v2747_v26  ;;  %v610_v32 = vrot.slane %v604_v25, 1  ;;  %v612_v33 = vrot.slane %v605_v27, 1  ;;  %v686_v40 = vstv %s2326_s25  ;;  %s2332_s25 = sld [smem:[#allocation7 + $0x41]] }
  0xc1   : > { %v527_v24 = vsel %vm427_vm3, %v525_v21, %v526_v18  ;;  %v571_v29 = vsel %vm427_vm3, %v568_v19, %v570_v20  ;;  %v528_v34 = vrot.slane %v521_v28, 1  ;;  %v689_v43 = vmul.f32 %v686_v40, %v2802_v62 }
  0xc2   : > { %v609_v35 = vrot.slane %v603_v31, 1  ;;  %v561_v45 = vmul.f32 %v560_v13, %v2747_v26  ;;  %v539_v6 = vstv %s2319_s6  ;;  %v687_v13 = vmul.f32 %v686_v40, %v2747_v26  ;;  %s2335_s6 = sld [smem:[#allocation7 + $0x12]] }
  0xc3   : > { %327 = vrot.lane.b32.xlu2 %v323_v38, %s2617_s19  ;;  %299 = vrot.lane.b32.xlu1 %v295_v37, %s2616_s17  ;;  %v613_v37 = vsel %vm427_vm3, %v610_v32, %v612_v33  ;;  %v529_v38 = vsel %vm427_vm3, %v526_v18, %v528_v34  ;;  %v696_v50 = vrot.slane %v689_v43, 1  ;;  %v542_v10 = vmul.f32 %v539_v6, %v2844_v51 }
  0xc4   : > { %355 = vrot.lane.b32.xlu0 %v351_v39, %s2618_s26  ;;  %v646_v39 = vmul.f32 %v644_v36, %v2751_v30  ;;  %v540_v12 = vmul.f32 %v539_v6, %v2786_v52  ;;  %v693_v18 = vrot.slane %v687_v13, 1  ;;  %v2874_v20 = vstv %s2323_s8  ;;  %s2337_s8 = sld [smem:[#allocation7 + $0x13]] }
  0xc5   : > { %v549_v16 = vrot.slane %v542_v10, 1  ;;  %v2888_v28 = vmul.f32 %v2874_v20, %v2774_v46  ;;  %v624_v13 = vmul.f32 %v2874_v20, %v2786_v52 }
  0xc6   : > { %v546_v17 = vrot.slane %v540_v12, 1 }
  0xcb   : > { %385 = vrot.lane.b32.xlu2 %v380_v41, %s2619_s30  ;;  %357 = vrot.lane.b32.xlu1 %v352_v42, %s2618_s26  ;;  %v611_v41 = vsel %vm427_vm3, %v609_v35, %v610_v32  ;;  %v688_v42 = vmul.f32 %v686_v40, %v2751_v30  ;;  %v665_v35 = vstv %s2325_s20  ;;  %s3021_s20 = sld [smem:[#allocation7 + $0x7]] }
  0xcc   : > { %413 = vrot.lane.b32.xlu0 %v408_v44, %s2620_s27  ;;  %v645_v44 = vmul.f32 %v644_v36, %v2747_v26 }
  0xd3   : > { %411 = vrot.lane.b32.xlu2 %v407_v47, %s2620_s27  ;;  %383 = vrot.lane.b32.xlu1 %v379_v48, %s2619_s30  ;;  %v652_v47 = vrot.slane %v646_v39, 1  ;;  %v455_v48 = vstv %s2315_s29  ;;  %s2952_s29 = sld [smem:[#allocation7 + $0x31]] }
  0xd4   : > { %287 = vrot.lane.b32.xlu0 %v282_v49, %s2616_s17  ;;  %v694_v49 = vrot.slane %v688_v42, 1  ;;  %v456_v56 = vmul.f32 %v455_v48, %v2786_v52  ;;  %v458_v25 = vmul.f32 %v455_v48, %v2844_v51 }
  0xd6   : > { %v697_v61 = vsel %vm427_vm3, %v694_v49, %v696_v50  ;;  %v462_v1 = vrot.slane %v456_v56, 1  ;;  %v695_v21 = vsel %vm427_vm3, %v693_v18, %v694_v49  ;;  %v465_v34 = vrot.slane %v458_v25, 1 }
  0xd7   : > { %v763_v56 = vstv %s2330_s28  ;;  %v826_v25 = vstv %s2333_s24  ;;  %s3039_s28 = sld [smem:[#allocation7 + $0x14]] }
  0xd8   : > { %v766_v12 = vmul.f32 %v763_v56, %v2802_v62  ;;  %s2343_s24 = sld [smem:[#allocation7 + $0x16]] }
  0xdb   : > { %257 = vrot.lane.b32.xlu2 %v253_v53, %s2615_s14  ;;  %315 = vrot.lane.b32.xlu1 %v310_v54, %s2617_s19  ;;  %v651_v53 = vrot.slane %v645_v44, 1  ;;  %v567_v54 = vrot.slane %v561_v45, 1  ;;  %v666_v44 = vmul.f32 %v665_v35, %v2786_v52 }
  0xdc   : > { %313 = vrot.lane.b32.xlu0 %v309_v55, %s2617_s19  ;;  %v497_v55 = vstv %s2317_s3  ;;  %s2334_s3 = sld [smem:[#allocation7 + $0x42]] }
  0xdd   : > { %v653_v57 = vsel %vm427_vm3, %v651_v53, %v652_v47  ;;  %v498_v42 = vmul.f32 %v497_v55, %v2786_v52  ;;  %v742_v53 = vstv %s2329_s23  ;;  %s3034_s23 = sld [smem:[#allocation7 + $0x38]] }
  0xdf   : > { %v504_v50 = vrot.slane %v498_v42, 1 }
  0xe3   : > { %341 = vrot.lane.b32.xlu1 %v337_v58, %s2618_s26  ;;  %259 = vrot.lane.b32.xlu2 %v254_v59, %s2615_s14  ;;  %v569_v58 = vsel %vm427_vm3, %v567_v54, %v568_v19  ;;  %v457_v59 = vmul.f32 %v455_v48, %v2774_v46  ;;  %v581_v19 = vstv %s2321_s7  ;;  %v672_v54 = vrot.slane %v666_v44, 1  ;;  %s2336_s7 = sld [smem:[#allocation7 + $0x43]] }
  0xe4   : > { %371 = vrot.lane.b32.xlu0 %v366_v60, %s2619_s30  ;;  %v647_v60 = vmul.f32 %v644_v36, %v2802_v62  ;;  %v582_v23 = vmul.f32 %v581_v19, %v2786_v52  ;;  %v631_v36 = vrot.slane %v2888_v28, 1  ;;  %v246_v28 = vstv %s2952_s29  ;;  %s2345_s29 = sld [smem:[#allocation7 + $0x17]] }
  0xe5   : > { %v248_v44 = vmul.f32 %v246_v28, %v2751_v30 }
  0xe6   : > { %v654_v3 = vrot.slane %v647_v60, 1  ;;  %v588_v32 = vrot.slane %v582_v23, 1  ;;  %v584_v60 = vmul.f32 %v581_v19, %v2844_v51 }
  0xe8   : > { %v655_v8 = vsel %vm427_vm3, %v652_v47, %v654_v3 }
  0xeb   : > { %399 = vrot.lane.b32.xlu1 %v394_v63, %s2620_s27  ;;  %285 = vrot.lane.b32.xlu2 %v281_v0, %s2616_s17  ;;  %v2855_v63 = vmul.f32 %v497_v55, %v2774_v46  ;;  %v500_v0 = vmul.f32 %v497_v55, %v2844_v51  ;;  %v743_v55 = vmul.f32 %v742_v53, %v2786_v52 }
  0xec   : > { %397 = vrot.lane.b32.xlu0 %v393_v2, %s2620_s27  ;;  %v463_v2 = vrot.slane %v457_v59, 1  ;;  %v2919_v59 = vmul.f32 %v742_v53, %v2774_v46 }
  0xed   : > { %v505_v4 = vrot.slane %v2855_v63, 1  ;;  %v507_v5 = vrot.slane %v500_v0, 1  ;;  %v765_v0 = vmul.f32 %v763_v56, %v2751_v30 }
  0xee   : > { %v464_v7 = vsel %vm427_vm3, %v462_v1, %v463_v2  ;;  %v466_v40 = vsel %vm427_vm3, %v463_v2, %v465_v34  ;;  %v764_v2 = vmul.f32 %v763_v56, %v2747_v26 }
  0xf3   : > { %490 = vrot.lane.b32.xlu1 %v487_v11, %s2615_s14  ;;  %343 = vrot.lane.b32.xlu2 %v338_v9, %s2618_s26  ;;  %v541_v9 = vmul.f32 %v539_v6, %v2774_v46  ;;  %v508_v11 = vsel %vm427_vm3, %v505_v4, %v507_v5  ;;  %v750_v5 = vrot.slane %v2919_v59, 2  ;;  %v591_v6 = vrot.slane %v584_v60, 1 }
  0xf4   : > { %488 = vrot.lane.b32.xlu0 %v485_v14, %s2615_s14  ;;  %v829_v60 = vmul.f32 %v826_v25, %v2844_v51 }
  0xf5   : > { %v547_v15 = vrot.slane %v541_v9, 1  ;;  %v770_v9 = vrot.slane %v764_v2, 2 }
  0xf7   : > { %v548_v27 = vsel %vm427_vm3, %v546_v17, %v547_v15 }
  0xfb   : > { %530 = vrot.lane.b32.xlu1 %v527_v24, %s2616_s17  ;;  %369 = vrot.lane.b32.xlu2 %v365_v22, %s2619_s30  ;;  %v550_v22 = vsel %vm427_vm3, %v547_v15, %v549_v16  ;;  %v2880_v24 = vmul.f32 %v581_v19, %v2774_v46 }
  0xfc   : > { %574 = vrot.lane.b32.xlu0 %v571_v29, %s2617_s19  ;;  %v626_v29 = vmul.f32 %v2874_v20, %v2844_v51 }
  0xfd   : > { %v589_v33 = vrot.slane %v2880_v24, 1 }
  0xff   : > { %v590_v39 = vsel %vm427_vm3, %v588_v32, %v589_v33 }
 0x103   : > { %616 = vrot.lane.b32.xlu1 %v613_v37, %s2618_s26  ;;  %532 = vrot.lane.b32.xlu2 %v529_v38, %s2616_s17  ;;  %v633_v37 = vrot.slane %v626_v29, 1  ;;  %v667_v38 = vmul.f32 %v665_v35, %v2774_v46  ;;  %v805_v29 = vstv %s2332_s25  ;;  %s2344_s25 = sld [smem:[#allocation7 + $0x47]] }
 0x104   : > { %614 = vrot.lane.b32.xlu0 %v611_v41, %s2618_s26  ;;  %v668_v41 = vmul.f32 %v665_v35, %v2844_v51  ;;  %v2965_v34 = vmul.f32 %v805_v29, %v2751_v30  ;;  %v745_v35 = vmul.f32 %v742_v53, %v2844_v51  ;;  %v247_v53 = vmul.f32 %v246_v28, %v2747_v26 }
 0x105   : > { %v634_v43 = vsel %vm427_vm3, %v631_v36, %v633_v37  ;;  %v673_v48 = vrot.slane %v667_v38, 1  ;;  %v827_v38 = vmul.f32 %v826_v25, %v2786_v52 }
 0x106   : > { %v675_v49 = vrot.slane %v668_v41, 1 }
 0x10b   : > { %656 = vrot.lane.b32.xlu1 %v653_v57, %s2619_s30  ;;  %572 = vrot.lane.b32.xlu2 %v569_v58, %s2617_s19  ;;  %v676_v57 = vsel %vm427_vm3, %v673_v48, %v675_v49  ;;  %v506_v58 = vsel %vm427_vm3, %v504_v50, %v505_v4  ;;  %v749_v4 = vrot.slane %v743_v55, 2  ;;  %v813_v49 = vrot.slane %v2965_v34, 2 }
 0x10c   : > { %700 = vrot.lane.b32.xlu0 %v697_v61, %s2620_s27  ;;  %v674_v61 = vsel %vm427_vm3, %v672_v54, %v673_v48  ;;  %v752_v50 = vrot.slane %v745_v35, 2  ;;  %v833_v54 = vrot.slane %v827_v38, 2  ;;  %v889_v35 = vstv %s2336_s7  ;;  %s2348_s7 = sld [smem:[#allocation7 + $0x49]] }
 0x10d   : > { %v751_v10 = vsel %vm714_vm4, %v749_v4, %v750_v5  ;;  %v891_v38 = vmul.f32 %v889_v35, %v2751_v30 }
 0x10e   : > { %v753_v4 = vsel %vm714_vm4, %v750_v5, %v752_v50  ;;  %v3032_v50 = vstv %s2337_s8  ;;  %s2349_s8 = sld [smem:[#allocation7 + $0x19]] }
 0x113   : > { %467 = vrot.lane.b32.xlu1 %v464_v7, %s2615_s14  ;;  %658 = vrot.lane.b32.xlu2 %v655_v8, %s2619_s30  ;;  %v771_v7 = vrot.slane %v765_v0, 2  ;;  %v784_v8 = vstv %s2331_s5  ;;  %s3047_s5 = sld [smem:[#allocation7 + $0x44]] }
 0x114   : > { %511 = vrot.lane.b32.xlu0 %v508_v11, %s2616_s17  ;;  %v592_v11 = vsel %vm427_vm3, %v589_v33, %v591_v6  ;;  %v2948_v16 = vmul.f32 %v784_v8, %v2774_v46  ;;  %v787_v17 = vmul.f32 %v784_v8, %v2844_v51  ;;  %v785_v6 = vmul.f32 %v784_v8, %v2786_v52 }
 0x115   : > { %v2872_v14 = vpop.permute.xlu2 %301  ;;  %v772_v15 = vsel %vm714_vm4, %v770_v9, %v771_v7 }
 0x116   : > { %v792_v23 = vrot.slane %v2948_v16, 2  ;;  %v794_v24 = vrot.slane %v787_v17, 2  ;;  %v3006_v17 = vstv %s2335_s6  ;;  %s2346_s6 = sld [smem:[#allocation7 + $0x48]] }
 0x118   : > { %v795_v37 = vsel %vm714_vm4, %v792_v23, %v794_v24 }
 0x11b   : > { %553 = vrot.lane.b32.xlu1 %v550_v22, %s2617_s19  ;;  %698 = vrot.lane.b32.xlu2 %v695_v21, %s2620_s27  ;;  %v773_v21 = vrot.slane %v766_v12, 2  ;;  %v630_v22 = vrot.slane %v624_v13, 1  ;;  %v836_v12 = vrot.slane %v829_v60, 2 }
 0x11c   : > { %551 = vrot.lane.b32.xlu0 %v548_v27, %s2617_s19  ;;  %v240_v27 = vstv %s2935_s16  ;;  %s3079_s16 = sld [smem:[#allocation7 + $0x45]] }
 0x11d   : > { %v2893_v31 = vpop.permute.xlu2 %327  ;;  %v774_v32 = vsel %vm714_vm4, %v771_v7, %v773_v21  ;;  %v632_v33 = vsel %vm427_vm3, %v630_v22, %v631_v36  ;;  %v242_v36 = vmul.f32 %v240_v27, %v2774_v46  ;;  %v241_v41 = vmul.f32 %v240_v27, %v2786_v52 }
 0x11e   : > { %v869_v27 = vmul.f32 %v3006_v17, %v2786_v52 }
 0x11f   : > { %v250_v56 = vadd.f32 %v248_v44, %v242_v36 }
 0x123   : > { %593 = vrot.lane.b32.xlu1 %v590_v39, %s2618_s26  ;;  %469 = vrot.lane.b32.xlu2 %v466_v40, %s2615_s14  ;;  %v828_v39 = vmul.f32 %v826_v25, %v2774_v46  ;;  %v806_v40 = vmul.f32 %v805_v29, %v2747_v26 }
 0x124   : > { %637 = vrot.lane.b32.xlu0 %v634_v43, %s2619_s30 }
 0x125   : > { %v2909_v45 = vpop.permute.xlu2 %385  ;;  %v2911_v47 = vpop.permute.xlu0 %271  ;;  %v834_v55 = vrot.slane %v828_v39, 2 }
 0x127   : > { %v835_v7 = vsel %vm714_vm4, %v833_v54, %v834_v55 }
 0x12b   : > { %679 = vrot.lane.b32.xlu1 %v676_v57, %s2620_s27  ;;  %509 = vrot.lane.b32.xlu2 %v506_v58, %s2616_s17  ;;  %v812_v57 = vrot.slane %v806_v40, 2  ;;  %v249_v58 = vadd.f32 %v247_v53, %v241_v41  ;;  %v892_v53 = vmul.f32 %v889_v35, %v2802_v62 }
 0x12c   : > { %677 = vrot.lane.b32.xlu0 %v674_v61, %s2620_s27  ;;  %v847_v61 = vstv %s2334_s3  ;;  %s2347_s3 = sld [smem:[#allocation7 + $0x18]] }
 0x12d   : > { %v2927_v1 = vpop.permute.xlu2 %411  ;;  %v2929_v63 = vpop.permute.xlu1 %273  ;;  %v814_v2 = vsel %vm714_vm4, %v812_v57, %v813_v49  ;;  %v2999_v9 = vmul.f32 %v847_v61, %v2751_v30 }
 0x12e   : > { %v2932_v3 = vpop.permute.xlu0 %329 }
 0x12f   : > { %v855_v21 = vrot.slane %v2999_v9, 2 }
 0x133   : > { %754 = vrot.lane.b32.xlu1 %v751_v10, %s2615_s14  ;;  %595 = vrot.lane.b32.xlu2 %v592_v11, %s2618_s26  ;;  %v850_v10 = vmul.f32 %v847_v61, %v2802_v62 }
 0x134   : > { %775 = vrot.lane.b32.xlu0 %v772_v15, %s2615_s14  ;;  %v791_v15 = vrot.slane %v785_v6, 2 }
 0x135   : > { %v2954_v18 = vpop.permute.xlu1 %299  ;;  %v258_v19 = vpop.permute.xlu2 %257  ;;  %v857_v22 = vrot.slane %v850_v10, 2 }
 0x136   : > { %v2956_v20 = vpop.permute.xlu0 %355  ;;  %v263_v11 = vadd.f32 %v258_v19, %v249_v58  ;;  %v837_v19 = vsel %vm714_vm4, %v834_v55, %v836_v12  ;;  %v913_v58 = vmul.f32 %v3032_v50, %v2844_v51 }
 0x138   : > { %v277_v24 = vadd.f32 %v2911_v47, %v263_v11  ;;  %v858_v47 = vsel %vm714_vm4, %v855_v21, %v857_v22  ;;  %v920_v11 = vrot.slane %v913_v58, 2 }
 0x13b   : > { %777 = vrot.lane.b32.xlu1 %v774_v32, %s2615_s14  ;;  %635 = vrot.lane.b32.xlu2 %v632_v33, %s2619_s30  ;;  %v3015_v32 = vmul.f32 %v3006_v17, %v2774_v46  ;;  %v793_v33 = vsel %vm714_vm4, %v791_v15, %v792_v23  ;;  %v875_v23 = vrot.slane %v869_v27, 2  ;;  %v438_v15 = vstv %s3034_s23  ;;  %s2351_s23 = sld [smem:[#allocation7 + $0x1a]] }
 0x13c   : > { %798 = vrot.lane.b32.xlu0 %v795_v37, %s2616_s17  ;;  %v808_v37 = vmul.f32 %v805_v29, %v2802_v62  ;;  %v890_v29 = vmul.f32 %v889_v35, %v2747_v26  ;;  %v440_v22 = vmul.f32 %v438_v15, %v2751_v30 }
 0x13d   : > { %v2980_v42 = vpop.permute.xlu1 %357  ;;  %v260_v43 = vpop.permute.xlu2 %259  ;;  %v876_v36 = vrot.slane %v3015_v32, 2 }
 0x13e   : > { %v2983_v48 = vpop.permute.xlu0 %413  ;;  %v264_v0 = vadd.f32 %v260_v43, %v250_v56  ;;  %v815_v44 = vrot.slane %v808_v37, 2  ;;  %v848_v56 = vmul.f32 %v847_v61, %v2747_v26  ;;  %v896_v57 = vrot.slane %v890_v29, 2 }
 0x140   : > { %v278_v8 = vadd.f32 %v2929_v63, %v264_v0  ;;  %v816_v61 = vsel %vm714_vm4, %v813_v49, %v815_v44  ;;  %v420_v0 = vstv %s3021_s20  ;;  %v854_v9 = vrot.slane %v848_v56, 2  ;;  %s2350_s20 = sld [smem:[#allocation7 + $0x4a]] }
 0x141   : > { %v423_v12 = vmul.f32 %v420_v0, %v2844_v51  ;;  %v421_v27 = vmul.f32 %v420_v0, %v2786_v52 }
 0x143   : > { %817 = vrot.lane.b32.xlu1 %v814_v2, %s2616_s17  ;;  %756 = vrot.lane.b32.xlu2 %v753_v4, %s2615_s14  ;;  %v899_v4 = vrot.slane %v892_v53, 2  ;;  %v431_v37 = vrot.slane %v423_v12, 1 }
 0x144   : > { %838 = vrot.lane.b32.xlu0 %v835_v7, %s2617_s19 }
 0x145   : > { %v3003_v59 = vpop.permute.xlu1 %383  ;;  %v286_v5 = vpop.permute.xlu2 %285 }
 0x146   : > { %v288_v13 = vpop.permute.xlu0 %287  ;;  %v291_v63 = vadd.f32 %v286_v5, %v277_v24  ;;  %v422_v5 = vmul.f32 %v420_v0, %v2774_v46  ;;  %v441_v24 = vmul.f32 %v438_v15, %v2802_v62 }
 0x147   : > { %v292_v25 = vadd.f32 %v288_v13, %v278_v8 }
 0x148   : > { %v305_v40 = vadd.f32 %v2954_v18, %v291_v63  ;;  %v3043_v18 = vmul.f32 %v3032_v50, %v2774_v46  ;;  %v952_v63 = vstv %s3039_s28  ;;  %v429_v35 = vrot.slane %v422_v5, 1  ;;  %s3240_s28 = sld [smem:[#allocation7 + $0xe]] }
 0x149   : > { %v306_v39 = vadd.f32 %v2872_v14, %v292_v25  ;;  %v897_v14 = vrot.slane %v891_v38, 2  ;;  %v439_v38 = vmul.f32 %v438_v15, %v2747_v26  ;;  %v954_v29 = vmul.f32 %v952_v63, %v2774_v46 }
 0x14a   : > { %v918_v49 = vrot.slane %v3043_v18, 2  ;;  %v432_v53 = vsel %vm427_vm3, %v429_v35, %v431_v37 }
 0x14b   : > { %840 = vrot.lane.b32.xlu1 %v837_v19, %s2617_s19  ;;  %796 = vrot.lane.b32.xlu2 %v793_v33, %s2616_s17  ;;  %v898_v2 = vsel %vm714_vm4, %v896_v57, %v897_v14 }
 0x14c   : > { %861 = vrot.lane.b32.xlu0 %v858_v47, %s2617_s19  ;;  %v921_v33 = vsel %vm714_vm4, %v918_v49, %v920_v11  ;;  %v3077_v47 = vstv %s3047_s5  ;;  %s3251_s5 = sld [smem:[#allocation7 + $0x3f]] }
 0x14d   : > { %v316_v16 = vpop.permute.xlu1 %315  ;;  %v344_v28 = vpop.permute.xlu2 %343  ;;  %v934_v37 = vmul.f32 %v3077_v47, %v2802_v62 }
 0x14e   : > { %v320_v41 = vadd.f32 %v316_v16, %v306_v39  ;;  %v314_v43 = vpop.permute.xlu0 %313  ;;  %v871_v39 = vmul.f32 %v3006_v17, %v2844_v51  ;;  %v446_v16 = vrot.slane %v440_v22, 1  ;;  %v932_v17 = vmul.f32 %v3077_v47, %v2747_v26 }
 0x14f   : > { %v319_v55 = vadd.f32 %v314_v43, %v305_v40  ;;  %v428_v43 = vrot.slane %v421_v27, 1 }
 0x150   : > { %v334_v54 = vadd.f32 %v2932_v3, %v320_v41  ;;  %v877_v3 = vsel %vm714_vm4, %v875_v23, %v876_v36  ;;  %v953_v23 = vmul.f32 %v952_v63, %v2786_v52  ;;  %v878_v57 = vrot.slane %v871_v39, 2 }
 0x151   : > { %v333_v7 = vadd.f32 %v2893_v31, %v319_v55  ;;  %v856_v31 = vsel %vm714_vm4, %v854_v9, %v855_v21  ;;  %v430_v0 = vsel %vm427_vm3, %v428_v43, %v429_v35  ;;  %v911_v9 = vmul.f32 %v3032_v50, %v2786_v52 }
 0x152   : > { %v348_v60 = vadd.f32 %v344_v28, %v334_v54  ;;  %v448_v28 = vrot.slane %v441_v24, 1  ;;  %v1050_v35 = vstv %s2344_s25  ;;  %s3309_s25 = sld [smem:[#allocation7 + $0x4c]] }
 0x153   : > { %880 = vrot.lane.b32.xlu1 %v877_v3, %s2618_s26  ;;  %819 = vrot.lane.b32.xlu2 %v816_v61, %s2616_s17  ;;  %v1051_v39 = vmul.f32 %v1050_v35, %v2747_v26 }
 0x154   : > { %v362_v6 = vadd.f32 %v2980_v42, %v348_v60  ;;  %901 = vrot.lane.b32.xlu0 %v898_v2, %s2618_s26  ;;  %v900_v42 = vsel %vm714_vm4, %v897_v14, %v899_v4  ;;  %v960_v60 = vrot.slane %v954_v29, 2  ;;  %v449_v3 = vsel %vm427_vm3, %v446_v16, %v448_v28 }
 0x155   : > { %v342_v10 = vpop.permute.xlu1 %341  ;;  %v370_v34 = vpop.permute.xlu2 %369  ;;  %v938_v2 = vrot.slane %v932_v17, 2 }
 0x156   : > { %v347_v8 = vadd.f32 %v342_v10, %v333_v7  ;;  %v372_v13 = vpop.permute.xlu0 %371  ;;  %v973_v7 = vstv %s3079_s16  ;;  %s3253_s16 = sld [smem:[#allocation7 + $0x4b]] }
 0x157   : > { %v376_v19 = vadd.f32 %v372_v13, %v362_v6  ;;  %v955_v6 = vmul.f32 %v952_v63, %v2844_v51  ;;  %v3116_v11 = vmul.f32 %v973_v7, %v2751_v30  ;;  %v976_v50 = vmul.f32 %v973_v7, %v2802_v62 }
 0x158   : > { %v361_v25 = vadd.f32 %v2956_v20, %v347_v8  ;;  %v3084_v20 = vmul.f32 %v3077_v47, %v2751_v30 }
 0x159   : > { %v390_v41 = vadd.f32 %v2909_v45, %v376_v19  ;;  %v959_v45 = vrot.slane %v953_v23, 2  ;;  %v962_v15 = vrot.slane %v955_v6, 2  ;;  %v981_v22 = vrot.slane %v3116_v11, 2 }
 0x15a   : > { %v375_v21 = vadd.f32 %v370_v34, %v361_v25  ;;  %v939_v56 = vrot.slane %v3084_v20, 2  ;;  %v983_v24 = vrot.slane %v976_v50, 2  ;;  %v1029_v25 = vstv %s2343_s24  ;;  %s3256_s24 = sld [smem:[#allocation7 + $0x1b]] }
 0x15b   : > { %903 = vrot.lane.b32.xlu1 %v900_v42, %s2618_s26  ;;  %859 = vrot.lane.b32.xlu2 %v856_v31, %s2617_s19  ;;  %v961_v5 = vsel %vm714_vm4, %v959_v45, %v960_v60  ;;  %v917_v42 = vrot.slane %v911_v9, 2  ;;  %v963_v19 = vsel %vm714_vm4, %v960_v60, %v962_v15  ;;  %v1030_v63 = vmul.f32 %v1029_v25, %v2786_v52 }
 0x15c   : > { %v389_v40 = vadd.f32 %v3003_v59, %v375_v21  ;;  %924 = vrot.lane.b32.xlu0 %v921_v33, %s2619_s30  ;;  %v445_v59 = vrot.slane %v439_v38, 1  ;;  %v940_v34 = vsel %vm714_vm4, %v938_v2, %v939_v56  ;;  %v3141_v33 = vmul.f32 %v1029_v25, %v2774_v46 }
 0x15d   : > { %v400_v44 = vpop.permute.xlu1 %399  ;;  %v3097_v14 = vpop.permute.xlu2 %532  ;;  %v919_v27 = vsel %vm714_vm4, %v917_v42, %v918_v49  ;;  %v984_v21 = vsel %vm714_vm4, %v981_v22, %v983_v24  ;;  %v1052_v38 = vmul.f32 %v1050_v35, %v2751_v30  ;;  %v1036_v28 = vrot.slane %v1030_v63, 3 }
 0x15e   : > { %v404_v54 = vadd.f32 %v400_v44, %v390_v41  ;;  %v398_v55 = vpop.permute.xlu0 %397  ;;  %v447_v8 = vsel %vm427_vm3, %v445_v59, %v446_v16  ;;  %v1037_v47 = vrot.slane %v3141_v33, 3  ;;  %v941_v23 = vrot.slane %v934_v37, 2 }
 0x15f   : > { %v403_v58 = vadd.f32 %v398_v55, %v389_v40  ;;  %v1058_v29 = vrot.slane %v1052_v38, 3  ;;  %v1071_v40 = vstv %s2345_s29  ;;  %v1057_v41 = vrot.slane %v1051_v39, 3  ;;  %s3324_s29 = sld [smem:[#allocation7 + $0x1d]] }
 0x160   : > { %v418_v61 = vadd.f32 %v2983_v48, %v404_v54  ;;  %v879_v48 = vsel %vm714_vm4, %v876_v36, %v878_v57  ;;  %v1038_v43 = vsel %vm1001_vm5, %v1036_v28, %v1037_v47  ;;  %v942_v17 = vsel %vm714_vm4, %v939_v56, %v941_v23 }
 0x161   : > { %v417_v4 = vadd.f32 %v2927_v1, %v403_v58  ;;  %v1053_v44 = vmul.f32 %v1050_v35, %v2802_v62  ;;  %v3167_v54 = vmul.f32 %v1071_v40, %v2774_v46  ;;  %v1074_v55 = vmul.f32 %v1071_v40, %v2844_v51 }
 0x162   : > { %v436_v10 = vadd.f32 %v432_v53, %v418_v61  ;;  %v1059_v53 = vsel %vm1001_vm5, %v1057_v41, %v1058_v29  ;;  %v974_v57 = vmul.f32 %v973_v7, %v2747_v26  ;;  %v1113_v61 = vstv %s2347_s3  ;;  %s2358_s3 = sld [smem:[#allocation7 + $0x4e]] }
 0x163   : > { %v435_v1 = vadd.f32 %v430_v0, %v417_v4  ;;  %943 = vrot.lane.b32.xlu1 %v940_v34, %s2619_s30  ;;  %882 = vrot.lane.b32.xlu2 %v879_v48, %s2618_s26  ;;  %v1060_v58 = vrot.slane %v1053_v44, 3  ;;  %v1079_v45 = vrot.slane %v3167_v54, 3  ;;  %v1081_v60 = vrot.slane %v1074_v55, 3 }
 0x164   : > { %v3122_v12 = vadd.f32 %v449_v3, %v436_v10  ;;  %964 = vrot.lane.b32.xlu0 %v961_v5, %s2620_s27  ;;  %v980_v3 = vrot.slane %v974_v57, 2  ;;  %v1092_v0 = vstv %s2346_s6  ;;  %v1032_v7 = vmul.f32 %v1029_v25, %v2844_v51  ;;  %s2359_s6 = sld [smem:[#allocation7 + $0x1e]] }
 0x165   : > { %v3126_v32 = vadd.f32 %v447_v8, %v435_v1  ;;  %v3128_v36 = vpop.permute.xlu1 %490  ;;  %v3130_v13 = vpop.permute.xlu2 %572  ;;  %v1061_v2 = vsel %vm1001_vm5, %v1058_v29, %v1060_v58  ;;  %v3182_v6 = vmul.f32 %v1092_v0, %v2751_v30  ;;  %v1082_v9 = vsel %vm1001_vm5, %v1079_v45, %v1081_v60 }
 0x166   : > { %v3132_v31 = vpop.permute.xlu0 %488  ;;  %v982_v4 = vsel %vm714_vm4, %v980_v3, %v981_v22  ;;  %v1114_v10 = vmul.f32 %v1113_v61, %v2786_v52  ;;  %v1115_v34 = vmul.f32 %v1113_v61, %v2774_v46  ;;  %v1093_v48 = vmul.f32 %v1092_v0, %v2747_v26 }
 0x167   : > { %v1100_v50 = vrot.slane %v3182_v6, 3  ;;  %v1039_v8 = vrot.slane %v1032_v7, 3  ;;  %v1116_v25 = vmul.f32 %v1113_v61, %v2844_v51  ;;  %v3220_v23 = vstv %s2349_s8  ;;  %s2360_s8 = sld [smem:[#allocation7 + $0x4f]] }
 0x168   : > { %v1120_v15 = vrot.slane %v1114_v10, 3  ;;  %v1121_v42 = vrot.slane %v1115_v34, 3  ;;  %v1099_v24 = vrot.slane %v1093_v48, 3  ;;  %v1176_v54 = vstv %s2350_s20  ;;  %s2362_s20 = sld [smem:[#allocation7 + $0x50]] }
 0x169   : > { %v1123_v38 = vrot.slane %v1116_v25, 3  ;;  %v3231_v57 = vmul.f32 %v3220_v23, %v2774_v46  ;;  %v1095_v58 = vmul.f32 %v1092_v0, %v2802_v62  ;;  %v3244_v46 = vld [vmem:[#allocation2 + $0x18] sm:$0xff]  ;;  %v1179_v0 = vmul.f32 %v1176_v54, %v2802_v62 }
 0x16a   : > { %v1101_v26 = vsel %vm1001_vm5, %v1099_v24, %v1100_v50  ;;  %v1122_v63 = vsel %vm1001_vm5, %v1120_v15, %v1121_v42  ;;  %v3249_v10 = vstv %s2351_s23  ;;  %s2363_s23 = sld [smem:[#allocation7 + $0x20]] }
 0x16b   : > { %966 = vrot.lane.b32.xlu1 %v963_v19, %s2620_s27  ;;  %922 = vrot.lane.b32.xlu2 %v919_v27, %s2619_s30  ;;  %v3204_v19 = vstv %s2348_s7  ;;  %v1072_v27 = vmul.f32 %v1071_v40, %v2786_v52  ;;  %v1124_v44 = vsel %vm1001_vm5, %v1121_v42, %v1123_v38  ;;  %v1163_v7 = vrot.slane %v3231_v57, 3  ;;  %s2361_s7 = sld [smem:[#allocation7 + $0x1f]] }
 0x16c   : > { %987 = vrot.lane.b32.xlu0 %v984_v21, %s2620_s27  ;;  %v1137_v35 = vmul.f32 %v3204_v19, %v2802_v62  ;;  %v1200_v42 = vmul.f32 %v3249_v10, %v2844_v51 }
 0x16d   : > { %v3150_v18 = vpop.permute.xlu1 %530  ;;  %v3152_v49 = vpop.permute.xlu2 %658 }
 0x16e   : > { %v3155_v16 = vpop.permute.xlu0 %574  ;;  %v1144_v41 = vrot.slane %v1137_v35, 3 }
 0x173   : > { %1041 = vrot.lane.b32.xlu1 %v1038_v43, %s2615_s14  ;;  %945 = vrot.lane.b32.xlu2 %v942_v17, %s2619_s30 }
 0x174   : > { %1062 = vrot.lane.b32.xlu0 %v1059_v53, %s2615_s14  ;;  %v1156_v53 = vmul.f32 %v3220_v23, %v2786_v52 }
 0x175   : > { %v3172_v20 = vpop.permute.xlu1 %616  ;;  %v3174_v56 = vpop.permute.xlu2 %698 }
 0x176   : > { %v3176_v59 = vpop.permute.xlu0 %614  ;;  %v1162_v61 = vrot.slane %v1156_v53, 3 }
 0x17b   : > { %1064 = vrot.lane.b32.xlu1 %v1061_v2, %s2615_s14  ;;  %985 = vrot.lane.b32.xlu2 %v982_v4, %s2620_s27 }
 0x17c   : > { %1085 = vrot.lane.b32.xlu0 %v1082_v9, %s2616_s17  ;;  %v1102_v9 = vrot.slane %v1095_v58, 3 }
 0x17d   : > { %v3192_v11 = vpop.permute.xlu1 %656  ;;  %v470_v30 = vpop.permute.xlu2 %469 }
 0x17e   : > { %v474_v1 = vadd.f32 %v470_v30, %v3122_v12  ;;  %v3195_v5 = vpop.permute.xlu0 %700  ;;  %v1040_v12 = vsel %vm1001_vm5, %v1037_v47, %v1039_v8  ;;  %v1078_v47 = vrot.slane %v1072_v27, 3  ;;  %v3259_v8 = vld [vmem:[#allocation2 + $0x8] sm:$0xff]  ;;  %v1103_v24 = vsel %vm1001_vm5, %v1100_v50, %v1102_v9 }
 0x17f   : > { %v3263_v15 = vmul.f32 %v3259_v8, %v3249_v10 }
 0x180   : > { %v495_v22 = vadd.f32 %v3128_v36, %v474_v1  ;;  %v3210_v36 = vld [vmem:[#allocation2 + $0x20] sm:$0xff]  ;;  %v1080_v55 = vsel %vm1001_vm5, %v1078_v47, %v1079_v45  ;;  %v1177_v45 = vmul.f32 %v3244_v46, %v1176_v54  ;;  %v1186_v1 = vrot.slane %v1179_v0, 3 }
 0x181   : > { %v3214_v33 = vmul.f32 %v3210_v36, %v3204_v19  ;;  %v1178_v52 = vmul.f32 %v3210_v36, %v1176_v54  ;;  %v3286_v47 = vld [vmem:[#allocation2] sm:$0xff]  ;;  %v1239_v54 = vstv %s3256_s24  ;;  %s2365_s24 = sld [smem:[#allocation7 + $0x21]] }
 0x182   : > { %v1183_v30 = vrot.slane %v1177_v45, 3 }
 0x183   : > { %1104 = vrot.lane.b32.xlu1 %v1101_v26, %s2616_s17  ;;  %1043 = vrot.lane.b32.xlu2 %v1040_v12, %s2615_s14  ;;  %v1142_v40 = vrot.slane %v3214_v33, 3  ;;  %v1184_v34 = vrot.slane %v1178_v52, 3  ;;  %v707_v26 = vstv %s3240_s28  ;;  %s2364_s28 = sld [smem:[#allocation7 + $0x51]] }
 0x184   : > { %1125 = vrot.lane.b32.xlu0 %v1122_v63, %s2617_s19  ;;  %v1205_v63 = vrot.slane %v3263_v15, 3  ;;  %v709_v38 = vmul.f32 %v3259_v8, %v707_v26 }
 0x185   : > { %v468_v37 = vpop.permute.xlu1 %467  ;;  %v510_v21 = vpop.permute.xlu2 %509  ;;  %v1185_v25 = vsel %vm1001_vm5, %v1183_v30, %v1184_v34  ;;  %v1187_v50 = vsel %vm1001_vm5, %v1184_v34, %v1186_v1 }
 0x186   : > { %v473_v39 = vadd.f32 %v468_v37, %v3126_v32  ;;  %v512_v28 = vpop.permute.xlu0 %511  ;;  %v716_v52 = vrot.slane %v709_v38, 2 }
 0x187   : > { %v516_v29 = vadd.f32 %v512_v28, %v495_v22 }
 0x188   : > { %v494_v43 = vadd.f32 %v3132_v31, %v473_v39  ;;  %v710_v39 = vmul.f32 %v707_v26, %v2844_v51 }
 0x189   : > { %v537_v17 = vadd.f32 %v3097_v14, %v516_v29  ;;  %v1145_v14 = vsel %vm1001_vm5, %v1142_v40, %v1144_v41  ;;  %v708_v29 = vmul.f32 %v3286_v47, %v707_v26  ;;  %v3290_v41 = vstv %s3253_s16  ;;  %s2342_s16 = sld [smem:[#allocation7 + $0x46]] }
 0x18a   : > { %v515_v32 = vadd.f32 %v510_v21, %v494_v43  ;;  %v1219_v33 = vmul.f32 %v3244_v46, %v3290_v41 }
 0x18b   : > { %1127 = vrot.lane.b32.xlu1 %v1124_v44, %s2617_s19  ;;  %1083 = vrot.lane.b32.xlu2 %v1080_v55, %s2616_s17  ;;  %v3294_v44 = vld [vmem:[#allocation2 + $0x28] sm:$0x3f]  ;;  %v715_v45 = vrot.slane %v708_v29, 2  ;;  %v1316_v29 = vstv %s3324_s29  ;;  %s2366_s29 = sld [smem:[#allocation7 + $0x52]] }
 0x18c   : > { %v536_v31 = vadd.f32 %v3150_v18, %v515_v32  ;;  %1148 = vrot.lane.b32.xlu0 %v1145_v14, %s2617_s19 }
 0x18d   : > { %v554_v60 = vpop.permute.xlu1 %553  ;;  %v596_v3 = vpop.permute.xlu2 %595 }
 0x18e   : > { %v558_v2 = vadd.f32 %v554_v60, %v537_v17  ;;  %v552_v4 = vpop.permute.xlu0 %551  ;;  %v1241_v60 = vmul.f32 %v3259_v8, %v1239_v54 }
 0x18f   : > { %v557_v18 = vadd.f32 %v552_v4, %v536_v31  ;;  %v718_v31 = vrot.slane %v710_v39, 2 }
 0x190   : > { %v579_v48 = vadd.f32 %v3155_v16, %v558_v2  ;;  %v1164_v16 = vsel %vm1001_vm5, %v1162_v61, %v1163_v7 }
 0x191   : > { %v578_v62 = vadd.f32 %v3130_v13, %v557_v18  ;;  %v1135_v13 = vmul.f32 %v3244_v46, %v3204_v19  ;;  %v1207_v19 = vrot.slane %v1200_v42, 3  ;;  %v719_v18 = vsel %vm714_vm4, %v716_v52, %v718_v31 }
 0x192   : > { %v600_v22 = vadd.f32 %v596_v3, %v579_v48  ;;  %v1247_v42 = vrot.slane %v1241_v60, 3  ;;  %v1221_v31 = vmul.f32 %v3294_v44, %v3290_v41 }
 0x193   : > { %1167 = vrot.lane.b32.xlu1 %v1164_v16, %s2618_s26  ;;  %1106 = vrot.lane.b32.xlu2 %v1103_v24, %s2616_s17  ;;  %v1141_v21 = vrot.slane %v1135_v13, 3  ;;  %v1208_v55 = vsel %vm1001_vm5, %v1205_v63, %v1207_v19  ;;  %v717_v24 = vsel %vm714_vm4, %v715_v45, %v716_v52  ;;  %v1337_v52 = vstv %s2358_s3  ;;  %s3481_s3 = sld [smem:[#allocation7 + $0x53]] }
 0x194   : > { %v621_v12 = vadd.f32 %v3172_v20, %v600_v22  ;;  %1188 = vrot.lane.b32.xlu0 %v1185_v25, %s2618_s26  ;;  %v725_v20 = vstv %s3251_s5  ;;  %s2341_s5 = sld [smem:[#allocation7 + $0x15]] }
 0x195   : > { %v594_v27 = vpop.permute.xlu1 %593  ;;  %v636_v6 = vpop.permute.xlu2 %635  ;;  %v727_v17 = vmul.f32 %v3210_v36, %v725_v20  ;;  %v728_v53 = vmul.f32 %v3294_v44, %v725_v20  ;;  %v1143_v58 = vsel %vm1001_vm5, %v1141_v21, %v1142_v40  ;;  %v1240_v40 = vmul.f32 %v3286_v47, %v1239_v54 }
 0x196   : > { %v599_v35 = vadd.f32 %v594_v27, %v578_v62  ;;  %v638_v37 = vpop.permute.xlu0 %637  ;;  %v3335_v27 = vstv %s3309_s25  ;;  %s3445_s25 = sld [smem:[#allocation7 + $0x22]] }
 0x197   : > { %v642_v28 = vadd.f32 %v638_v37, %v621_v12  ;;  %v733_v61 = vrot.slane %v727_v17, 2  ;;  %v735_v0 = vrot.slane %v728_v53, 2  ;;  %v1246_v1 = vrot.slane %v1240_v40, 3 }
 0x198   : > { %v620_v43 = vadd.f32 %v3176_v59, %v599_v35  ;;  %v3307_v59 = vmul.f32 %v3210_v36, %v3290_v41  ;;  %v1242_v12 = vmul.f32 %v1239_v54, %v2844_v51  ;;  %v1263_v57 = vmul.f32 %v3294_v44, %v3335_v27 }
 0x199   : > { %v663_v32 = vadd.f32 %v3152_v49, %v642_v28  ;;  %v1158_v49 = vmul.f32 %v3220_v23, %v2844_v51  ;;  %v726_v23 = vmul.f32 %v3244_v46, %v725_v20  ;;  %v736_v22 = vsel %vm714_vm4, %v733_v61, %v735_v0 }
 0x19a   : > { %v641_v14 = vadd.f32 %v636_v6, %v620_v43  ;;  %v1226_v9 = vrot.slane %v3307_v59, 3  ;;  %v1248_v51 = vsel %vm1001_vm5, %v1246_v1, %v1247_v42  ;;  %v1249_v38 = vrot.slane %v1242_v12, 3 }
 0x19b   : > { %1190 = vrot.lane.b32.xlu1 %v1187_v50, %s2618_s26  ;;  %1146 = vrot.lane.b32.xlu2 %v1143_v58, %s2617_s19  ;;  %v1165_v30 = vrot.slane %v1158_v49, 3  ;;  %v732_v13 = vrot.slane %v726_v23, 2  ;;  %v1270_v53 = vrot.slane %v1263_v57, 3  ;;  %v1338_v40 = vmul.f32 %v3244_v46, %v1337_v52 }
 0x19c   : > { %v662_v3 = vadd.f32 %v3192_v11, %v641_v14  ;;  %1211 = vrot.lane.b32.xlu0 %v1208_v55, %s2619_s30  ;;  %v1225_v11 = vrot.slane %v1219_v33, 3  ;;  %v1317_v55 = vmul.f32 %v3286_v47, %v1316_v29  ;;  %v3361_v14 = vmul.f32 %v3259_v8, %v1316_v29 }
 0x19d   : > { %v680_v2 = vpop.permute.xlu1 %679  ;;  %v757_v4 = vpop.permute.xlu2 %756  ;;  %v1166_v50 = vsel %vm1001_vm5, %v1163_v7, %v1165_v30  ;;  %v734_v35 = vsel %vm714_vm4, %v732_v13, %v733_v61  ;;  %v1339_v33 = vmul.f32 %v3210_v36, %v1337_v52  ;;  %v1228_v0 = vrot.slane %v1221_v31, 3 }
 0x19e   : > { %v684_v34 = vadd.f32 %v680_v2, %v663_v32  ;;  %v678_v48 = vpop.permute.xlu0 %677  ;;  %v1227_v26 = vsel %vm1001_vm5, %v1225_v11, %v1226_v9  ;;  %v1250_v32 = vsel %vm1001_vm5, %v1247_v42, %v1249_v38  ;;  %v1323_v61 = vrot.slane %v1317_v55, 4  ;;  %v3383_v42 = vld [vmem:[#allocation2 + $0x10] sm:$0x3f] }
 0x19f   : > { %v683_v62 = vadd.f32 %v678_v48, %v662_v3  ;;  %v1324_v41 = vrot.slane %v3361_v14, 4  ;;  %v1345_v23 = vrot.slane %v1339_v33, 4  ;;  %v1261_v59 = vmul.f32 %v3244_v46, %v3335_v27 }
 0x1a0   : > { %v705_v16 = vadd.f32 %v3195_v5, %v684_v34  ;;  %v3342_v5 = vmul.f32 %v3210_v36, %v3335_v27  ;;  %v1340_v34 = vmul.f32 %v3294_v44, %v1337_v52 }
 0x1a1   : > { %v704_v25 = vadd.f32 %v3174_v56, %v683_v62  ;;  %v1198_v56 = vmul.f32 %v3286_v47, %v3249_v10  ;;  %v1325_v30 = vsel %vm1288_vm6, %v1323_v61, %v1324_v41  ;;  %v1229_v62 = vsel %vm1001_vm5, %v1226_v9, %v1228_v0 }
 0x1a2   : > { %v723_v6 = vadd.f32 %v719_v18, %v705_v16  ;;  %v1268_v17 = vrot.slane %v3342_v5, 3  ;;  %v1344_v18 = vrot.slane %v1338_v40, 4  ;;  %v1400_v5 = vstv %s2361_s7  ;;  %s2372_s7 = sld [smem:[#allocation7 + $0x55]] }
 0x1a3   : > { %v722_v19 = vadd.f32 %v717_v24, %v704_v25  ;;  %1230 = vrot.lane.b32.xlu1 %v1227_v26, %s2619_s30  ;;  %1169 = vrot.lane.b32.xlu2 %v1166_v50, %s2618_s26  ;;  %v1204_v20 = vrot.slane %v1198_v56, 3  ;;  %v1347_v24 = vrot.slane %v1340_v34, 4  ;;  %v1267_v50 = vrot.slane %v1261_v59, 3 }
 0x1a4   : > { %v740_v7 = vadd.f32 %v736_v22, %v723_v6  ;;  %1251 = vrot.lane.b32.xlu0 %v1248_v51, %s2620_s27  ;;  %v1271_v45 = vsel %vm1001_vm5, %v1268_v17, %v1270_v53  ;;  %v1346_v11 = vsel %vm1288_vm6, %v1344_v18, %v1345_v23  ;;  %v1403_v55 = vmul.f32 %v3383_v42, %v1400_v5 }
 0x1a5   : > { %v739_v37 = vadd.f32 %v734_v35, %v722_v19  ;;  %v755_v21 = vpop.permute.xlu1 %754  ;;  %v797_v10 = vpop.permute.xlu2 %796  ;;  %v1206_v58 = vsel %vm1001_vm5, %v1204_v20, %v1205_v63  ;;  %v1348_v56 = vsel %vm1288_vm6, %v1345_v23, %v1347_v24  ;;  %v1379_v19 = vstv %s2360_s8  ;;  %s2373_s8 = sld [smem:[#allocation7 + $0x25]] }
 0x1a6   : > { %v761_v39 = vadd.f32 %v757_v4, %v740_v7  ;;  %v776_v28 = vpop.permute.xlu0 %775  ;;  %v1358_v4 = vstv %s2359_s6  ;;  %v1269_v57 = vsel %vm1001_vm5, %v1267_v50, %v1268_v17  ;;  %v3393_v27 = vmul.f32 %v3210_v36, %v1379_v19  ;;  %s2371_s6 = sld [smem:[#allocation7 + $0x24]] }
 0x1a7   : > { %v760_v43 = vadd.f32 %v755_v21, %v739_v37  ;;  %v3381_v1 = vmul.f32 %v3259_v8, %v1358_v4  ;;  %v1361_v22 = vmul.f32 %v3383_v42, %v1358_v4  ;;  %v1319_v7 = vmul.f32 %v3383_v42, %v1316_v29 }
 0x1a8   : > { %v1401_v37 = vmul.f32 %v3286_v47, %v1400_v5  ;;  %v1402_v21 = vmul.f32 %v3259_v8, %v1400_v5  ;;  %v1387_v29 = vrot.slane %v3393_v27, 4  ;;  %v3422_v0 = vstv %s2363_s23  ;;  %s2375_s23 = sld [smem:[#allocation7 + $0x26]] }
 0x1a9   : > { %v781_v54 = vadd.f32 %v776_v28, %v760_v43  ;;  %v1366_v26 = vrot.slane %v3381_v1, 4  ;;  %v1368_v12 = vrot.slane %v1361_v22, 4  ;;  %v1326_v43 = vrot.slane %v1319_v7, 4 }
 0x1aa   : > { %v1407_v17 = vrot.slane %v1401_v37, 4  ;;  %v1408_v53 = vrot.slane %v1402_v21, 4  ;;  %v1443_v34 = vmul.f32 %v3286_v47, %v3422_v0  ;;  %v1382_v1 = vmul.f32 %v3294_v44, %v1379_v19 }
 0x1ab   : > { %v802_v49 = vadd.f32 %v797_v10, %v781_v54  ;;  %1253 = vrot.lane.b32.xlu1 %v1250_v32, %s2620_s27  ;;  %1209 = vrot.lane.b32.xlu2 %v1206_v58, %s2619_s30  ;;  %v1369_v35 = vsel %vm1288_vm6, %v1366_v26, %v1368_v12  ;;  %v1380_v10 = vmul.f32 %v3244_v46, %v1379_v19  ;;  %v3405_v58 = vstv %s2362_s20  ;;  %s2374_s20 = sld [smem:[#allocation7 + $0x56]] }
 0x1ac   : > { %1274 = vrot.lane.b32.xlu0 %v1271_v45, %s2620_s27  ;;  %v1327_v31 = vsel %vm1288_vm6, %v1324_v41, %v1326_v43  ;;  %v1409_v45 = vsel %vm1288_vm6, %v1407_v17, %v1408_v53  ;;  %v3417_v33 = vmul.f32 %v3210_v36, %v3405_v58  ;;  %v1449_v24 = vrot.slane %v1443_v34, 4 }
 0x1ad   : > { %v778_v15 = vpop.permute.xlu1 %777  ;;  %v820_v63 = vpop.permute.xlu2 %819  ;;  %v1386_v32 = vrot.slane %v1380_v10, 4  ;;  %v994_v50 = vstv %s2341_s5  ;;  %v1012_v19 = vstv %s2342_s16  ;;  %v1422_v27 = vmul.f32 %v3244_v46, %v3405_v58  ;;  %s2377_s5 = sld [smem:[#allocation7 + $0x27]] }
 0x1ae   : > { %v782_v60 = vadd.f32 %v778_v15, %v761_v39  ;;  %v799_v3 = vpop.permute.xlu0 %798  ;;  %v1424_v15 = vmul.f32 %v3294_v44, %v3405_v58  ;;  %v1429_v23 = vrot.slane %v3417_v33, 4  ;;  %v995_v7 = vmul.f32 %v3286_v47, %v994_v50  ;;  %s2378_s16 = sld [smem:[#allocation7 + $0x58]] }
 0x1af   : > { %v1388_v52 = vsel %vm1288_vm6, %v1386_v32, %v1387_v29  ;;  %v1445_v34 = vmul.f32 %v3383_v42, %v3422_v0 }
 0x1b0   : > { %v803_v2 = vadd.f32 %v799_v3, %v782_v60  ;;  %v1410_v60 = vrot.slane %v1403_v55, 4 }
 0x1b2   : > { %v824_v48 = vadd.f32 %v820_v63, %v803_v2  ;;  %v1431_v2 = vrot.slane %v1424_v15, 4  ;;  %v1411_v18 = vsel %vm1288_vm6, %v1408_v53, %v1410_v60  ;;  %v1002_v53 = vrot.slane %v995_v7, 3 }
 0x1b3   : > { %1328 = vrot.lane.b32.xlu1 %v1325_v30, %s2615_s14  ;;  %1232 = vrot.lane.b32.xlu2 %v1229_v62, %s2619_s30  ;;  %v1526_v60 = vstv %s3445_s25  ;;  %s2355_s25 = sld [smem:[#allocation7 + $0x1c]] }
 0x1b4   : > { %1349 = vrot.lane.b32.xlu0 %v1346_v11, %s2615_s14  ;;  %v1463_v11 = vstv %s2364_s28  ;;  %v1432_v22 = vsel %vm1288_vm6, %v1429_v23, %v1431_v2  ;;  %v1527_v33 = vmul.f32 %v3286_v47, %v1526_v60  ;;  %s2376_s28 = sld [smem:[#allocation7 + $0x57]] }
 0x1b5   : > { %v818_v16 = vpop.permute.xlu1 %817  ;;  %v860_v9 = vpop.permute.xlu2 %859  ;;  %v1465_v59 = vmul.f32 %v3210_v36, %v1463_v11  ;;  %v1466_v37 = vmul.f32 %v3294_v44, %v1463_v11 }
 0x1b6   : > { %v823_v13 = vadd.f32 %v818_v16, %v802_v49  ;;  %v839_v25 = vpop.permute.xlu0 %838  ;;  %v1359_v49 = vmul.f32 %v3286_v47, %v1358_v4 }
 0x1b7   : > { %v1471_v5 = vrot.slane %v1465_v59, 4  ;;  %v1473_v32 = vrot.slane %v1466_v37, 4  ;;  %v1547_v37 = vstv %s3481_s3  ;;  %s3606_s3 = sld [smem:[#allocation7 + $0x59]] }
 0x1b8   : > { %v844_v6 = vadd.f32 %v839_v25, %v823_v13  ;;  %v1365_v41 = vrot.slane %v1359_v49, 4  ;;  %v1464_v13 = vmul.f32 %v3244_v46, %v1463_v11 }
 0x1ba   : > { %v865_v51 = vadd.f32 %v860_v9, %v844_v6  ;;  %v1367_v62 = vsel %vm1288_vm6, %v1365_v41, %v1366_v26  ;;  %v1389_v6 = vrot.slane %v1382_v1, 4  ;;  %v3479_v41 = vstv %s2366_s29  ;;  %s2356_s29 = sld [smem:[#allocation7 + $0x4d]] }
 0x1bb   : > { %1351 = vrot.lane.b32.xlu1 %v1348_v56, %s2615_s14  ;;  %1272 = vrot.lane.b32.xlu2 %v1269_v57, %s2620_s27  ;;  %v1470_v57 = vrot.slane %v1464_v13, 4  ;;  %v1506_v1 = vmul.f32 %v3244_v46, %v3479_v41 }
 0x1bc   : > { %1372 = vrot.lane.b32.xlu0 %v1369_v35, %s2616_s17  ;;  %v3449_v35 = vmul.f32 %v3259_v8, %v994_v50 }
 0x1bd   : > { %v841_v38 = vpop.permute.xlu1 %840  ;;  %v883_v39 = vpop.permute.xlu2 %882 }
 0x1be   : > { %v845_v28 = vadd.f32 %v841_v38, %v824_v48  ;;  %v862_v20 = vpop.permute.xlu0 %861  ;;  %v3430_v48 = vmul.f32 %v3259_v8, %v3422_v0  ;;  %v1390_v38 = vsel %vm1288_vm6, %v1387_v29, %v1389_v6  ;;  %v1452_v6 = vrot.slane %v1445_v34, 4 }
 0x1c0   : > { %v866_v54 = vadd.f32 %v862_v20, %v845_v28  ;;  %v1450_v12 = vrot.slane %v3430_v48, 4  ;;  %v1472_v28 = vsel %vm1288_vm6, %v1470_v57, %v1471_v5 }
 0x1c2   : > { %v887_v14 = vadd.f32 %v883_v39, %v866_v54  ;;  %v1451_v10 = vsel %vm1288_vm6, %v1449_v24, %v1450_v12  ;;  %v1014_v39 = vmul.f32 %v3210_v36, %v1012_v19  ;;  %v1003_v54 = vrot.slane %v3449_v35, 3 }
 0x1c3   : > { %1391 = vrot.lane.b32.xlu1 %v1388_v52, %s2616_s17  ;;  %1330 = vrot.lane.b32.xlu2 %v1327_v31, %s2615_s14  ;;  %v1013_v52 = vmul.f32 %v3244_v46, %v1012_v19  ;;  %v1529_v35 = vmul.f32 %v3383_v42, %v1526_v60 }
 0x1c4   : > { %1412 = vrot.lane.b32.xlu0 %v1409_v45, %s2617_s19  ;;  %v1020_v31 = vrot.slane %v1014_v39, 3  ;;  %v1004_v58 = vsel %vm1001_vm5, %v1002_v53, %v1003_v54 }
 0x1c5   : > { %v881_v63 = vpop.permute.xlu1 %880  ;;  %v923_v40 = vpop.permute.xlu2 %922 }
 0x1c6   : > { %v886_v3 = vadd.f32 %v881_v63, %v865_v51  ;;  %v902_v61 = vpop.permute.xlu0 %901  ;;  %v3443_v51 = vstv %s2365_s24  ;;  %v1428_v63 = vrot.slane %v1422_v27, 4  ;;  %v1550_v27 = vmul.f32 %v3294_v44, %v1547_v37  ;;  %s2379_s24 = sld [smem:[#allocation7 + $0x28]] }
 0x1c7   : > { %v3464_v20 = vmul.f32 %v3259_v8, %v3443_v51  ;;  %v1487_v43 = vmul.f32 %v3383_v42, %v3443_v51  ;;  %v1485_v39 = vmul.f32 %v3286_v47, %v3443_v51 }
 0x1c8   : > { %v907_v4 = vadd.f32 %v902_v61, %v886_v3  ;;  %v1474_v3 = vsel %vm1288_vm6, %v1471_v5, %v1473_v32  ;;  %v1015_v61 = vmul.f32 %v3294_v44, %v1012_v19  ;;  %v1512_v19 = vrot.slane %v1506_v1, 4 }
 0x1c9   : > { %v1492_v49 = vrot.slane %v3464_v20, 4  ;;  %v1494_v45 = vrot.slane %v1487_v43, 4  ;;  %v3520_v43 = vmul.f32 %v3210_v36, %v1547_v37  ;;  %v1491_v32 = vrot.slane %v1485_v39, 4 }
 0x1ca   : > { %v928_v30 = vadd.f32 %v923_v40, %v907_v4  ;;  %v997_v40 = vmul.f32 %v3383_v42, %v994_v50  ;;  %v1430_v4 = vsel %vm1288_vm6, %v1428_v63, %v1429_v23  ;;  %v1528_v23 = vmul.f32 %v3259_v8, %v1526_v60 }
 0x1cb   : > { %1414 = vrot.lane.b32.xlu1 %v1411_v18, %s2617_s19  ;;  %1370 = vrot.lane.b32.xlu2 %v1367_v62, %s2616_s17  ;;  %v3488_v18 = vmul.f32 %v3210_v36, %v3479_v41  ;;  %v1495_v62 = vsel %vm1288_vm6, %v1492_v49, %v1494_v45  ;;  %v1533_v50 = vrot.slane %v1527_v33, 4  ;;  %v1493_v60 = vsel %vm1288_vm6, %v1491_v32, %v1492_v49 }
 0x1cc   : > { %1435 = vrot.lane.b32.xlu0 %v1432_v22, %s2617_s19  ;;  %v1534_v5 = vrot.slane %v1528_v23, 4  ;;  %v1645_v1 = vstv %s2373_s8  ;;  %s2385_s8 = sld [smem:[#allocation7 + $0x2b]] }
 0x1cd   : > { %v904_v16 = vpop.permute.xlu1 %903  ;;  %v946_v9 = vpop.permute.xlu2 %945 }
 0x1ce   : > { %v908_v25 = vadd.f32 %v904_v16, %v887_v14  ;;  %v925_v26 = vpop.permute.xlu0 %924  ;;  %v1005_v16 = vrot.slane %v997_v40, 3 }
 0x1d0   : > { %v929_v56 = vadd.f32 %v925_v26, %v908_v25  ;;  %v1513_v26 = vrot.slane %v3488_v18, 4  ;;  %v1006_v57 = vsel %vm1001_vm5, %v1003_v54, %v1005_v16 }
 0x1d2   : > { %v950_v21 = vadd.f32 %v946_v9, %v929_v56  ;;  %v1022_v9 = vrot.slane %v1015_v61, 3 }
 0x1d3   : > { %1454 = vrot.lane.b32.xlu1 %v1451_v10, %s2618_s26  ;;  %1393 = vrot.lane.b32.xlu2 %v1390_v38, %s2616_s17  ;;  %v1453_v38 = vsel %vm1288_vm6, %v1450_v12, %v1452_v6  ;;  %v1548_v6 = vmul.f32 %v3244_v46, %v1547_v37 }
 0x1d4   : > { %1475 = vrot.lane.b32.xlu0 %v1472_v28, %s2618_s26  ;;  %v1023_v7 = vsel %vm1001_vm5, %v1020_v31, %v1022_v9  ;;  %v1535_v28 = vsel %vm1288_vm6, %v1533_v50, %v1534_v5 }
 0x1d5   : > { %v944_v29 = vpop.permute.xlu1 %943  ;;  %v986_v17 = vpop.permute.xlu2 %985 }
 0x1d6   : > { %v949_v55 = vadd.f32 %v944_v29, %v928_v30  ;;  %v965_v14 = vpop.permute.xlu0 %964  ;;  %v1019_v30 = vrot.slane %v1013_v52, 3  ;;  %v1557_v52 = vrot.slane %v1550_v27, 4 }
 0x1d8   : > { %v970_v15 = vadd.f32 %v965_v14, %v949_v55  ;;  %v1021_v0 = vsel %vm1001_vm5, %v1019_v30, %v1020_v31  ;;  %v1603_v55 = vstv %s2371_s6  ;;  %v1555_v14 = vrot.slane %v3520_v43, 4  ;;  %s2381_s6 = sld [smem:[#allocation7 + $0x29]] }
 0x1d9   : > { %v3528_v63 = vmul.f32 %v3259_v8, %v1603_v55  ;;  %v1606_v43 = vmul.f32 %v3383_v42, %v1603_v55 }
 0x1da   : > { %v991_v2 = vadd.f32 %v986_v17, %v970_v15  ;;  %v1536_v17 = vrot.slane %v1529_v35, 4  ;;  %v1604_v15 = vmul.f32 %v3286_v47, %v1603_v55  ;;  %v1558_v61 = vsel %vm1288_vm6, %v1555_v14, %v1557_v52 }
 0x1db   : > { %1477 = vrot.lane.b32.xlu1 %v1474_v3, %s2618_s26  ;;  %1433 = vrot.lane.b32.xlu2 %v1430_v4, %s2617_s19  ;;  %v1508_v3 = vmul.f32 %v3294_v44, %v3479_v41  ;;  %v1611_v33 = vrot.slane %v3528_v63, 5  ;;  %v1613_v55 = vrot.slane %v1606_v43, 5 }
 0x1dc   : > { %v1009_v11 = vadd.f32 %v1004_v58, %v991_v2  ;;  %1498 = vrot.lane.b32.xlu0 %v1495_v62, %s2619_s30  ;;  %v1537_v45 = vsel %vm1288_vm6, %v1534_v5, %v1536_v17  ;;  %v1624_v58 = vstv %s2372_s7  ;;  %v1610_v62 = vrot.slane %v1604_v15, 5  ;;  %s3653_s7 = sld [smem:[#allocation7 + $0x5a]] }
 0x1dd   : > { %v967_v22 = vpop.permute.xlu1 %966  ;;  %v1044_v59 = vpop.permute.xlu2 %1043  ;;  %v1626_v2 = vmul.f32 %v3210_v36, %v1624_v58  ;;  %v1625_v20 = vmul.f32 %v3244_v46, %v1624_v58  ;;  %v1515_v41 = vrot.slane %v1508_v3, 4 }
 0x1de   : > { %v1026_v24 = vadd.f32 %v1021_v0, %v1009_v11  ;;  %v971_v13 = vadd.f32 %v967_v22, %v950_v21  ;;  %v988_v25 = vpop.permute.xlu0 %987  ;;  %v1514_v21 = vsel %vm1288_vm6, %v1512_v19, %v1513_v26  ;;  %v1627_v22 = vmul.f32 %v3294_v44, %v1624_v58 }
 0x1df   : > { %v1632_v23 = vrot.slane %v1626_v2, 5  ;;  %v1631_v0 = vrot.slane %v1625_v20, 5  ;;  %v1612_v16 = vsel %vm1575_vm7, %v1610_v62, %v1611_v33  ;;  %v1516_v9 = vsel %vm1288_vm6, %v1513_v26, %v1515_v41 }
 0x1e0   : > { %v992_v56 = vadd.f32 %v988_v25, %v971_v13  ;;  %v3551_v13 = vmul.f32 %v3259_v8, %v1645_v1  ;;  %v1648_v25 = vmul.f32 %v3383_v42, %v1645_v1  ;;  %v1634_v18 = vrot.slane %v1627_v22, 5 }
 0x1e1   : > { %v1646_v58 = vmul.f32 %v3286_v47, %v1645_v1  ;;  %v3585_v41 = vstv %s2377_s5  ;;  %s2388_s5 = sld [smem:[#allocation7 + $0x5d]] }
 0x1e2   : > { %v1010_v10 = vadd.f32 %v1006_v57, %v992_v56  ;;  %v1653_v19 = vrot.slane %v3551_v13, 5  ;;  %v1655_v57 = vrot.slane %v1648_v25, 5  ;;  %v1730_v22 = vmul.f32 %v3286_v47, %v3585_v41 }
 0x1e3   : > { %1517 = vrot.lane.b32.xlu1 %v1514_v21, %s2619_s30  ;;  %1456 = vrot.lane.b32.xlu2 %v1453_v38, %s2618_s26  ;;  %v1687_v21 = vstv %s2375_s23  ;;  %v1635_v38 = vsel %vm1575_vm7, %v1632_v23, %v1634_v18  ;;  %s2387_s23 = sld [smem:[#allocation7 + $0x2c]] }
 0x1e4   : > { %v1027_v29 = vadd.f32 %v1023_v7, %v1010_v10  ;;  %1538 = vrot.lane.b32.xlu0 %v1535_v28, %s2620_s27  ;;  %v1666_v7 = vstv %s2374_s20  ;;  %v1554_v10 = vrot.slane %v1548_v6, 4  ;;  %v1690_v63 = vmul.f32 %v3383_v42, %v1687_v21  ;;  %s2386_s20 = sld [smem:[#allocation7 + $0x5c]] }
 0x1e5   : > { %v1042_v48 = vpop.permute.xlu1 %1041  ;;  %v1084_v12 = vpop.permute.xlu2 %1083  ;;  %v3559_v39 = vmul.f32 %v3210_v36, %v1666_v7  ;;  %v1667_v37 = vmul.f32 %v3244_v46, %v1666_v7  ;;  %v1669_v13 = vmul.f32 %v3294_v44, %v1666_v7 }
 0x1e6   : > { %v1048_v53 = vadd.f32 %v1044_v59, %v1027_v29  ;;  %v1047_v51 = vadd.f32 %v1042_v48, %v1026_v24  ;;  %v1063_v54 = vpop.permute.xlu0 %1062  ;;  %v1633_v24 = vsel %vm1575_vm7, %v1631_v0, %v1632_v23  ;;  %v1556_v28 = vsel %vm1288_vm6, %v1554_v10, %v1555_v14 }
 0x1e7   : > { %v1656_v29 = vsel %vm1575_vm7, %v1653_v19, %v1655_v57  ;;  %v1688_v48 = vmul.f32 %v3286_v47, %v1687_v21  ;;  %v1673_v14 = vrot.slane %v1667_v37, 5  ;;  %v3608_v10 = vstv %s2379_s24  ;;  %s2391_s24 = sld [smem:[#allocation7 + $0x2e]] }
 0x1e8   : > { %v1068_v31 = vadd.f32 %v1063_v54, %v1047_v51  ;;  %v1674_v51 = vrot.slane %v3559_v39, 5  ;;  %v1281_v37 = vstv %s2355_s25  ;;  %s2392_s25 = sld [smem:[#allocation7 + $0x5f]] }
 0x1e9   : > { %v1694_v52 = vrot.slane %v1688_v48, 5 }
 0x1ea   : > { %v1089_v40 = vadd.f32 %v1084_v12, %v1068_v31  ;;  %v1689_v12 = vmul.f32 %v3259_v8, %v1687_v21  ;;  %v1675_v15 = vsel %vm1575_vm7, %v1673_v14, %v1674_v51 }
 0x1eb   : > { %1540 = vrot.lane.b32.xlu1 %v1537_v45, %s2620_s27  ;;  %1496 = vrot.lane.b32.xlu2 %v1493_v60, %s2619_s30  ;;  %v1708_v60 = vstv %s2376_s28  ;;  %s2389_s28 = sld [smem:[#allocation7 + $0x2d]] }
 0x1ec   : > { %1561 = vrot.lane.b32.xlu0 %v1558_v61, %s2620_s27  ;;  %v1695_v31 = vrot.slane %v1689_v12, 5  ;;  %v3581_v2 = vmul.f32 %v3210_v36, %v1708_v60  ;;  %v3621_v12 = vmul.f32 %v3259_v8, %v3608_v10 }
 0x1ed   : > { %v1065_v4 = vpop.permute.xlu1 %1064  ;;  %v1107_v34 = vpop.permute.xlu2 %1106 }
 0x1ee   : > { %v1069_v30 = vadd.f32 %v1065_v4, %v1048_v53  ;;  %v1086_v49 = vpop.permute.xlu0 %1085  ;;  %v1696_v61 = vsel %vm1575_vm7, %v1694_v52, %v1695_v31  ;;  %v1711_v4 = vmul.f32 %v3294_v44, %v1708_v60  ;;  %v1716_v23 = vrot.slane %v3581_v2, 5 }
 0x1ef   : > { %v1732_v2 = vmul.f32 %v3383_v42, %v3585_v41 }
 0x1f0   : > { %v1090_v11 = vadd.f32 %v1086_v49, %v1069_v30  ;;  %v1697_v30 = vrot.slane %v1690_v63, 5  ;;  %v1779_v63 = vrot.slane %v3621_v12, 5 }
 0x1f2   : > { %v1111_v59 = vadd.f32 %v1107_v34, %v1090_v11  ;;  %v1718_v11 = vrot.slane %v1711_v4, 5  ;;  %v1698_v0 = vsel %vm1575_vm7, %v1695_v31, %v1697_v30  ;;  %v1284_v30 = vmul.f32 %v3383_v42, %v1281_v37 }
 0x1f3   : > { %1615 = vrot.lane.b32.xlu1 %v1612_v16, %s2615_s14  ;;  %1519 = vrot.lane.b32.xlu2 %v1516_v9, %s2619_s30  ;;  %v1750_v16 = vstv %s2378_s16  ;;  %s2390_s16 = sld [smem:[#allocation7 + $0x5e]] }
 0x1f4   : > { %1636 = vrot.lane.b32.xlu0 %v1633_v24, %s2615_s14  ;;  %v1752_v24 = vmul.f32 %v3210_v36, %v1750_v16  ;;  %v1719_v6 = vsel %vm1575_vm7, %v1716_v23, %v1718_v11 }
 0x1f5   : > { %v1105_v50 = vpop.permute.xlu1 %1104  ;;  %v1147_v5 = vpop.permute.xlu2 %1146 }
 0x1f6   : > { %v1110_v56 = vadd.f32 %v1105_v50, %v1089_v40  ;;  %v1126_v26 = vpop.permute.xlu0 %1125  ;;  %v1614_v40 = vsel %vm1575_vm7, %v1611_v33, %v1613_v55  ;;  %v1652_v33 = vrot.slane %v1646_v58, 5  ;;  %v1751_v50 = vmul.f32 %v3244_v46, %v1750_v16 }
 0x1f7   : > { %v1758_v7 = vrot.slane %v1752_v24, 5 }
 0x1f8   : > { %v1131_v35 = vadd.f32 %v1126_v26, %v1110_v56  ;;  %v1654_v9 = vsel %vm1575_vm7, %v1652_v33, %v1653_v19  ;;  %v1736_v56 = vrot.slane %v1730_v22, 5 }
 0x1fa   : > { %v1152_v27 = vadd.f32 %v1147_v5, %v1131_v35  ;;  %v1676_v35 = vrot.slane %v1669_v13, 5  ;;  %v1292_v13 = vrot.slane %v1284_v30, 4 }
 0x1fb   : > { %1638 = vrot.lane.b32.xlu1 %v1635_v38, %s2615_s14  ;;  %1559 = vrot.lane.b32.xlu2 %v1556_v28, %s2620_s27  ;;  %v1757_v38 = vrot.slane %v1751_v50, 5  ;;  %v1753_v28 = vmul.f32 %v3294_v44, %v1750_v16 }
 0x1fc   : > { %1659 = vrot.lane.b32.xlu0 %v1656_v29, %s2616_s17  ;;  %v1677_v48 = vsel %vm1575_vm7, %v1674_v51, %v1676_v35  ;;  %v1299_v51 = vstv %s2356_s29  ;;  %s2369_s29 = sld [smem:[#allocation7 + $0x23]] }
 0x1fd   : > { %v1128_v17 = vpop.permute.xlu1 %1127  ;;  %v1170_v53 = vpop.permute.xlu2 %1169  ;;  %v1759_v29 = vsel %vm1575_vm7, %v1757_v38, %v1758_v7  ;;  %v1760_v39 = vrot.slane %v1753_v28, 5  ;;  %v1301_v31 = vmul.f32 %v3210_v36, %v1299_v51  ;;  %v1300_v4 = vmul.f32 %v3244_v46, %v1299_v51 }
 0x1fe   : > { %v1132_v54 = vadd.f32 %v1128_v17, %v1111_v59  ;;  %v1149_v32 = vpop.permute.xlu0 %1148  ;;  %v3593_v59 = vmul.f32 %v3259_v8, %v3585_v41 }
 0x1ff   : > { %v1307_v11 = vrot.slane %v1301_v31, 4  ;;  %v1890_v31 = vstv %s2385_s8 }
 0x200   : > { %v1153_v45 = vadd.f32 %v1149_v32, %v1132_v54  ;;  %v1737_v26 = vrot.slane %v3593_v59, 5  ;;  %v1283_v54 = vmul.f32 %v3259_v8, %v1281_v37  ;;  %v1282_v32 = vmul.f32 %v3286_v47, %v1281_v37 }
 0x202   : > { %v1174_v3 = vadd.f32 %v1170_v53, %v1153_v45  ;;  %v1738_v43 = vsel %vm1575_vm7, %v1736_v56, %v1737_v26  ;;  %v1774_v53 = vmul.f32 %v3383_v42, %v3608_v10 }
 0x203   : > { %1678 = vrot.lane.b32.xlu1 %v1675_v15, %s2616_s17  ;;  %1617 = vrot.lane.b32.xlu2 %v1614_v40, %s2615_s14  ;;  %v3633_v40 = vstv %s3606_s3  ;;  %s2394_s3 = sld [smem:[#allocation7 + $0x60]] }
 0x204   : > { %1699 = vrot.lane.b32.xlu0 %v1696_v61, %s2617_s19  ;;  %v1781_v58 = vrot.slane %v1774_v53, 5  ;;  %v1289_v61 = vrot.slane %v1282_v32, 4  ;;  %v1795_v30 = vmul.f32 %v3294_v44, %v3633_v40 }
 0x205   : > { %v1168_v34 = vpop.permute.xlu1 %1167  ;;  %v1210_v20 = vpop.permute.xlu2 %1209 }
 0x206   : > { %v1173_v49 = vadd.f32 %v1168_v34, %v1152_v27  ;;  %v1189_v62 = vpop.permute.xlu0 %1188  ;;  %v1709_v27 = vmul.f32 %v3244_v46, %v1708_v60  ;;  %v1813_v60 = vstv %s2381_s6  ;;  %s2395_s6 = sld [smem:[#allocation7 + $0x30]] }
 0x207   : > { %v1814_v33 = vmul.f32 %v3286_v47, %v1813_v60  ;;  %v1815_v22 = vmul.f32 %v3259_v8, %v1813_v60  ;;  %v1816_v37 = vmul.f32 %v3383_v42, %v1813_v60 }
 0x208   : > { %v1194_v1 = vadd.f32 %v1189_v62, %v1173_v49  ;;  %v1715_v52 = vrot.slane %v1709_v27, 5  ;;  %v3641_v49 = vld [vmem:[#allocation2 + $0x20] sm:$0xff] }
 0x209   : > { %v3645_v62 = vmul.f32 %v3641_v49, %v3633_v40  ;;  %v1821_v56 = vrot.slane %v1815_v22, 5 }
 0x20a   : > { %v1215_v25 = vadd.f32 %v1210_v20, %v1194_v1  ;;  %v1761_v20 = vsel %vm1575_vm7, %v1758_v7, %v1760_v39  ;;  %v1717_v36 = vsel %vm1575_vm7, %v1715_v52, %v1716_v23  ;;  %v1782_v23 = vsel %vm1575_vm7, %v1779_v63, %v1781_v58 }
 0x20b   : > { %1701 = vrot.lane.b32.xlu1 %v1698_v0, %s2617_s19  ;;  %1657 = vrot.lane.b32.xlu2 %v1654_v9, %s2616_s17  ;;  %v1793_v0 = vmul.f32 %v3244_v46, %v3633_v40  ;;  %v1306_v9 = vrot.slane %v1300_v4, 4  ;;  %v1302_v46 = vmul.f32 %v3294_v44, %v1299_v51  ;;  %v1823_v51 = vrot.slane %v1816_v37, 5  ;;  %v3691_v4 = vld [vmem:[#allocation2 + $0x8] sm:$0xff] }
 0x20c   : > { %1722 = vrot.lane.b32.xlu0 %v1719_v6, %s2617_s19  ;;  %v1820_v6 = vrot.slane %v1814_v33, 5  ;;  %v1974_v37 = vstv %s2389_s28 }
 0x20d   : > { %v1191_v5 = vpop.permute.xlu1 %1190  ;;  %v1233_v18 = vpop.permute.xlu2 %1232  ;;  %v1308_v50 = vsel %vm1288_vm6, %v1306_v9, %v1307_v11  ;;  %v1799_v7 = vrot.slane %v1793_v0, 5  ;;  %v1309_v35 = vrot.slane %v1302_v46, 4  ;;  %v1824_v58 = vsel %vm1575_vm7, %v1821_v56, %v1823_v51 }
 0x20e   : > { %v1195_v19 = vadd.f32 %v1191_v5, %v1174_v3  ;;  %v1212_v57 = vpop.permute.xlu0 %1211  ;;  %v1290_v3 = vrot.slane %v1283_v54, 4  ;;  %v1932_v9 = vstv %s2387_s23 }
 0x210   : > { %v1216_v21 = vadd.f32 %v1212_v57, %v1195_v19  ;;  %v1291_v16 = vsel %vm1288_vm6, %v1289_v61, %v1290_v3  ;;  %v1739_v19 = vrot.slane %v1732_v2, 5  ;;  %v1293_v38 = vsel %vm1288_vm6, %v1290_v3, %v1292_v13 }
 0x211   : > { %v1891_v61 = vmul.f32 %v3286_v47, %v1890_v31  ;;  %v1802_v2 = vrot.slane %v1795_v30, 5  ;;  %v1995_v30 = vstv %s2390_s16  ;;  %s2183_s16 = scalar_lea.sflag [#allocation5], %s2735_s4 }
 0x212   : > { %v1237_v17 = vadd.f32 %v1233_v18, %v1216_v21 }
 0x213   : > { %1741 = vrot.lane.b32.xlu1 %v1738_v43, %s2618_s26  ;;  %1680 = vrot.lane.b32.xlu2 %v1677_v48, %s2616_s17  ;;  %v1772_v43 = vmul.f32 %v3286_v47, %v3608_v10  ;;  %v1740_v48 = vsel %vm1575_vm7, %v1737_v26, %v1739_v19  ;;  %v1310_v10 = vsel %vm1288_vm6, %v1307_v11, %v1309_v35  ;;  %v3703_v11 = vld [vmem:[#allocation2 + $0x18] sm:$0xff] }
 0x214   : > { %1762 = vrot.lane.b32.xlu0 %v1759_v29, %s2618_s26  ;;  %v1822_v29 = vsel %vm1575_vm7, %v1820_v6, %v1821_v56 }
 0x215   : > { %v1231_v55 = vpop.permute.xlu1 %1230  ;;  %v1273_v14 = vpop.permute.xlu2 %1272  ;;  %v1778_v26 = vrot.slane %v1772_v43, 5 }
 0x216   : > { %v1236_v45 = vadd.f32 %v1231_v55, %v1215_v25  ;;  %v1252_v15 = vpop.permute.xlu0 %1251  ;;  %v1800_v25 = vrot.slane %v3645_v62, 5 }
 0x217   : > { %v1780_v3 = vsel %vm1575_vm7, %v1778_v26, %v1779_v63 }
 0x218   : > { %v1257_v34 = vadd.f32 %v1252_v15, %v1236_v45  ;;  %v1801_v28 = vsel %vm1575_vm7, %v1799_v7, %v1800_v25  ;;  %v1803_v13 = vsel %vm1575_vm7, %v1800_v25, %v1802_v2 }
 0x21a   : > { %v1278_v1 = vadd.f32 %v1273_v14, %v1257_v34  ;;  %v3694_v34 = vmul.f32 %v3691_v4, %v1890_v31 }
 0x21b   : > { %1764 = vrot.lane.b32.xlu1 %v1761_v20, %s2618_s26  ;;  %1720 = vrot.lane.b32.xlu2 %v1717_v36, %s2617_s19  ;;  %v1911_v20 = vstv %s2386_s20 }
 0x21c   : > { %1785 = vrot.lane.b32.xlu0 %v1782_v23, %s2619_s30  ;;  %v1296_v8 = vadd.f32 %v1291_v16, %v1278_v1  ;;  %v1913_v12 = vmul.f32 %v3641_v49, %v1911_v20  ;;  %v1912_v1 = vmul.f32 %v3703_v11, %v1911_v20  ;;  %v1898_v40 = vrot.slane %v3694_v34, 6 }
 0x21d   : > { %v1254_v24 = vpop.permute.xlu1 %1253  ;;  %v1331_v41 = vpop.permute.xlu2 %1330 }
 0x21e   : > { %v1258_v5 = vadd.f32 %v1254_v24, %v1237_v17  ;;  %v1275_v18 = vpop.permute.xlu0 %1274  ;;  %v1313_v57 = vadd.f32 %v1308_v50, %v1296_v8  ;;  %v1834_v17 = vstv %s3653_s7  ;;  %v1919_v23 = vrot.slane %v1913_v12, 6  ;;  %v3707_v8 = vld [vmem:[#allocation2 + $0x28] sm:$0x3f]  ;;  %s3779_s7 = sld [smem:[#allocation7 + $0x54]] }
 0x21f   : > { %v3680_v53 = vmul.f32 %v3641_v49, %v1834_v17  ;;  %v1837_v54 = vmul.f32 %v3294_v44, %v1834_v17  ;;  %v1897_v44 = vrot.slane %v1891_v61, 6  ;;  %v1918_v46 = vrot.slane %v1912_v1, 6 }
 0x220   : > { %v1279_v21 = vadd.f32 %v1275_v18, %v1258_v5  ;;  %v1914_v24 = vmul.f32 %v3707_v8, %v1911_v20  ;;  %v3718_v5 = vmul.f32 %v3691_v4, %v1932_v9  ;;  %v1935_v18 = vmul.f32 %v3383_v42, %v1932_v9 }
 0x221   : > { %v1842_v45 = vrot.slane %v3680_v53, 5  ;;  %v1844_v15 = vrot.slane %v1837_v54, 5  ;;  %v1920_v50 = vsel %vm1862_vm8, %v1918_v46, %v1919_v23  ;;  %v1835_v56 = vmul.f32 %v3703_v11, %v1834_v17 }
 0x222   : > { %v1297_v27 = vadd.f32 %v1293_v38, %v1279_v21  ;;  %v1940_v35 = vrot.slane %v3718_v5, 6  ;;  %v1942_v21 = vrot.slane %v1935_v18, 6  ;;  %v1893_v17 = vmul.f32 %v3383_v42, %v1890_v31 }
 0x223   : > { %1804 = vrot.lane.b32.xlu1 %v1801_v28, %s2619_s30  ;;  %1743 = vrot.lane.b32.xlu2 %v1740_v48, %s2618_s26  ;;  %v1845_v33 = vsel %vm1575_vm7, %v1842_v45, %v1844_v15  ;;  %v1841_v28 = vrot.slane %v1835_v56, 5  ;;  %v3748_v12 = vmul.f32 %v3641_v49, %v1995_v30 }
 0x224   : > { %1825 = vrot.lane.b32.xlu0 %v1822_v29, %s2620_s27  ;;  %v1314_v32 = vadd.f32 %v1310_v10, %v1297_v27  ;;  %v1953_v27 = vstv %s2388_s5  ;;  %v1943_v54 = vsel %vm1862_vm8, %v1940_v35, %v1942_v21  ;;  %v3733_v10 = vld [vmem:[#allocation2] sm:$0xff]  ;;  %v1900_v31 = vrot.slane %v1893_v17, 6 }
 0x225   : > { %v1329_v39 = vpop.permute.xlu1 %1328  ;;  %v1371_v59 = vpop.permute.xlu2 %1370  ;;  %v1843_v29 = vsel %vm1575_vm7, %v1841_v28, %v1842_v45  ;;  %v3727_v48 = vmul.f32 %v3641_v49, %v1953_v27  ;;  %v1933_v61 = vmul.f32 %v3733_v10, %v1932_v9  ;;  %v2003_v2 = vrot.slane %v3748_v12, 6 }
 0x226   : > { %v1334_v55 = vadd.f32 %v1329_v39, %v1313_v57  ;;  %v1350_v14 = vpop.permute.xlu0 %1349  ;;  %v1335_v52 = vadd.f32 %v1331_v41, %v1314_v32  ;;  %v1899_v41 = vsel %vm1862_vm8, %v1897_v44, %v1898_v40  ;;  %v1921_v57 = vrot.slane %v1914_v24, 6 }
 0x227   : > { %v1975_v32 = vmul.f32 %v3733_v10, %v1974_v37  ;;  %v1976_v39 = vmul.f32 %v3691_v4, %v1974_v37  ;;  %v1901_v20 = vsel %vm1862_vm8, %v1898_v40, %v1900_v31  ;;  %v3752_v40 = vstv %s2391_s24 }
 0x228   : > { %v1355_v60 = vadd.f32 %v1350_v14, %v1334_v55  ;;  %v1922_v43 = vsel %vm1862_vm8, %v1919_v23, %v1921_v57  ;;  %v2017_v24 = vmul.f32 %v3733_v10, %v3752_v40 }
 0x229   : > { %v1981_v45 = vrot.slane %v1975_v32, 6  ;;  %v1982_v15 = vrot.slane %v1976_v39, 6 }
 0x22a   : > { %v1376_v36 = vadd.f32 %v1371_v59, %v1355_v60  ;;  %v1954_v59 = vmul.f32 %v3703_v11, %v1953_v27 }
 0x22b   : > { %1827 = vrot.lane.b32.xlu1 %v1824_v58, %s2620_s27  ;;  %1783 = vrot.lane.b32.xlu2 %v1780_v3, %s2619_s30  ;;  %v1977_v3 = vmul.f32 %v3383_v42, %v1974_v37  ;;  %v1998_v42 = vmul.f32 %v3707_v8, %v1995_v30 }
 0x22c   : > { %1848 = vrot.lane.b32.xlu0 %v1845_v33, %s2620_s27  ;;  %v1960_v58 = vrot.slane %v1954_v59, 6  ;;  %v1983_v33 = vsel %vm1862_vm8, %v1981_v45, %v1982_v15  ;;  %v3788_v59 = vld [vmem:[#allocation2 + $0x10] sm:$0x3f] }
 0x22d   : > { %v1352_v47 = vpop.permute.xlu1 %1351  ;;  %v1394_v63 = vpop.permute.xlu2 %1393  ;;  %v1984_v1 = vrot.slane %v1977_v3, 6  ;;  %v2005_v23 = vrot.slane %v1998_v42, 6 }
 0x22e   : > { %v1356_v0 = vadd.f32 %v1352_v47, %v1335_v52  ;;  %v1373_v22 = vpop.permute.xlu0 %1372  ;;  %v1961_v52 = vrot.slane %v3727_v48, 6 }
 0x22f   : > { %v1985_v9 = vsel %vm1862_vm8, %v1982_v15, %v1984_v1  ;;  %v2006_v5 = vsel %vm1862_vm8, %v2003_v2, %v2005_v23 }
 0x230   : > { %v1377_v16 = vadd.f32 %v1373_v22, %v1356_v0  ;;  %v1962_v34 = vsel %vm1862_vm8, %v1960_v58, %v1961_v52  ;;  %v1939_v0 = vrot.slane %v1933_v61, 6  ;;  %v2100_v61 = vstv %s2395_s6 }
 0x232   : > { %v1398_v6 = vadd.f32 %v1394_v63, %v1377_v16  ;;  %v1941_v46 = vsel %vm1862_vm8, %v1939_v0, %v1940_v35  ;;  %v2101_v0 = vmul.f32 %v3733_v10, %v2100_v61 }
 0x233   : > { %1902 = vrot.lane.b32.xlu1 %v1899_v41, %s2615_s14  ;;  %1806 = vrot.lane.b32.xlu2 %v1803_v13, %s2619_s30  ;;  %v3761_v41 = vmul.f32 %v3691_v4, %v3752_v40  ;;  %v1956_v13 = vmul.f32 %v3707_v8, %v1953_v27 }
 0x234   : > { %1923 = vrot.lane.b32.xlu0 %v1920_v50, %s2615_s14 }
 0x235   : > { %v1392_v19 = vpop.permute.xlu1 %1391  ;;  %v1434_v62 = vpop.permute.xlu2 %1433  ;;  %v2024_v35 = vrot.slane %v3761_v41, 6  ;;  %v1963_v21 = vrot.slane %v1956_v13, 6 }
 0x236   : > { %v1397_v25 = vadd.f32 %v1392_v19, %v1376_v36  ;;  %v1413_v7 = vpop.permute.xlu0 %1412 }
 0x237   : > { %v1964_v17 = vsel %vm1862_vm8, %v1961_v52, %v1963_v21 }
 0x238   : > { %v1418_v38 = vadd.f32 %v1413_v7, %v1397_v25  ;;  %v2023_v7 = vrot.slane %v2017_v24, 6 }
 0x23a   : > { %v1439_v53 = vadd.f32 %v1434_v62, %v1418_v38  ;;  %v2025_v48 = vsel %vm1862_vm8, %v2023_v7, %v2024_v35 }
 0x23b   : > { %1925 = vrot.lane.b32.xlu1 %v1922_v43, %s2615_s14  ;;  %1846 = vrot.lane.b32.xlu2 %v1843_v29, %s2620_s27  ;;  %v1996_v29 = vmul.f32 %v3703_v11, %v1995_v30 }
 0x23c   : > { %1946 = vrot.lane.b32.xlu0 %v1943_v54, %s2616_s17  ;;  %v1568_v54 = vstv %s2369_s29 }
 0x23d   : > { %v1415_v51 = vpop.permute.xlu1 %1414  ;;  %v1457_v26 = vpop.permute.xlu2 %1456  ;;  %v1570_v52 = vmul.f32 %v3691_v4, %v1568_v54  ;;  %v2002_v15 = vrot.slane %v1996_v29, 6 }
 0x23e   : > { %v1419_v55 = vadd.f32 %v1415_v51, %v1398_v6  ;;  %v1436_v14 = vpop.permute.xlu0 %1435  ;;  %v2037_v6 = vstv %s2392_s25 }
 0x23f   : > { %v2039_v18 = vmul.f32 %v3641_v49, %v2037_v6  ;;  %v2038_v62 = vmul.f32 %v3703_v11, %v2037_v6  ;;  %v2040_v37 = vmul.f32 %v3707_v8, %v2037_v6  ;;  %v2004_v12 = vsel %vm1862_vm8, %v2002_v15, %v2003_v2 }
 0x240   : > { %v1440_v60 = vadd.f32 %v1436_v14, %v1419_v55  ;;  %v1577_v42 = vrot.slane %v1570_v52, 5 }
 0x241   : > { %v2045_v38 = vrot.slane %v2039_v18, 6  ;;  %v2044_v27 = vrot.slane %v2038_v62, 6 }
 0x242   : > { %v1461_v36 = vadd.f32 %v1457_v26, %v1440_v60  ;;  %v2047_v26 = vrot.slane %v2040_v37, 6  ;;  %v3794_v60 = vstv %s2394_s3  ;;  %s2558_s3 = scalar_lea.hbm %s3905_s2, 32 }
 0x243   : > { %1965 = vrot.lane.b32.xlu1 %v1962_v34, %s2616_s17  ;;  %1904 = vrot.lane.b32.xlu2 %v1901_v20, %s2615_s14  ;;  %s2393_s14 = sld [smem:[#allocation7 + $0x2f]]  ;;  %v2046_v32 = vsel %vm1862_vm8, %v2044_v27, %v2045_v38  ;;  %v1569_v34 = vmul.f32 %v3733_v10, %v1568_v54 }
 0x244   : > { %1986 = vrot.lane.b32.xlu0 %v1983_v33, %s2617_s19  ;;  %v2048_v30 = vsel %vm1862_vm8, %v2045_v38, %v2047_v26  ;;  %v3802_v33 = vmul.f32 %v3641_v49, %v3794_v60 }
 0x245   : > { %v1455_v47 = vpop.permute.xlu1 %1454  ;;  %v1497_v63 = vpop.permute.xlu2 %1496  ;;  %v1576_v23 = vrot.slane %v1569_v34, 5 }
 0x246   : > { %v1460_v22 = vadd.f32 %v1455_v47, %v1439_v53  ;;  %v1476_v44 = vpop.permute.xlu0 %1475  ;;  %v2080_v47 = vmul.f32 %v3703_v11, %v3794_v60 }
 0x248   : > { %v1481_v16 = vadd.f32 %v1476_v44, %v1460_v22  ;;  %v2102_v22 = vmul.f32 %v3691_v4, %v2100_v61  ;;  %v1586_v44 = vstv %s3779_s7 }
 0x249   : > { %v3772_v43 = vstv %s2393_s14 }
 0x24a   : > { %v1502_v50 = vadd.f32 %v1497_v63, %v1481_v16  ;;  %v3786_v39 = vmul.f32 %v3691_v4, %v3772_v43  ;;  %v2061_v51 = vmul.f32 %v3788_v59, %v3772_v43  ;;  %v2019_v63 = vmul.f32 %v3788_v59, %v3752_v40 }
 0x24b   : > { %1988 = vrot.lane.b32.xlu1 %v1985_v9, %s2617_s19  ;;  %1944 = vrot.lane.b32.xlu2 %v1941_v46, %s2616_s17  ;;  %v1588_v16 = vmul.f32 %v3641_v49, %v1586_v44  ;;  %v1589_v40 = vmul.f32 %v3707_v8, %v1586_v44  ;;  %v2087_v46 = vrot.slane %v3802_v33, 6  ;;  %v2108_v62 = vrot.slane %v2102_v22, 6 }
 0x24c   : > { %2009 = vrot.lane.b32.xlu0 %v2006_v5, %s2617_s19  ;;  %v2066_v58 = vrot.slane %v3786_v39, 6  ;;  %v2068_v3 = vrot.slane %v2061_v51, 6  ;;  %v2026_v6 = vrot.slane %v2019_v63, 6 }
 0x24d   : > { %v1478_v56 = vpop.permute.xlu1 %1477  ;;  %v1520_v19 = vpop.permute.xlu2 %1519  ;;  %v1596_v7 = vrot.slane %v1589_v40, 5 }
 0x24e   : > { %v1482_v57 = vadd.f32 %v1478_v56, %v1461_v36  ;;  %v1499_v25 = vpop.permute.xlu0 %1498  ;;  %v1571_v36 = vmul.f32 %v3788_v59, %v1568_v54  ;;  %v2069_v2 = vsel %vm1862_vm8, %v2066_v58, %v2068_v3  ;;  %v2086_v56 = vrot.slane %v2080_v47, 6 }
 0x24f   : > { %v2027_v27 = vsel %vm1862_vm8, %v2024_v35, %v2026_v6 }
 0x250   : > { %v1503_v28 = vadd.f32 %v1499_v25, %v1482_v57  ;;  %v1579_v9 = vrot.slane %v1571_v36, 5  ;;  %v1578_v57 = vsel %vm1575_vm7, %v1576_v23, %v1577_v42  ;;  %v1594_v25 = vrot.slane %v1588_v16, 5 }
 0x252   : > { %v1524_v53 = vadd.f32 %v1520_v19, %v1503_v28  ;;  %v2107_v19 = vrot.slane %v2101_v0, 6  ;;  %v1580_v21 = vsel %vm1575_vm7, %v1577_v42, %v1579_v9  ;;  %v2088_v28 = vsel %vm1862_vm8, %v2086_v56, %v2087_v46 }
 0x253   : > { %2028 = vrot.lane.b32.xlu1 %v2025_v48, %s2618_s26  ;;  %1967 = vrot.lane.b32.xlu2 %v1964_v17, %s2616_s17  ;;  %s3809_s17 = sld [smem:[#allocation7 + $0x61]]  ;;  %v2103_v48 = vmul.f32 %v3788_v59, %v2100_v61  ;;  %v1597_v26 = vsel %vm1575_vm7, %v1594_v25, %v1596_v7 }
 0x254   : > { %2049 = vrot.lane.b32.xlu0 %v2046_v32, %s2618_s26  ;;  %v2109_v54 = vsel %vm1862_vm8, %v2107_v19, %v2108_v62  ;;  %v2059_v32 = vmul.f32 %v3733_v10, %v3772_v43 }
 0x255   : > { %v1518_v55 = vpop.permute.xlu1 %1517  ;;  %v1560_v14 = vpop.permute.xlu2 %1559  ;;  %v2110_v15 = vrot.slane %v2103_v48, 6 }
 0x256   : > { %v1523_v31 = vadd.f32 %v1518_v55, %v1502_v50  ;;  %v1539_v45 = vpop.permute.xlu0 %1538  ;;  %v1587_v50 = vmul.f32 %v3703_v11, %v1586_v44  ;;  %v2065_v3 = vrot.slane %v2059_v32, 6 }
 0x257   : > { %v2111_v36 = vsel %vm1862_vm8, %v2108_v62, %v2110_v15 }
 0x258   : > { %v1544_v20 = vadd.f32 %v1539_v45, %v1523_v31  ;;  %v1593_v29 = vrot.slane %v1587_v50, 5  ;;  %v2067_v33 = vsel %vm1862_vm8, %v2065_v3, %v2066_v58 }
 0x259   : > { %v2121_v17 = vstv %s3809_s17 }
 0x25a   : > { %v1565_v1 = vadd.f32 %v1560_v14, %v1544_v20  ;;  %v2123_v51 = vmul.f32 %v3641_v49, %v2121_v17  ;;  %v1595_v41 = vsel %vm1575_vm7, %v1593_v29, %v1594_v25  ;;  %v2124_v35 = vmul.f32 %v3707_v8, %v2121_v17 }
 0x25b   : > { %2051 = vrot.lane.b32.xlu1 %v2048_v30, %s2618_s26  ;;  %2007 = vrot.lane.b32.xlu2 %v2004_v12, %s2617_s19  ;;  %v2082_v12 = vmul.f32 %v3707_v8, %v3794_v60  ;;  %v2122_v60 = vmul.f32 %v3703_v11, %v2121_v17  ;;  %s2383_s19 = sld [smem:[#allocation7 + $0x2a]] }
 0x25c   : > { %2072 = vrot.lane.b32.xlu0 %v2069_v2, %s2619_s30  ;;  %v1583_v37 = vadd.f32 %v1578_v57, %v1565_v1  ;;  %v2129_v34 = vrot.slane %v2123_v51, 6  ;;  %v2131_v20 = vrot.slane %v2124_v35, 6 }
 0x25d   : > { %v1541_v24 = vpop.permute.xlu1 %1540  ;;  %v1618_v13 = vpop.permute.xlu2 %1617  ;;  %v2089_v44 = vrot.slane %v2082_v12, 6  ;;  %v2128_v9 = vrot.slane %v2122_v60, 6 }
 0x25e   : > { %v1545_v5 = vadd.f32 %v1541_v24, %v1524_v53  ;;  %v1562_v18 = vpop.permute.xlu0 %1561  ;;  %v1600_v55 = vadd.f32 %v1595_v41, %v1583_v37  ;;  %v2132_v47 = vsel %vm1862_vm8, %v2129_v34, %v2131_v20 }
 0x25f   : > { %v2090_v58 = vsel %vm1862_vm8, %v2087_v46, %v2089_v44  ;;  %v2130_v24 = vsel %vm1862_vm8, %v2128_v9, %v2129_v34 }
 0x260   : > { %v1566_v38 = vadd.f32 %v1562_v18, %v1545_v5 }
 0x262   : > { %v1584_v53 = vadd.f32 %v1580_v21, %v1566_v38 }
 0x263   : > { %2091 = vrot.lane.b32.xlu1 %v2088_v28, %s2619_s30  ;;  %2030 = vrot.lane.b32.xlu2 %v2027_v27, %s2618_s26  ;;  %s2384_s26 = sld [smem:[#allocation7 + $0x5b]]  ;;  %v1855_v27 = vstv %s2383_s19 }
 0x264   : > { %2112 = vrot.lane.b32.xlu0 %v2109_v54, %s2620_s27  ;;  %v1601_v14 = vadd.f32 %v1597_v26, %v1584_v53  ;;  %v1857_v48 = vmul.f32 %v3691_v4, %v1855_v27  ;;  %v1856_v17 = vmul.f32 %v3733_v10, %v1855_v27  ;;  %v1858_v15 = vmul.f32 %v3788_v59, %v1855_v27 }
 0x265   : > { %v1616_v52 = vpop.permute.xlu1 %1615  ;;  %v1658_v31 = vpop.permute.xlu2 %1657 }
 0x266   : > { %v1621_v45 = vadd.f32 %v1616_v52, %v1600_v55  ;;  %v1637_v43 = vpop.permute.xlu0 %1636  ;;  %v1622_v61 = vadd.f32 %v1618_v13, %v1601_v14  ;;  %v1864_v14 = vrot.slane %v1857_v48, 6  ;;  %v1863_v52 = vrot.slane %v1856_v17, 6 }
 0x268   : > { %v1642_v30 = vadd.f32 %v1637_v43, %v1621_v45  ;;  %v1865_v10 = vsel %vm1862_vm8, %v1863_v52, %v1864_v14 }
 0x269   : > { %v1873_v32 = vstv %s2384_s26 }
 0x26a   : > { %v1663_v42 = vadd.f32 %v1658_v31, %v1642_v30  ;;  %v1875_v35 = vmul.f32 %v3641_v49, %v1873_v32  ;;  %v1874_v31 = vmul.f32 %v3703_v11, %v1873_v32  ;;  %v1876_v34 = vmul.f32 %v3707_v8, %v1873_v32 }
 0x26b   : > { %2114 = vrot.lane.b32.xlu1 %v2111_v36, %s2620_s27  ;;  %2070 = vrot.lane.b32.xlu2 %v2067_v33, %s2619_s30  ;;  %v1866_v33 = vrot.slane %v1858_v15, 6 }
 0x26c   : > { %2135 = vrot.lane.b32.xlu0 %v2132_v47, %s2620_s27  ;;  %v1881_v4 = vrot.slane %v1875_v35, 6 }
 0x26d   : > { %v1639_v63 = vpop.permute.xlu1 %1638  ;;  %v1681_v1 = vpop.permute.xlu2 %1680  ;;  %v1867_v59 = vsel %vm1862_vm8, %v1864_v14, %v1866_v33 }
 0x26e   : > { %v1643_v0 = vadd.f32 %v1639_v63, %v1622_v61  ;;  %v1660_v22 = vpop.permute.xlu0 %1659  ;;  %v1880_v61 = vrot.slane %v1874_v31, 6  ;;  %v1883_v63 = vrot.slane %v1876_v34, 6 }
 0x270   : > { %v1664_v39 = vadd.f32 %v1660_v22, %v1643_v0  ;;  %v1882_v12 = vsel %vm1862_vm8, %v1880_v61, %v1881_v4  ;;  %v1884_v22 = vsel %vm1862_vm8, %v1881_v4, %v1883_v63 }
 0x272   : > { %v1685_v2 = vadd.f32 %v1681_v1, %v1664_v39 }
 0x273   : > { %2093 = vrot.lane.b32.xlu2 %v2090_v58, %s2619_s30  ;;  %s2293_s30 = sshll.u32 %s2735_s4, 4 }
 0x275   : > { %v1679_v23 = vpop.permute.xlu1 %1678  ;;  %v1721_v16 = vpop.permute.xlu2 %1720 }
 0x276   : > { %v1700_v40 = vpop.permute.xlu0 %1699  ;;  %v1684_v5 = vadd.f32 %v1679_v23, %v1663_v42 }
 0x278   : > { %v1705_v46 = vadd.f32 %v1700_v40, %v1684_v5 }
 0x27a   : > { %v1726_v57 = vadd.f32 %v1721_v16, %v1705_v46 }
 0x27b   : > { %2133 = vrot.lane.b32.xlu2 %v2130_v24, %s2620_s27  ;;  %s2403_s27 = sshll.u32 %s2659_s13, 4  ;;  %s177_s13 = scalar_lea.vmem [#allocation8], %s2293_s30 }
 0x27c   : > { %s2194_s23 = scalar_lea.hbm %s3905_s2, %s2403_s27  ;;  %s2195_s28 = sshll.u32 %s177_s13, 4  ;;  %s2196_s28 = int_to_ptr.vmem [resolvable:$true] %s2195_s28 }
 0x27d   : > { %v1702_v13 = vpop.permute.xlu1 %1701  ;;  %v1744_v6 = vpop.permute.xlu2 %1743  ;;  %s2197_s5 = sshll.u32 %s2194_s23, 4  ;;  %s2198_s5 = int_to_ptr.hbm [resolvable:$true] %s2197_s5 }
 0x27e   : > { %v1723_v50 = vpop.permute.xlu0 %1722  ;;  %v1706_v62 = vadd.f32 %v1702_v13, %v1685_v2  ;;  %s2552_s24 = sshra.s32 %s2198_s5, 4  ;;  %s2553_s24 = int_to_ptr.hbm [resolvable:$true] %s2552_s24 }
 0x27f   : > { %s2554_s25 = scalar_lea.hbm %s2553_s24, 16  ;;  %p2559_p0 = scmp.lt.s32.totalorder %s2553_s24, %s3905_s2 }
 0x280   : > { %v1727_v38 = vadd.f32 %v1723_v50, %v1706_v62  ;;  %p2555_p4 = scmp.ne.s32.totalorder %s2553_s24, %s2554_s25  ;;  %p2560_p3 = scmp.lt.s32.totalorder %s2558_s3, %s2554_s25 }
 0x282   : > { %v1748_v29 = vadd.f32 %v1744_v6, %v1727_v38  ;;  %p2556_p6 = pnand %p2555_p4, %p2690_p11  ;;  %p2561_p5 = por %p2560_p3, %p2559_p0 }
 0x284   : > { %p2557_p13 = pneg %p2556_p6 }
 0x285   : > { %v1742_v18 = vpop.permute.xlu1 %1741  ;;  %v1784_v56 = vpop.permute.xlu2 %1783 }
 0x286   : > { %v1763_v19 = vpop.permute.xlu0 %1762  ;;  %v1747_v25 = vadd.f32 %v1742_v18, %v1726_v57  ;;  %p2562_p8 = pnand %p2561_p5, %p2557_p13 }
 0x288   : > { %v1768_v37 = vadd.f32 %v1763_v19, %v1747_v25 }
 0x28a   : > { %v1789_v54 = vadd.f32 %v1784_v56, %v1768_v37 }
 0x28d   : > { %v1765_v7 = vpop.permute.xlu1 %1764  ;;  %v1807_v21 = vpop.permute.xlu2 %1806 }
 0x28e   : > { %v1786_v28 = vpop.permute.xlu0 %1785  ;;  %v1769_v53 = vadd.f32 %v1765_v7, %v1748_v29 }
 0x290   : > { %v1790_v45 = vadd.f32 %v1786_v28, %v1769_v53 }
 0x292   : > { %v1811_v20 = vadd.f32 %v1807_v21, %v1790_v45 }
 0x295   : > { %v1805_v51 = vpop.permute.xlu1 %1804  ;;  %v1847_v41 = vpop.permute.xlu2 %1846 }
 0x296   : > { %v1810_v26 = vadd.f32 %v1805_v51, %v1789_v54  ;;  %v1826_v55 = vpop.permute.xlu0 %1825 }
 0x298   : > { %v1831_v43 = vadd.f32 %v1826_v55, %v1810_v26 }
 0x29a   : > { %v1852_v3 = vadd.f32 %v1847_v41, %v1831_v43 }
 0x29c   : > { %v1870_v30 = vadd.f32 %v1865_v10, %v1852_v3 }
 0x29d   : > { %v1828_v49 = vpop.permute.xlu1 %1827  ;;  %v1905_v36 = vpop.permute.xlu2 %1904 }
 0x29e   : > { %v1832_v42 = vadd.f32 %v1828_v49, %v1811_v20  ;;  %v1849_v11 = vpop.permute.xlu0 %1848  ;;  %v1887_v47 = vadd.f32 %v1882_v12, %v1870_v30 }
 0x2a0   : > { %v1853_v1 = vadd.f32 %v1849_v11, %v1832_v42 }
 0x2a2   : > { %v1871_v0 = vadd.f32 %v1867_v59, %v1853_v1 }
 0x2a4   : > { %v1888_v44 = vadd.f32 %v1884_v22, %v1871_v0 }
 0x2a5   : > { %v1903_v39 = vpop.permute.xlu1 %1902  ;;  %v1945_v8 = vpop.permute.xlu2 %1944 }
 0x2a6   : > { %v1924_v58 = vpop.permute.xlu0 %1923  ;;  %v1908_v24 = vadd.f32 %v1903_v39, %v1887_v47  ;;  %v1909_v5 = vadd.f32 %v1905_v36, %v1888_v44 }
 0x2a8   : > { %v1929_v13 = vadd.f32 %v1924_v58, %v1908_v24 }
 0x2aa   : > { %v1950_v46 = vadd.f32 %v1945_v8, %v1929_v13 }
 0x2ad   : > { %v1926_v2 = vpop.permute.xlu1 %1925  ;;  %v1968_v60 = vpop.permute.xlu2 %1967 }
 0x2ae   : > { %v1947_v23 = vpop.permute.xlu0 %1946  ;;  %v1930_v56 = vadd.f32 %v1926_v2, %v1909_v5 }
 0x2b0   : > { %v1951_v62 = vadd.f32 %v1947_v23, %v1930_v56 }
 0x2b2   : > { %v1972_v38 = vadd.f32 %v1968_v60, %v1951_v62 }
 0x2b5   : > { %v1966_v16 = vpop.permute.xlu1 %1965  ;;  %v2008_v40 = vpop.permute.xlu2 %2007 }
 0x2b6   : > { %v1987_v9 = vpop.permute.xlu0 %1986  ;;  %v1971_v19 = vadd.f32 %v1966_v16, %v1950_v46 }
 0x2b8   : > { %v1992_v7 = vadd.f32 %v1987_v9, %v1971_v19 }
 0x2ba   : > { %v2013_v37 = vadd.f32 %v2008_v40, %v1992_v7 }
 0x2bd   : > { %v1989_v6 = vpop.permute.xlu1 %1988  ;;  %v2031_v50 = vpop.permute.xlu2 %2030 }
 0x2be   : > { %v2010_v18 = vpop.permute.xlu0 %2009  ;;  %v1993_v28 = vadd.f32 %v1989_v6, %v1972_v38 }
 0x2c0   : > { %v2014_v48 = vadd.f32 %v2010_v18, %v1993_v28 }
 0x2c2   : > { %v2035_v32 = vadd.f32 %v2031_v50, %v2014_v48 }
 0x2c5   : > { %v2029_v57 = vpop.permute.xlu1 %2028  ;;  %v2071_v25 = vpop.permute.xlu2 %2070 }
 0x2c6   : > { %v2050_v21 = vpop.permute.xlu0 %2049  ;;  %v2034_v27 = vadd.f32 %v2029_v57, %v2013_v37 }
 0x2c8   : > { %v2055_v54 = vadd.f32 %v2050_v21, %v2034_v27 }
 0x2ca   : > { %v2076_v41 = vadd.f32 %v2071_v25, %v2055_v54 }
 0x2cd   : > { %v2052_v29 = vpop.permute.xlu1 %2051  ;;  %v2094_v53 = vpop.permute.xlu2 %2093 }
 0x2ce   : > { %v2073_v17 = vpop.permute.xlu0 %2072  ;;  %v2056_v51 = vadd.f32 %v2052_v29, %v2035_v32 }
 0x2d0   : > { %v2077_v14 = vadd.f32 %v2073_v17, %v2056_v51 }
 0x2d2   : > { %v2098_v15 = vadd.f32 %v2094_v53, %v2077_v14 }
 0x2d5   : > { %v2092_v35 = vpop.permute.xlu1 %2091  ;;  %v2134_v31 = vpop.permute.xlu2 %2133 }
 0x2d6   : > { %v2097_v26 = vadd.f32 %v2092_v35, %v2076_v41  ;;  %v2113_v55 = vpop.permute.xlu0 %2112 }
 0x2d8   : > { %v2118_v52 = vadd.f32 %v2113_v55, %v2097_v26 }
 0x2da   : > { %v2139_v45 = vadd.f32 %v2134_v31, %v2118_v52 }
 0x2dc   : > { %v2141_v43 = vsub.f32 0.0, %v2139_v45 }
 0x2dd   : > { %v2115_v4 = vpop.permute.xlu1 %2114 }
 0x2de   : > { %v2143_v3 = vmul.f32 1.442695, %v2141_v43  ;;  %v2119_v10 = vadd.f32 %v2115_v4, %v2098_v15  ;;  %v2136_v61 = vpop.permute.xlu0 %2135 }
 0x2e0   : > { %2473 = vpow2.f32 %v2143_v3  ;;  %v2140_v34 = vadd.f32 %v2136_v61, %v2119_v10 }
 0x2e2   : > { %v2142_v20 = vsub.f32 0.0, %v2140_v34 }
 0x2e4   : > { %v2145_v30 = vmul.f32 1.442695, %v2142_v20 }
 0x2e6   : > { %v2474_v49 = vpop.eup %2473  ;;  %2475 = vpow2.f32 %v2145_v30 }
 0x2e7   : > { %v2147_v36 = vadd.f32 1.0, %v2474_v49 }
 0x2e9   : > { %2477 = vrcp.f32 %v2147_v36  ;;  %v2160_v63 = vand.u32 2147483648, %v2147_v36  ;;  %v2158_v59 = vand.u32 2147483647, %v2147_v36  ;;  %vm2154_vm10 = vweird.f32 %v2147_v36 }
 0x2eb   : > { %v2161_v39 = vor.u32 1.1754944e-38, %v2160_v63  ;;  %vm2159_vm13 = vcmp.eq.f32.partialorder %v2158_v59, 8.507059e+37 }
 0x2ec   : > { %v2476_v33 = vpop.eup %2475 }
 0x2ed   : > { %v2148_v12 = vadd.f32 1.0, %v2476_v33 }
 0x2ef   : > { %v2478_v42 = vpop.eup %2477  ;;  %2479 = vrcp.f32 %v2148_v12  ;;  %v2175_v2 = vand.u32 2147483648, %v2148_v12  ;;  %v2173_v16 = vand.u32 2147483647, %v2148_v12  ;;  %vm2169_vm15 = vweird.f32 %v2148_v12 }
 0x2f0   : > { %v2150_v11 = vmul.f32 %v2478_v42, %v2147_v36  ;;  %vm2155_vm9 = vweird.f32 %v2478_v42 }
 0x2f1   : > { %vm2156_vm11 = vmor %vm2154_vm10, %vm2155_vm9  ;;  %v2176_v9 = vor.u32 1.1754944e-38, %v2175_v2  ;;  %vm2174_vm1 = vcmp.eq.f32.partialorder %v2173_v16, 8.507059e+37 }
 0x2f2   : > { %v2151_v47 = vsub.f32 1.0, %v2150_v11 }
 0x2f4   : > { %v2152_v1 = vmul.f32 %v2478_v42, %v2151_v47 }
 0x2f5   : > { %v2480_v0 = vpop.eup %2479 }
 0x2f6   : > { %v2165_v22 = vmul.f32 %v2480_v0, %v2148_v12  ;;  %v2153_v44 = vadd.f32 %v2478_v42, %v2152_v1  ;;  %vm2170_vm14 = vweird.f32 %v2480_v0 }
 0x2f7   : > { %vm2171_vm0 = vmor %vm2169_vm15, %vm2170_vm14 }
 0x2f8   : > { %v2166_v8 = vsub.f32 1.0, %v2165_v22  ;;  %v2157_v58 = vsel %vm2156_vm11, %v2478_v42, %v2153_v44 }
 0x2f9   : > { %v2162_v60 = vsel %vm2159_vm13, %v2161_v39, %v2157_v58 }
 0x2fa   : > { %v2167_v23 = vmul.f32 %v2480_v0, %v2166_v8  ;;  %2180 = vst.msk [vmem:[%s177_s13] sm:$0xff] %vm2179_vm12, %v2162_v60 }
 0x2fc   : > { %v2168_v40 = vadd.f32 %v2480_v0, %v2167_v23 }
 0x2fe   : > { %v2172_v24 = vsel %vm2171_vm0, %v2480_v0, %v2168_v40 }
 0x2ff   : > { %v2177_v13 = vsel %vm2174_vm1, %v2176_v9, %v2172_v24 }
 0x300   : > { %2181 = vst.msk [vmem:[%s177_s13 + $0x8] sm:$0xff] %vm2179_vm12, %v2177_v13 }
 0x301   : > { %2565 = shalt.err (!%p2562_p8)
}
 0x302   : > { %s2621_s4 = smov 128   ;;  %s2622_s17 = smov 8  }
 0x303   : > { %2410 = dma.vmem_to_hbm [thread:$0]  (%p2690_p11), %s2196_s28, 256, %s2198_s5, %s2183_s16, %s2621_s4, %s2621_s4, %s2622_s17  }
 0x304 PF: > { %s2212_s19 = sand.u32 1, %s2596_s9   ;;  %p3912_p9 = scmp.ge.s32.totalorder %s2608_s12, 2 }
 0x305   : > { %s2213_s26 = scalar_lea.sflag [#allocation5], %s2212_s19 }
 0x306   : > { %p2421_p10 = pnand %p3912_p9, %p2694_p12 }
 0x308   : > { %p2422_p1 = pneg %p2421_p10 }
 0x30a   : > { %2591 = dma.done.wait (%p2422_p1), %s2213_s26, 256  }
 0x30b   : > { %2593 = vsyncadd (%p2422_p1), %s2213_s26, 4294967040  ;;  %p16_p2 = scmp.ge.s32.totalorder %s2663_s15, 4   ;;  %s3913_s9 = smov %s2600_s10 }
 0x30c   : > { %s3914_s10 = smov %s2604_s11  ;;  %s3915_s11 = smov %s2675_s18 }
 0x30d   : > { %s3916_s12 = smov %s2663_s15  ;;  %18 = sbr.rel (!%p16_p2) target bundleno = 6 (0x6), region = 82 }
 0x312   :  { %2219 = vsyncpa [#allocation4], 1 }
 0x313   :  { %2221 = vsyncpa [#allocation4 + $0x1], 1 }
 0x314   :  { %2222 = vsyncpa [#allocation5], 1 }
 0x315   :  { %2224 = vsyncpa [#allocation5 + $0x1], 1 }
 0x316   :  { %2225 = vsyncpa [#allocation6], 1 }
 0x317   :  { %2227 = vsyncpa [#allocation6 + $0x1], 1 }

</bundles_post_ra>
